<compile_context>
chip_gen: v6e
topology: v6e:2x2x1
jax: 0.10.0
libtpu: 0.0.40
codegen_flags: <defaults>
</compile_context>

<pallas_src>
import functools

import jax
import jax.numpy as jnp
from jax.experimental import pallas as pl
from jax.experimental.pallas import tpu as pltpu


_VMEM_LIMIT = 32 * 1024 * 1024
_LANE = 128


def _round_up(x, m):
    return (x + m - 1) // m * m


def _pick_tile(dim, preferred):
    # tiles are always multiples of 128 (lane/MXU friendly) but never bigger
    # than the 128-rounded problem dimension.
    return min(preferred, _round_up(dim, _LANE))


# ----------------------------- Pallas kernels ------------------------------ #

def _matmul_kernel(x_ref, w_ref, b_ref, o_ref, acc_ref, *, slope, activate):
    """Tiled bf16 matmul, f32 accumulation, fused bias + LeakyReLU epilogue."""
    @pl.when(pl.program_id(2) == 0)
    def _():
        acc_ref[...] = jnp.zeros_like(acc_ref)

    acc_ref[...] += jnp.dot(x_ref[...], w_ref[...],
                            preferred_element_type=jnp.float32)

    @pl.when(pl.program_id(2) == pl.num_programs(2) - 1)
    def _():
        acc = acc_ref[...] + b_ref[...]
        if activate:
            acc = jnp.where(acc >= 0, acc, slope * acc)
        o_ref[...] = acc.astype(o_ref.dtype)


def _cam_kernel(x_ref, w_ref, b_ref, y_ref, hm_ref, acc_ref, *, slope):
    """Folded CAM conv1x1: matmul + bias + LeakyReLU + channel-sum heatmap."""
    @pl.when(pl.program_id(1) == 0)
    def _():
        acc_ref[...] = jnp.zeros_like(acc_ref)

    acc_ref[...] += jnp.dot(x_ref[...], w_ref[...],
                            preferred_element_type=jnp.float32)

    @pl.when(pl.program_id(1) == pl.num_programs(1) - 1)
    def _():
        acc = acc_ref[...] + b_ref[...]
        y = jnp.where(acc >= 0, acc, slope * acc)
        y_ref[...] = y.astype(y_ref.dtype)
        # padded weight columns / bias are zero -> LeakyReLU(0)=0, so summing
        # over the full padded N is exact. Store lane-dense (broadcast to 128).
        hm = jnp.sum(y, axis=-1, keepdims=True)
        hm_ref[...] = jnp.broadcast_to(hm, hm_ref.shape).astype(hm_ref.dtype)


def _pool_logit_kernel(x_ref, gapw_ref, gmpw_ref, cam_ref):
    # x_ref: (B, HW, C); gapw/gmpw: (C, 1) spectral-normalized, pre-transposed.
    x = x_ref[...].astype(jnp.float32)
    gap = jnp.mean(x, axis=1)                     # adaptive_avg_pool2d(x, 1)
    gmp = jnp.max(x, axis=1)                      # adaptive_max_pool2d(x, 1)
    cam_ref[:, 0:1] = jnp.dot(gap, gapw_ref[...],
                              preferred_element_type=jnp.float32)
    cam_ref[:, 1:2] = jnp.dot(gmp, gmpw_ref[...],
                              preferred_element_type=jnp.float32)


# ----------------------------- kernel wrappers ----------------------------- #

def tiled_matmul(x, w, b=None, *, activate=False, slope=0.2,
                 out_dtype=jnp.float32, tm=256, tn=256, tk=512):
    """(M,K)@(K,N) with optional fused bias + LeakyReLU; bf16 in, f32 acc."""
    M, K = x.shape
    Kw, N = w.shape
    assert K == Kw
    tm = _pick_tile(M, tm)
    tn = _pick_tile(N, tn)
    tk = _pick_tile(K, tk)
    Mp, Kp, Np = _round_up(M, tm), _round_up(K, tk), _round_up(N, tn)

    xb = jnp.pad(x.astype(jnp.bfloat16), ((0, Mp - M), (0, Kp - K)))
    wb = jnp.pad(w.astype(jnp.bfloat16), ((0, Kp - K), (0, Np - N)))
    if b is None:
        bb = jnp.zeros((1, Np), jnp.float32)
    else:
        bb = jnp.pad(b.reshape(1, N).astype(jnp.float32), ((0, 0), (0, Np - N)))

    grid = (Mp // tm, Np // tn, Kp // tk)
    kernel = functools.partial(_matmul_kernel, slope=slope, activate=activate)
    out = pl.pallas_call(
        kernel,
        out_shape=jax.ShapeDtypeStruct((Mp, Np), out_dtype),
        grid=grid,
        in_specs=[
            pl.BlockSpec((tm, tk), lambda i, j, k: (i, k)),
            pl.BlockSpec((tk, tn), lambda i, j, k: (k, j)),
            pl.BlockSpec((1, tn), lambda i, j, k: (0, j)),
        ],
        out_specs=pl.BlockSpec((tm, tn), lambda i, j, k: (i, j)),
        scratch_shapes=[pltpu.VMEM((tm, tn), jnp.float32)],
        compiler_params=pltpu.CompilerParams(
            dimension_semantics=("parallel", "parallel", "arbitrary"),
            vmem_limit_bytes=_VMEM_LIMIT),
        cost_estimate=pl.CostEstimate(
            flops=2 * Mp * Np * Kp,
            transcendentals=0,
            bytes_accessed=2 * (Mp * Kp + Kp * Np)
            + Mp * Np * jnp.dtype(out_dtype).itemsize),
    )(xb, wb, bb)
    return out[:M, :N]


def cam_conv1x1(x2d, w_comb, b, *, slope=0.2, tm=256, tk=512):
    """Fused conv1x1 (with gap/gmp weights pre-folded) + LeakyReLU + heatmap."""
    M, K = x2d.shape
    Kw, N = w_comb.shape
    assert K == Kw
    tm = _pick_tile(M, tm)
    tk = _pick_tile(K, tk)
    Np = _round_up(N, _LANE)
    Mp, Kp = _round_up(M, tm), _round_up(K, tk)

    xb = jnp.pad(x2d.astype(jnp.bfloat16), ((0, Mp - M), (0, Kp - K)))
    wb = jnp.pad(w_comb.astype(jnp.bfloat16), ((0, Kp - K), (0, Np - N)))
    bb = jnp.pad(b.reshape(1, N).astype(jnp.float32), ((0, 0), (0, Np - N)))

    grid = (Mp // tm, Kp // tk)
    y, hm = pl.pallas_call(
        functools.partial(_cam_kernel, slope=slope),
        out_shape=(jax.ShapeDtypeStruct((Mp, Np), jnp.bfloat16),
                   jax.ShapeDtypeStruct((Mp, _LANE), jnp.float32)),
        grid=grid,
        in_specs=[
            pl.BlockSpec((tm, tk), lambda i, k: (i, k)),
            pl.BlockSpec((tk, Np), lambda i, k: (k, 0)),
            pl.BlockSpec((1, Np), lambda i, k: (0, 0)),
        ],
        out_specs=(pl.BlockSpec((tm, Np), lambda i, k: (i, 0)),
                   pl.BlockSpec((tm, _LANE), lambda i, k: (i, 0))),
        scratch_shapes=[pltpu.VMEM((tm, Np), jnp.float32)],
        compiler_params=pltpu.CompilerParams(
            dimension_semantics=("parallel", "arbitrary"),
            vmem_limit_bytes=_VMEM_LIMIT),
    )(xb, wb, bb)
    return y[:M, :N], hm[:M, :1]


def pool_and_logits(x3, gapw_t, gmpw_t):
    """Global avg/max pool + both CAM logits, concatenated to (B, 2)."""
    B, HW, C = x3.shape
    return pl.pallas_call(
        _pool_logit_kernel,
        out_shape=jax.ShapeDtypeStruct((B, 2), jnp.float32),
        grid=(1,),
        in_specs=[
            pl.BlockSpec((B, HW, C), lambda i: (0, 0, 0)),
            pl.BlockSpec((C, 1), lambda i: (0, 0)),
            pl.BlockSpec((C, 1), lambda i: (0, 0)),
        ],
        out_specs=pl.BlockSpec((B, 2), lambda i: (0, 0)),
        compiler_params=pltpu.CompilerParams(
            dimension_semantics=("arbitrary",),
            vmem_limit_bytes=_VMEM_LIMIT),
    )(x3, gapw_t, gmpw_t)


# ------------------------------- JAX glue ---------------------------------- #

def reflect_pad1(x_nhwc):
    return jnp.pad(x_nhwc, ((0, 0), (1, 1), (1, 1), (0, 0)), mode="reflect")


def im2col(xp, kh, kw, stride):
    """xp: (B, H, W, C) -> (B*OH*OW, kh*kw*C), flattened as (kh, kw, cin)."""
    B, H, W, C = xp.shape
    OH = (H - kh) // stride + 1
    OW = (W - kw) // stride + 1
    cols = []
    for i in range(kh):
        for j in range(kw):
            cols.append(xp[:, i:i + (OH - 1) * stride + 1:stride,
                            j:j + (OW - 1) * stride + 1:stride, :])
    patches = jnp.stack(cols, axis=3)                 # (B, OH, OW, kh*kw, C)
    return patches.reshape(B * OH * OW, kh * kw * C), (B, OH, OW)


def flatten_conv_weight(w):
    """PyTorch (Cout, Cin, KH, KW) -> (KH*KW*Cin, Cout), matching im2col order."""
    cout = w.shape[0]
    return jnp.transpose(w, (2, 3, 1, 0)).reshape(-1, cout)


def spectral_normalize(w, key, n_iter=10):
    """Mimics nn.utils.spectral_norm: divide by largest singular value of the
    weight viewed as (Cout, -1). Power iteration in plain JAX (param setup)."""
    w2 = w.reshape(w.shape[0], -1).astype(jnp.float32)
    u = jax.random.normal(key, (w2.shape[0],), jnp.float32)
    u = u / (jnp.linalg.norm(u) + 1e-12)
    v = None
    for _ in range(n_iter):
        v = w2.T @ u
        v = v / (jnp.linalg.norm(v) + 1e-12)
        u = w2 @ v
        u = u / (jnp.linalg.norm(u) + 1e-12)
    sigma = u @ (w2 @ v)
    return w / sigma


def conv_block(x_nhwc, w_sn, b, stride, slope=0.2):
    """ReflectionPad2d(1) + spectral_norm Conv2d(k=4) + LeakyReLU(0.2)."""
    xp = reflect_pad1(x_nhwc)
    kh, kw = w_sn.shape[2], w_sn.shape[3]
    cols, (B, OH, OW) = im2col(xp, kh, kw, stride)
    y = tiled_matmul(cols, flatten_conv_weight(w_sn), b,
                     activate=True, slope=slope, out_dtype=jnp.bfloat16)
    return y.reshape(B, OH, OW, w_sn.shape[0])


# ------------------------------ parameters --------------------------------- #

def init_params(key, input_nc, ndf, n_layers):
    keys = list(jax.random.split(key, 4 * (n_layers + 8)))
    kit = iter(keys)

    def conv_w(cout, cin, kh, kw):
        fan = cin * kh * kw
        return jax.random.normal(next(kit), (cout, cin, kh, kw),
                                 jnp.float32) / jnp.sqrt(float(fan))

    def bias(c):
        return 0.01 * jax.random.normal(next(kit), (c,), jnp.float32)

    params = {"model": []}
    # layer 0: input_nc -> ndf, stride 2
    c_in, c_out = input_nc, ndf
    w = conv_w(c_out, c_in, 4, 4)
    params["model"].append(
        {"w": spectral_normalize(w, next(kit)), "b": bias(c_out), "stride": 2})
    # layers 1 .. n_layers-3: stride 2
    for i in range(1, n_layers - 2):
        mult = 2 ** (i - 1)
        c_in, c_out = ndf * mult, ndf * mult * 2
        w = conv_w(c_out, c_in, 4, 4)
        params["model"].append(
            {"w": spectral_normalize(w, next(kit)), "b": bias(c_out), "stride": 2})
    # last trunk layer: stride 1
    mult = 2 ** (n_layers - 2 - 1)
    c_in, c_out = ndf * mult, ndf * mult * 2
    w = conv_w(c_out, c_in, 4, 4)
    params["model"].append(
        {"w": spectral_normalize(w, next(kit)), "b": bias(c_out), "stride": 1})

    mult = 2 ** (n_layers - 2)
    C = ndf * mult
    # gap_fc / gmp_fc: Linear(C, 1, bias=False) wrapped in spectral_norm.
    # NOTE: list(fc.parameters())[0] in PyTorch returns weight_orig (UNnormalized),
    # while the logit uses the spectral-normalized weight — keep both.
    gap_w_orig = jax.random.normal(next(kit), (1, C), jnp.float32) / jnp.sqrt(float(C))
    gmp_w_orig = jax.random.normal(next(kit), (1, C), jnp.float32) / jnp.sqrt(float(C))
    params["gap_w_orig"] = gap_w_orig
    params["gmp_w_orig"] = gmp_w_orig
    params["gap_w_sn"] = spectral_normalize(gap_w_orig, next(kit))
    params["gmp_w_sn"] = spectral_normalize(gmp_w_orig, next(kit))

    # conv1x1: Conv2d(2C, C, k=1, bias=True)  (NOT spectral-normed)
    params["conv1x1_w"] = conv_w(C, 2 * C, 1, 1)
    params["conv1x1_b"] = bias(C)

    # final conv: spectral_norm Conv2d(C, 1, k=4, bias=False)
    wf = conv_w(1, C, 4, 4)
    params["conv_w"] = spectral_normalize(wf, next(kit))
    return params


# ------------------------------- forward ----------------------------------- #

def discriminator_forward(params, x_nchw):
    x = jnp.transpose(x_nchw, (0, 2, 3, 1)).astype(jnp.bfloat16)   # NHWC, bf16

    # self.model(input)
    for layer in params["model"]:
        x = conv_block(x, layer["w"], layer["b"], layer["stride"])

    B, H, W, C = x.shape
    HW = H * W

    # global avg/max pooling + CAM logits + concat (one fused Pallas kernel)
    cam_logit = pool_and_logits(x.reshape(B, HW, C),
                                params["gap_w_sn"].reshape(C, 1),
                                params["gmp_w_sn"].reshape(C, 1))

    # Fold gap/gmp weight_orig channel scaling into the conv1x1 weight so the
    # 2C-wide xcat tensor is never materialized:
    #   cat([x*g_gap, x*g_gmp]) @ W1 == x @ (diag(g_gap) W1_top + diag(g_gmp) W1_bot)
    w1 = flatten_conv_weight(params["conv1x1_w"])                  # (2C, C)
    w_comb = (params["gap_w_orig"].reshape(C, 1) * w1[:C]
              + params["gmp_w_orig"].reshape(C, 1) * w1[C:])       # (C, C)

    # conv1x1 + LeakyReLU + heatmap (fused, tiled Pallas kernel)
    y, hm = cam_conv1x1(x.reshape(B * HW, C), w_comb, params["conv1x1_b"])
    x2 = y.reshape(B, H, W, C)
    heatmap = jnp.transpose(hm.reshape(B, H, W, 1), (0, 3, 1, 2))  # (B,1,H,W)

    # ReflectionPad2d(1) + spectral_norm Conv2d(C, 1, k=4, bias=False)
    xp = reflect_pad1(x2)
    cols, (_, OH, OW) = im2col(xp, 4, 4, 1)
    out = tiled_matmul(cols, flatten_conv_weight(params["conv_w"]),
                       None, activate=False, out_dtype=jnp.float32)
    out = jnp.transpose(out.reshape(B, OH, OW, 1), (0, 3, 1, 2))   # (B,1,OH,OW)

    return out, cam_logit, heatmap


# --------------------------------- main ------------------------------------ #

if __name__ == "__main__":
    # Small shapes consistent with the module: n_layers=5 (default architecture)
    # requires spatial >= 32 for the final k=4 conv; ndf=8 keeps it tiny.
    B, input_nc, Hin, Win = 2, 4, 32, 32
    ndf, n_layers = 8, 5

    key = jax.random.PRNGKey(0)
    kp, kx = jax.random.split(key)
    params = init_params(kp, input_nc, ndf, n_layers)
    x = jax.random.normal(kx, (B, input_nc, Hin, Win), jnp.float32)

    fwd = jax.jit(functools.partial(discriminator_forward, params))
    out, cam_logit, heatmap = fwd(x)
    jax.block_until_ready((out, cam_logit, heatmap))

    assert out.shape == (B, 1, 2, 2)
    assert cam_logit.shape == (B, 2)
    assert heatmap.shape == (B, 1, 3, 3)
    print("KERNEL_OK")
</pallas_src>

<mosaic_0001>
module attributes {stable_mosaic.version = 11 : i64} {
  func.func @_matmul_kernel(%arg0: i32, %arg1: i32, %arg2: i32, %arg3: memref<256x128xbf16, #tpu.memory_space<vmem>>, %arg4: memref<128x128xbf16, #tpu.memory_space<vmem>>, %arg5: memref<1x128xf32, #tpu.memory_space<vmem>>, %arg6: memref<256x128xbf16, #tpu.memory_space<vmem>>, %arg7: memref<256x128xf32, #tpu.memory_space<vmem>>) attributes {dimension_semantics = [#tpu.dimension_semantics<parallel>, #tpu.dimension_semantics<parallel>, #tpu.dimension_semantics<arbitrary>], iteration_bounds = array<i64: 2, 1, 1>, scalar_prefetch = 0 : i64, scratch_operands = 1 : i64, tpu.core_type = #tpu.core_type<tc>, window_params = [{transform_indices = @transform_0, window_bounds = array<i64: 256, 128>}, {transform_indices = @transform_1, window_bounds = array<i64: 128, 128>}, {transform_indices = @transform_2, window_bounds = array<i64: 1, 128>}, {transform_indices = @transform_3, window_bounds = array<i64: 256, 128>}]} {
    %c0_i32 = arith.constant 0 : i32
    %0 = arith.cmpi eq, %arg2, %c0_i32 : i32
    %1 = arith.extui %0 : i1 to i32
    %c0_i32_0 = arith.constant 0 : i32
    %2 = arith.cmpi ne, %1, %c0_i32_0 : i32
    scf.if %2 {
      %cst_10 = arith.constant 0.000000e+00 : f32
      %12 = vector.broadcast %cst_10 : f32 to vector<256x128xf32>
      %c0_11 = arith.constant 0 : index
      %c0_12 = arith.constant 0 : index
      %13 = vector.load %arg7[%c0_11, %c0_12] : memref<256x128xf32, #tpu.memory_space<vmem>>, vector<256x128xf32>
      tpu.vector_store %arg7[%c0_11, %c0_12], %12 {strides = array<i32>} : memref<256x128xf32, #tpu.memory_space<vmem>>, vector<256x128xf32>,
    } else {
    }
    %c0 = arith.constant 0 : index
    %c0_1 = arith.constant 0 : index
    %3 = vector.load %arg7[%c0, %c0_1] : memref<256x128xf32, #tpu.memory_space<vmem>>, vector<256x128xf32>
    %c0_2 = arith.constant 0 : index
    %c0_3 = arith.constant 0 : index
    %4 = vector.load %arg3[%c0_2, %c0_3] : memref<256x128xbf16, #tpu.memory_space<vmem>>, vector<256x128xbf16>
    %c0_4 = arith.constant 0 : index
    %c0_5 = arith.constant 0 : index
    %5 = vector.load %arg4[%c0_4, %c0_5] : memref<128x128xbf16, #tpu.memory_space<vmem>>, vector<128x128xbf16>
    %cst = arith.constant dense<0.000000e+00> : vector<256x128xf32>
    %6 = tpu.matmul %4, %5, %cst {dimension_numbers = #tpu.dot_dimension_numbers<[1], [0], [0], [1], [0, 0, 1, 1], [], []>} : vector<256x128xbf16>, vector<128x128xbf16>, vector<256x128xf32> -> vector<256x128xf32>
    %7 = arith.addf %3, %6 : vector<256x128xf32>
    %c0_6 = arith.constant 0 : index
    %c0_7 = arith.constant 0 : index
    %8 = vector.load %arg7[%c0_6, %c0_7] : memref<256x128xf32, #tpu.memory_space<vmem>>, vector<256x128xf32>
    tpu.vector_store %arg7[%c0_6, %c0_7], %7 {strides = array<i32>} : memref<256x128xf32, #tpu.memory_space<vmem>>, vector<256x128xf32>,
    %c0_i32_8 = arith.constant 0 : i32
    %9 = arith.cmpi eq, %arg2, %c0_i32_8 : i32
    %10 = arith.extui %9 : i1 to i32
    %c0_i32_9 = arith.constant 0 : i32
    %11 = arith.cmpi ne, %10, %c0_i32_9 : i32
    scf.if %11 {
      %c0_10 = arith.constant 0 : index
      %c0_11 = arith.constant 0 : index
      %12 = vector.load %arg7[%c0_10, %c0_11] : memref<256x128xf32, #tpu.memory_space<vmem>>, vector<256x128xf32>
      %c0_12 = arith.constant 0 : index
      %c0_13 = arith.constant 0 : index
      %13 = vector.load %arg5[%c0_12, %c0_13] : memref<1x128xf32, #tpu.memory_space<vmem>>, vector<1x128xf32>
      %14 = vector.broadcast %13 : vector<1x128xf32> to vector<256x128xf32>
      %15 = arith.addf %12, %14 : vector<256x128xf32>
      %cst_14 = arith.constant 0.000000e+00 : f32
      %16 = vector.broadcast %cst_14 : f32 to vector<256x128xf32>
      %17 = arith.cmpf oge, %15, %16 : vector<256x128xf32>
      %cst_15 = arith.constant 2.000000e-01 : f32
      %18 = vector.broadcast %cst_15 : f32 to vector<256x128xf32>
      %19 = arith.mulf %18, %15 : vector<256x128xf32>
      %20 = arith.select %17, %15, %19 : vector<256x128xi1>, vector<256x128xf32>
      %21 = arith.truncf %20 : vector<256x128xf32> to vector<256x128xbf16>
      %c0_16 = arith.constant 0 : index
      %c0_17 = arith.constant 0 : index
      %22 = vector.load %arg6[%c0_16, %c0_17] : memref<256x128xbf16, #tpu.memory_space<vmem>>, vector<256x128xbf16>
      tpu.vector_store %arg6[%c0_16, %c0_17], %21 {strides = array<i32>} : memref<256x128xbf16, #tpu.memory_space<vmem>>, vector<256x128xbf16>,
    } else {
    }
    return
  }
  func.func @transform_0(%arg0: i32, %arg1: i32, %arg2: i32) -> (i32, i32) {
    %c0_i32 = arith.constant 0 : i32
    return %arg0, %arg2 : i32, i32
  }
  func.func @transform_1(%arg0: i32, %arg1: i32, %arg2: i32) -> (i32, i32) {
    %c0_i32 = arith.constant 0 : i32
    return %arg2, %arg1 : i32, i32
  }
  func.func @transform_2(%arg0: i32, %arg1: i32, %arg2: i32) -> (i32, i32) {
    %c0_i32 = arith.constant 0 : i32
    %c0_i32_0 = arith.constant 0 : i32
    return %c0_i32, %arg1 : i32, i32
  }
  func.func @transform_3(%arg0: i32, %arg1: i32, %arg2: i32) -> (i32, i32) {
    %c0_i32 = arith.constant 0 : i32
    return %arg0, %arg1 : i32, i32
  }
}

module attributes {stable_mosaic.version = 11 : i64} {
  func.func @_matmul_kernel(%arg0: i32, %arg1: i32, %arg2: i32, %arg3: memref<128x128xbf16, #tpu.memory_space<vmem>>, %arg4: memref<128x128xbf16, #tpu.memory_space<vmem>>, %arg5: memref<1x128xf32, #tpu.memory_space<vmem>>, %arg6: memref<128x128xbf16, #tpu.memory_space<vmem>>, %arg7: memref<128x128xf32, #tpu.memory_space<vmem>>) attributes {dimension_semantics = [#tpu.dimension_semantics<parallel>, #tpu.dimension_semantics<parallel>, #tpu.dimension_semantics<arbitrary>], iteration_bounds = array<i64: 1, 1, 1>, scalar_prefetch = 0 : i64, scratch_operands = 1 : i64, tpu.core_type = #tpu.core_type<tc>, window_params = [{transform_indices = @transform_0, window_bounds = array<i64: 128, 128>}, {transform_indices = @transform_1, window_bounds = array<i64: 128, 128>}, {transform_indices = @transform_2, window_bounds = array<i64: 1, 128>}, {transform_indices = @transform_3, window_bounds = array<i64: 128, 128>}]} {
    %c0_i32 = arith.constant 0 : i32
    %0 = arith.cmpi eq, %arg2, %c0_i32 : i32
    %1 = arith.extui %0 : i1 to i32
    %c0_i32_0 = arith.constant 0 : i32
    %2 = arith.cmpi ne, %1, %c0_i32_0 : i32
    scf.if %2 {
      %cst_10 = arith.constant 0.000000e+00 : f32
      %12 = vector.broadcast %cst_10 : f32 to vector<128x128xf32>
      %c0_11 = arith.constant 0 : index
      %c0_12 = arith.constant 0 : index
      %13 = vector.load %arg7[%c0_11, %c0_12] : memref<128x128xf32, #tpu.memory_space<vmem>>, vector<128x128xf32>
      tpu.vector_store %arg7[%c0_11, %c0_12], %12 {strides = array<i32>} : memref<128x128xf32, #tpu.memory_space<vmem>>, vector<128x128xf32>,
    } else {
    }
    %c0 = arith.constant 0 : index
    %c0_1 = arith.constant 0 : index
    %3 = vector.load %arg7[%c0, %c0_1] : memref<128x128xf32, #tpu.memory_space<vmem>>, vector<128x128xf32>
    %c0_2 = arith.constant 0 : index
    %c0_3 = arith.constant 0 : index
    %4 = vector.load %arg3[%c0_2, %c0_3] : memref<128x128xbf16, #tpu.memory_space<vmem>>, vector<128x128xbf16>
    %c0_4 = arith.constant 0 : index
    %c0_5 = arith.constant 0 : index
    %5 = vector.load %arg4[%c0_4, %c0_5] : memref<128x128xbf16, #tpu.memory_space<vmem>>, vector<128x128xbf16>
    %cst = arith.constant dense<0.000000e+00> : vector<128x128xf32>
    %6 = tpu.matmul %4, %5, %cst {dimension_numbers = #tpu.dot_dimension_numbers<[1], [0], [0], [1], [0, 0, 1, 1], [], []>} : vector<128x128xbf16>, vector<128x128xbf16>, vector<128x128xf32> -> vector<128x128xf32>
    %7 = arith.addf %3, %6 : vector<128x128xf32>
    %c0_6 = arith.constant 0 : index
    %c0_7 = arith.constant 0 : index
    %8 = vector.load %arg7[%c0_6, %c0_7] : memref<128x128xf32, #tpu.memory_space<vmem>>, vector<128x128xf32>
    tpu.vector_store %arg7[%c0_6, %c0_7], %7 {strides = array<i32>} : memref<128x128xf32, #tpu.memory_space<vmem>>, vector<128x128xf32>,
    %c0_i32_8 = arith.constant 0 : i32
    %9 = arith.cmpi eq, %arg2, %c0_i32_8 : i32
    %10 = arith.extui %9 : i1 to i32
    %c0_i32_9 = arith.constant 0 : i32
    %11 = arith.cmpi ne, %10, %c0_i32_9 : i32
    scf.if %11 {
      %c0_10 = arith.constant 0 : index
      %c0_11 = arith.constant 0 : index
      %12 = vector.load %arg7[%c0_10, %c0_11] : memref<128x128xf32, #tpu.memory_space<vmem>>, vector<128x128xf32>
      %c0_12 = arith.constant 0 : index
      %c0_13 = arith.constant 0 : index
      %13 = vector.load %arg5[%c0_12, %c0_13] : memref<1x128xf32, #tpu.memory_space<vmem>>, vector<1x128xf32>
      %14 = vector.broadcast %13 : vector<1x128xf32> to vector<128x128xf32>
      %15 = arith.addf %12, %14 : vector<128x128xf32>
      %cst_14 = arith.constant 0.000000e+00 : f32
      %16 = vector.broadcast %cst_14 : f32 to vector<128x128xf32>
      %17 = arith.cmpf oge, %15, %16 : vector<128x128xf32>
      %cst_15 = arith.constant 2.000000e-01 : f32
      %18 = vector.broadcast %cst_15 : f32 to vector<128x128xf32>
      %19 = arith.mulf %18, %15 : vector<128x128xf32>
      %20 = arith.select %17, %15, %19 : vector<128x128xi1>, vector<128x128xf32>
      %21 = arith.truncf %20 : vector<128x128xf32> to vector<128x128xbf16>
      %c0_16 = arith.constant 0 : index
      %c0_17 = arith.constant 0 : index
      %22 = vector.load %arg6[%c0_16, %c0_17] : memref<128x128xbf16, #tpu.memory_space<vmem>>, vector<128x128xbf16>
      tpu.vector_store %arg6[%c0_16, %c0_17], %21 {strides = array<i32>} : memref<128x128xbf16, #tpu.memory_space<vmem>>, vector<128x128xbf16>,
    } else {
    }
    return
  }
  func.func @transform_0(%arg0: i32, %arg1: i32, %arg2: i32) -> (i32, i32) {
    %c0_i32 = arith.constant 0 : i32
    return %arg0, %arg2 : i32, i32
  }
  func.func @transform_1(%arg0: i32, %arg1: i32, %arg2: i32) -> (i32, i32) {
    %c0_i32 = arith.constant 0 : i32
    return %arg2, %arg1 : i32, i32
  }
  func.func @transform_2(%arg0: i32, %arg1: i32, %arg2: i32) -> (i32, i32) {
    %c0_i32 = arith.constant 0 : i32
    %c0_i32_0 = arith.constant 0 : i32
    return %c0_i32, %arg1 : i32, i32
  }
  func.func @transform_3(%arg0: i32, %arg1: i32, %arg2: i32) -> (i32, i32) {
    %c0_i32 = arith.constant 0 : i32
    return %arg0, %arg1 : i32, i32
  }
}

module attributes {stable_mosaic.version = 11 : i64} {
  func.func @_matmul_kernel(%arg0: i32, %arg1: i32, %arg2: i32, %arg3: memref<128x256xbf16, #tpu.memory_space<vmem>>, %arg4: memref<256x128xbf16, #tpu.memory_space<vmem>>, %arg5: memref<1x128xf32, #tpu.memory_space<vmem>>, %arg6: memref<128x128xbf16, #tpu.memory_space<vmem>>, %arg7: memref<128x128xf32, #tpu.memory_space<vmem>>) attributes {dimension_semantics = [#tpu.dimension_semantics<parallel>, #tpu.dimension_semantics<parallel>, #tpu.dimension_semantics<arbitrary>], iteration_bounds = array<i64: 1, 1, 1>, scalar_prefetch = 0 : i64, scratch_operands = 1 : i64, tpu.core_type = #tpu.core_type<tc>, window_params = [{transform_indices = @transform_0, window_bounds = array<i64: 128, 256>}, {transform_indices = @transform_1, window_bounds = array<i64: 256, 128>}, {transform_indices = @transform_2, window_bounds = array<i64: 1, 128>}, {transform_indices = @transform_3, window_bounds = array<i64: 128, 128>}]} {
    %c0_i32 = arith.constant 0 : i32
    %0 = arith.cmpi eq, %arg2, %c0_i32 : i32
    %1 = arith.extui %0 : i1 to i32
    %c0_i32_0 = arith.constant 0 : i32
    %2 = arith.cmpi ne, %1, %c0_i32_0 : i32
    scf.if %2 {
      %cst_10 = arith.constant 0.000000e+00 : f32
      %12 = vector.broadcast %cst_10 : f32 to vector<128x128xf32>
      %c0_11 = arith.constant 0 : index
      %c0_12 = arith.constant 0 : index
      %13 = vector.load %arg7[%c0_11, %c0_12] : memref<128x128xf32, #tpu.memory_space<vmem>>, vector<128x128xf32>
      tpu.vector_store %arg7[%c0_11, %c0_12], %12 {strides = array<i32>} : memref<128x128xf32, #tpu.memory_space<vmem>>, vector<128x128xf32>,
    } else {
    }
    %c0 = arith.constant 0 : index
    %c0_1 = arith.constant 0 : index
    %3 = vector.load %arg7[%c0, %c0_1] : memref<128x128xf32, #tpu.memory_space<vmem>>, vector<128x128xf32>
    %c0_2 = arith.constant 0 : index
    %c0_3 = arith.constant 0 : index
    %4 = vector.load %arg3[%c0_2, %c0_3] : memref<128x256xbf16, #tpu.memory_space<vmem>>, vector<128x256xbf16>
    %c0_4 = arith.constant 0 : index
    %c0_5 = arith.constant 0 : index
    %5 = vector.load %arg4[%c0_4, %c0_5] : memref<256x128xbf16, #tpu.memory_space<vmem>>, vector<256x128xbf16>
    %cst = arith.constant dense<0.000000e+00> : vector<128x128xf32>
    %6 = tpu.matmul %4, %5, %cst {dimension_numbers = #tpu.dot_dimension_numbers<[1], [0], [0], [1], [0, 0, 1, 1], [], []>} : vector<128x256xbf16>, vector<256x128xbf16>, vector<128x128xf32> -> vector<128x128xf32>
    %7 = arith.addf %3, %6 : vector<128x128xf32>
    %c0_6 = arith.constant 0 : index
    %c0_7 = arith.constant 0 : index
    %8 = vector.load %arg7[%c0_6, %c0_7] : memref<128x128xf32, #tpu.memory_space<vmem>>, vector<128x128xf32>
    tpu.vector_store %arg7[%c0_6, %c0_7], %7 {strides = array<i32>} : memref<128x128xf32, #tpu.memory_space<vmem>>, vector<128x128xf32>,
    %c0_i32_8 = arith.constant 0 : i32
    %9 = arith.cmpi eq, %arg2, %c0_i32_8 : i32
    %10 = arith.extui %9 : i1 to i32
    %c0_i32_9 = arith.constant 0 : i32
    %11 = arith.cmpi ne, %10, %c0_i32_9 : i32
    scf.if %11 {
      %c0_10 = arith.constant 0 : index
      %c0_11 = arith.constant 0 : index
      %12 = vector.load %arg7[%c0_10, %c0_11] : memref<128x128xf32, #tpu.memory_space<vmem>>, vector<128x128xf32>
      %c0_12 = arith.constant 0 : index
      %c0_13 = arith.constant 0 : index
      %13 = vector.load %arg5[%c0_12, %c0_13] : memref<1x128xf32, #tpu.memory_space<vmem>>, vector<1x128xf32>
      %14 = vector.broadcast %13 : vector<1x128xf32> to vector<128x128xf32>
      %15 = arith.addf %12, %14 : vector<128x128xf32>
      %cst_14 = arith.constant 0.000000e+00 : f32
      %16 = vector.broadcast %cst_14 : f32 to vector<128x128xf32>
      %17 = arith.cmpf oge, %15, %16 : vector<128x128xf32>
      %cst_15 = arith.constant 2.000000e-01 : f32
      %18 = vector.broadcast %cst_15 : f32 to vector<128x128xf32>
      %19 = arith.mulf %18, %15 : vector<128x128xf32>
      %20 = arith.select %17, %15, %19 : vector<128x128xi1>, vector<128x128xf32>
      %21 = arith.truncf %20 : vector<128x128xf32> to vector<128x128xbf16>
      %c0_16 = arith.constant 0 : index
      %c0_17 = arith.constant 0 : index
      %22 = vector.load %arg6[%c0_16, %c0_17] : memref<128x128xbf16, #tpu.memory_space<vmem>>, vector<128x128xbf16>
      tpu.vector_store %arg6[%c0_16, %c0_17], %21 {strides = array<i32>} : memref<128x128xbf16, #tpu.memory_space<vmem>>, vector<128x128xbf16>,
    } else {
    }
    return
  }
  func.func @transform_0(%arg0: i32, %arg1: i32, %arg2: i32) -> (i32, i32) {
    %c0_i32 = arith.constant 0 : i32
    return %arg0, %arg2 : i32, i32
  }
  func.func @transform_1(%arg0: i32, %arg1: i32, %arg2: i32) -> (i32, i32) {
    %c0_i32 = arith.constant 0 : i32
    return %arg2, %arg1 : i32, i32
  }
  func.func @transform_2(%arg0: i32, %arg1: i32, %arg2: i32) -> (i32, i32) {
    %c0_i32 = arith.constant 0 : i32
    %c0_i32_0 = arith.constant 0 : i32
    return %c0_i32, %arg1 : i32, i32
  }
  func.func @transform_3(%arg0: i32, %arg1: i32, %arg2: i32) -> (i32, i32) {
    %c0_i32 = arith.constant 0 : i32
    return %arg0, %arg1 : i32, i32
  }
}

module attributes {stable_mosaic.version = 11 : i64} {
  func.func @_matmul_kernel(%arg0: i32, %arg1: i32, %arg2: i32, %arg3: memref<128x512xbf16, #tpu.memory_space<vmem>>, %arg4: memref<512x128xbf16, #tpu.memory_space<vmem>>, %arg5: memref<1x128xf32, #tpu.memory_space<vmem>>, %arg6: memref<128x128xbf16, #tpu.memory_space<vmem>>, %arg7: memref<128x128xf32, #tpu.memory_space<vmem>>) attributes {dimension_semantics = [#tpu.dimension_semantics<parallel>, #tpu.dimension_semantics<parallel>, #tpu.dimension_semantics<arbitrary>], iteration_bounds = array<i64: 1, 1, 1>, scalar_prefetch = 0 : i64, scratch_operands = 1 : i64, tpu.core_type = #tpu.core_type<tc>, window_params = [{transform_indices = @transform_0, window_bounds = array<i64: 128, 512>}, {transform_indices = @transform_1, window_bounds = array<i64: 512, 128>}, {transform_indices = @transform_2, window_bounds = array<i64: 1, 128>}, {transform_indices = @transform_3, window_bounds = array<i64: 128, 128>}]} {
    %c0_i32 = arith.constant 0 : i32
    %0 = arith.cmpi eq, %arg2, %c0_i32 : i32
    %1 = arith.extui %0 : i1 to i32
    %c0_i32_0 = arith.constant 0 : i32
    %2 = arith.cmpi ne, %1, %c0_i32_0 : i32
    scf.if %2 {
      %cst_10 = arith.constant 0.000000e+00 : f32
      %12 = vector.broadcast %cst_10 : f32 to vector<128x128xf32>
      %c0_11 = arith.constant 0 : index
      %c0_12 = arith.constant 0 : index
      %13 = vector.load %arg7[%c0_11, %c0_12] : memref<128x128xf32, #tpu.memory_space<vmem>>, vector<128x128xf32>
      tpu.vector_store %arg7[%c0_11, %c0_12], %12 {strides = array<i32>} : memref<128x128xf32, #tpu.memory_space<vmem>>, vector<128x128xf32>,
    } else {
    }
    %c0 = arith.constant 0 : index
    %c0_1 = arith.constant 0 : index
    %3 = vector.load %arg7[%c0, %c0_1] : memref<128x128xf32, #tpu.memory_space<vmem>>, vector<128x128xf32>
    %c0_2 = arith.constant 0 : index
    %c0_3 = arith.constant 0 : index
    %4 = vector.load %arg3[%c0_2, %c0_3] : memref<128x512xbf16, #tpu.memory_space<vmem>>, vector<128x512xbf16>
    %c0_4 = arith.constant 0 : index
    %c0_5 = arith.constant 0 : index
    %5 = vector.load %arg4[%c0_4, %c0_5] : memref<512x128xbf16, #tpu.memory_space<vmem>>, vector<512x128xbf16>
    %cst = arith.constant dense<0.000000e+00> : vector<128x128xf32>
    %6 = tpu.matmul %4, %5, %cst {dimension_numbers = #tpu.dot_dimension_numbers<[1], [0], [0], [1], [0, 0, 1, 1], [], []>} : vector<128x512xbf16>, vector<512x128xbf16>, vector<128x128xf32> -> vector<128x128xf32>
    %7 = arith.addf %3, %6 : vector<128x128xf32>
    %c0_6 = arith.constant 0 : index
    %c0_7 = arith.constant 0 : index
    %8 = vector.load %arg7[%c0_6, %c0_7] : memref<128x128xf32, #tpu.memory_space<vmem>>, vector<128x128xf32>
    tpu.vector_store %arg7[%c0_6, %c0_7], %7 {strides = array<i32>} : memref<128x128xf32, #tpu.memory_space<vmem>>, vector<128x128xf32>,
    %c0_i32_8 = arith.constant 0 : i32
    %9 = arith.cmpi eq, %arg2, %c0_i32_8 : i32
    %10 = arith.extui %9 : i1 to i32
    %c0_i32_9 = arith.constant 0 : i32
    %11 = arith.cmpi ne, %10, %c0_i32_9 : i32
    scf.if %11 {
      %c0_10 = arith.constant 0 : index
      %c0_11 = arith.constant 0 : index
      %12 = vector.load %arg7[%c0_10, %c0_11] : memref<128x128xf32, #tpu.memory_space<vmem>>, vector<128x128xf32>
      %c0_12 = arith.constant 0 : index
      %c0_13 = arith.constant 0 : index
      %13 = vector.load %arg5[%c0_12, %c0_13] : memref<1x128xf32, #tpu.memory_space<vmem>>, vector<1x128xf32>
      %14 = vector.broadcast %13 : vector<1x128xf32> to vector<128x128xf32>
      %15 = arith.addf %12, %14 : vector<128x128xf32>
      %cst_14 = arith.constant 0.000000e+00 : f32
      %16 = vector.broadcast %cst_14 : f32 to vector<128x128xf32>
      %17 = arith.cmpf oge, %15, %16 : vector<128x128xf32>
      %cst_15 = arith.constant 2.000000e-01 : f32
      %18 = vector.broadcast %cst_15 : f32 to vector<128x128xf32>
      %19 = arith.mulf %18, %15 : vector<128x128xf32>
      %20 = arith.select %17, %15, %19 : vector<128x128xi1>, vector<128x128xf32>
      %21 = arith.truncf %20 : vector<128x128xf32> to vector<128x128xbf16>
      %c0_16 = arith.constant 0 : index
      %c0_17 = arith.constant 0 : index
      %22 = vector.load %arg6[%c0_16, %c0_17] : memref<128x128xbf16, #tpu.memory_space<vmem>>, vector<128x128xbf16>
      tpu.vector_store %arg6[%c0_16, %c0_17], %21 {strides = array<i32>} : memref<128x128xbf16, #tpu.memory_space<vmem>>, vector<128x128xbf16>,
    } else {
    }
    return
  }
  func.func @transform_0(%arg0: i32, %arg1: i32, %arg2: i32) -> (i32, i32) {
    %c0_i32 = arith.constant 0 : i32
    return %arg0, %arg2 : i32, i32
  }
  func.func @transform_1(%arg0: i32, %arg1: i32, %arg2: i32) -> (i32, i32) {
    %c0_i32 = arith.constant 0 : i32
    return %arg2, %arg1 : i32, i32
  }
  func.func @transform_2(%arg0: i32, %arg1: i32, %arg2: i32) -> (i32, i32) {
    %c0_i32 = arith.constant 0 : i32
    %c0_i32_0 = arith.constant 0 : i32
    return %c0_i32, %arg1 : i32, i32
  }
  func.func @transform_3(%arg0: i32, %arg1: i32, %arg2: i32) -> (i32, i32) {
    %c0_i32 = arith.constant 0 : i32
    return %arg0, %arg1 : i32, i32
  }
}

module attributes {stable_mosaic.version = 11 : i64} {
  func.func @_cam_kernel(%arg0: i32, %arg1: i32, %arg2: memref<128x128xbf16, #tpu.memory_space<vmem>>, %arg3: memref<128x128xbf16, #tpu.memory_space<vmem>>, %arg4: memref<1x128xf32, #tpu.memory_space<vmem>>, %arg5: memref<128x128xbf16, #tpu.memory_space<vmem>>, %arg6: memref<128x128xf32, #tpu.memory_space<vmem>>, %arg7: memref<128x128xf32, #tpu.memory_space<vmem>>) attributes {dimension_semantics = [#tpu.dimension_semantics<parallel>, #tpu.dimension_semantics<arbitrary>], iteration_bounds = array<i64: 1, 1>, scalar_prefetch = 0 : i64, scratch_operands = 1 : i64, tpu.core_type = #tpu.core_type<tc>, window_params = [{transform_indices = @transform_0, window_bounds = array<i64: 128, 128>}, {transform_indices = @transform_1, window_bounds = array<i64: 128, 128>}, {pipeline_mode = #tpu.pipeline_mode<synchronous>, transform_indices = @transform_2, window_bounds = array<i64: 1, 128>}, {transform_indices = @transform_3, window_bounds = array<i64: 128, 128>}, {transform_indices = @transform_4, window_bounds = array<i64: 128, 128>}]} {
    %c0_i32 = arith.constant 0 : i32
    %0 = arith.cmpi eq, %arg1, %c0_i32 : i32
    %1 = arith.extui %0 : i1 to i32
    %c0_i32_0 = arith.constant 0 : i32
    %2 = arith.cmpi ne, %1, %c0_i32_0 : i32
    scf.if %2 {
      %cst_10 = arith.constant 0.000000e+00 : f32
      %12 = vector.broadcast %cst_10 : f32 to vector<128x128xf32>
      %c0_11 = arith.constant 0 : index
      %c0_12 = arith.constant 0 : index
      %13 = vector.load %arg7[%c0_11, %c0_12] : memref<128x128xf32, #tpu.memory_space<vmem>>, vector<128x128xf32>
      tpu.vector_store %arg7[%c0_11, %c0_12], %12 {strides = array<i32>} : memref<128x128xf32, #tpu.memory_space<vmem>>, vector<128x128xf32>,
    } else {
    }
    %c0 = arith.constant 0 : index
    %c0_1 = arith.constant 0 : index
    %3 = vector.load %arg7[%c0, %c0_1] : memref<128x128xf32, #tpu.memory_space<vmem>>, vector<128x128xf32>
    %c0_2 = arith.constant 0 : index
    %c0_3 = arith.constant 0 : index
    %4 = vector.load %arg2[%c0_2, %c0_3] : memref<128x128xbf16, #tpu.memory_space<vmem>>, vector<128x128xbf16>
    %c0_4 = arith.constant 0 : index
    %c0_5 = arith.constant 0 : index
    %5 = vector.load %arg3[%c0_4, %c0_5] : memref<128x128xbf16, #tpu.memory_space<vmem>>, vector<128x128xbf16>
    %cst = arith.constant dense<0.000000e+00> : vector<128x128xf32>
    %6 = tpu.matmul %4, %5, %cst {dimension_numbers = #tpu.dot_dimension_numbers<[1], [0], [0], [1], [0, 0, 1, 1], [], []>} : vector<128x128xbf16>, vector<128x128xbf16>, vector<128x128xf32> -> vector<128x128xf32>
    %7 = arith.addf %3, %6 : vector<128x128xf32>
    %c0_6 = arith.constant 0 : index
    %c0_7 = arith.constant 0 : index
    %8 = vector.load %arg7[%c0_6, %c0_7] : memref<128x128xf32, #tpu.memory_space<vmem>>, vector<128x128xf32>
    tpu.vector_store %arg7[%c0_6, %c0_7], %7 {strides = array<i32>} : memref<128x128xf32, #tpu.memory_space<vmem>>, vector<128x128xf32>,
    %c0_i32_8 = arith.constant 0 : i32
    %9 = arith.cmpi eq, %arg1, %c0_i32_8 : i32
    %10 = arith.extui %9 : i1 to i32
    %c0_i32_9 = arith.constant 0 : i32
    %11 = arith.cmpi ne, %10, %c0_i32_9 : i32
    scf.if %11 {
      %c0_10 = arith.constant 0 : index
      %c0_11 = arith.constant 0 : index
      %12 = vector.load %arg7[%c0_10, %c0_11] : memref<128x128xf32, #tpu.memory_space<vmem>>, vector<128x128xf32>
      %c0_12 = arith.constant 0 : index
      %c0_13 = arith.constant 0 : index
      %13 = vector.load %arg4[%c0_12, %c0_13] : memref<1x128xf32, #tpu.memory_space<vmem>>, vector<1x128xf32>
      %14 = vector.broadcast %13 : vector<1x128xf32> to vector<128x128xf32>
      %15 = arith.addf %12, %14 : vector<128x128xf32>
      %cst_14 = arith.constant 0.000000e+00 : f32
      %16 = vector.broadcast %cst_14 : f32 to vector<128x128xf32>
      %17 = arith.cmpf oge, %15, %16 : vector<128x128xf32>
      %cst_15 = arith.constant 2.000000e-01 : f32
      %18 = vector.broadcast %cst_15 : f32 to vector<128x128xf32>
      %19 = arith.mulf %18, %15 : vector<128x128xf32>
      %20 = arith.select %17, %15, %19 : vector<128x128xi1>, vector<128x128xf32>
      %21 = arith.truncf %20 : vector<128x128xf32> to vector<128x128xbf16>
      %c0_16 = arith.constant 0 : index
      %c0_17 = arith.constant 0 : index
      %22 = vector.load %arg5[%c0_16, %c0_17] : memref<128x128xbf16, #tpu.memory_space<vmem>>, vector<128x128xbf16>
      tpu.vector_store %arg5[%c0_16, %c0_17], %21 {strides = array<i32>} : memref<128x128xbf16, #tpu.memory_space<vmem>>, vector<128x128xbf16>,
      %cst_18 = arith.constant dense<0.000000e+00> : vector<128xf32>
      %23 = vector.multi_reduction <add>, %20, %cst_18 [1] : vector<128x128xf32> to vector<128xf32>
      %24 = vector.shape_cast %23 : vector<128xf32> to vector<128x1xf32>
      %25 = vector.shape_cast %24 : vector<128x1xf32> to vector<128x1xf32>
      %26 = vector.broadcast %25 : vector<128x1xf32> to vector<128x128xf32>
      %c0_19 = arith.constant 0 : index
      %c0_20 = arith.constant 0 : index
      %27 = vector.load %arg6[%c0_19, %c0_20] : memref<128x128xf32, #tpu.memory_space<vmem>>, vector<128x128xf32>
      tpu.vector_store %arg6[%c0_19, %c0_20], %26 {strides = array<i32>} : memref<128x128xf32, #tpu.memory_space<vmem>>, vector<128x128xf32>,
    } else {
    }
    return
  }
  func.func @transform_0(%arg0: i32, %arg1: i32) -> (i32, i32) {
    %c0_i32 = arith.constant 0 : i32
    return %arg0, %arg1 : i32, i32
  }
  func.func @transform_1(%arg0: i32, %arg1: i32) -> (i32, i32) {
    %c0_i32 = arith.constant 0 : i32
    %c0_i32_0 = arith.constant 0 : i32
    return %arg1, %c0_i32 : i32, i32
  }
  func.func @transform_2(%arg0: i32, %arg1: i32) -> (i32, i32) {
    %c0_i32 = arith.constant 0 : i32
    %c0_i32_0 = arith.constant 0 : i32
    %c0_i32_1 = arith.constant 0 : i32
    return %c0_i32, %c0_i32_0 : i32, i32
  }
  func.func @transform_3(%arg0: i32, %arg1: i32) -> (i32, i32) {
    %c0_i32 = arith.constant 0 : i32
    %c0_i32_0 = arith.constant 0 : i32
    return %arg0, %c0_i32 : i32, i32
  }
  func.func @transform_4(%arg0: i32, %arg1: i32) -> (i32, i32) {
    %c0_i32 = arith.constant 0 : i32
    %c0_i32_0 = arith.constant 0 : i32
    return %arg0, %c0_i32 : i32, i32
  }
}

module attributes {stable_mosaic.version = 11 : i64} {
  func.func @_matmul_kernel(%arg0: i32, %arg1: i32, %arg2: i32, %arg3: memref<128x512xbf16, #tpu.memory_space<vmem>>, %arg4: memref<512x128xbf16, #tpu.memory_space<vmem>>, %arg5: memref<1x128xf32, #tpu.memory_space<vmem>>, %arg6: memref<128x128xf32, #tpu.memory_space<vmem>>, %arg7: memref<128x128xf32, #tpu.memory_space<vmem>>) attributes {dimension_semantics = [#tpu.dimension_semantics<parallel>, #tpu.dimension_semantics<parallel>, #tpu.dimension_semantics<arbitrary>], iteration_bounds = array<i64: 1, 1, 2>, scalar_prefetch = 0 : i64, scratch_operands = 1 : i64, tpu.core_type = #tpu.core_type<tc>, window_params = [{transform_indices = @transform_0, window_bounds = array<i64: 128, 512>}, {transform_indices = @transform_1, window_bounds = array<i64: 512, 128>}, {transform_indices = @transform_2, window_bounds = array<i64: 1, 128>}, {transform_indices = @transform_3, window_bounds = array<i64: 128, 128>}]} {
    %c0_i32 = arith.constant 0 : i32
    %0 = arith.cmpi eq, %arg2, %c0_i32 : i32
    %1 = arith.extui %0 : i1 to i32
    %c0_i32_0 = arith.constant 0 : i32
    %2 = arith.cmpi ne, %1, %c0_i32_0 : i32
    scf.if %2 {
      %cst_9 = arith.constant 0.000000e+00 : f32
      %12 = vector.broadcast %cst_9 : f32 to vector<128x128xf32>
      %c0_10 = arith.constant 0 : index
      %c0_11 = arith.constant 0 : index
      %13 = vector.load %arg7[%c0_10, %c0_11] : memref<128x128xf32, #tpu.memory_space<vmem>>, vector<128x128xf32>
      tpu.vector_store %arg7[%c0_10, %c0_11], %12 {strides = array<i32>} : memref<128x128xf32, #tpu.memory_space<vmem>>, vector<128x128xf32>,
    } else {
    }
    %c0 = arith.constant 0 : index
    %c0_1 = arith.constant 0 : index
    %3 = vector.load %arg7[%c0, %c0_1] : memref<128x128xf32, #tpu.memory_space<vmem>>, vector<128x128xf32>
    %c0_2 = arith.constant 0 : index
    %c0_3 = arith.constant 0 : index
    %4 = vector.load %arg3[%c0_2, %c0_3] : memref<128x512xbf16, #tpu.memory_space<vmem>>, vector<128x512xbf16>
    %c0_4 = arith.constant 0 : index
    %c0_5 = arith.constant 0 : index
    %5 = vector.load %arg4[%c0_4, %c0_5] : memref<512x128xbf16, #tpu.memory_space<vmem>>, vector<512x128xbf16>
    %cst = arith.constant dense<0.000000e+00> : vector<128x128xf32>
    %6 = tpu.matmul %4, %5, %cst {dimension_numbers = #tpu.dot_dimension_numbers<[1], [0], [0], [1], [0, 0, 1, 1], [], []>} : vector<128x512xbf16>, vector<512x128xbf16>, vector<128x128xf32> -> vector<128x128xf32>
    %7 = arith.addf %3, %6 : vector<128x128xf32>
    %c0_6 = arith.constant 0 : index
    %c0_7 = arith.constant 0 : index
    %8 = vector.load %arg7[%c0_6, %c0_7] : memref<128x128xf32, #tpu.memory_space<vmem>>, vector<128x128xf32>
    tpu.vector_store %arg7[%c0_6, %c0_7], %7 {strides = array<i32>} : memref<128x128xf32, #tpu.memory_space<vmem>>, vector<128x128xf32>,
    %c1_i32 = arith.constant 1 : i32
    %9 = arith.cmpi eq, %arg2, %c1_i32 : i32
    %10 = arith.extui %9 : i1 to i32
    %c0_i32_8 = arith.constant 0 : i32
    %11 = arith.cmpi ne, %10, %c0_i32_8 : i32
    scf.if %11 {
      %c0_9 = arith.constant 0 : index
      %c0_10 = arith.constant 0 : index
      %12 = vector.load %arg7[%c0_9, %c0_10] : memref<128x128xf32, #tpu.memory_space<vmem>>, vector<128x128xf32>
      %c0_11 = arith.constant 0 : index
      %c0_12 = arith.constant 0 : index
      %13 = vector.load %arg5[%c0_11, %c0_12] : memref<1x128xf32, #tpu.memory_space<vmem>>, vector<1x128xf32>
      %14 = vector.broadcast %13 : vector<1x128xf32> to vector<128x128xf32>
      %15 = arith.addf %12, %14 : vector<128x128xf32>
      %c0_13 = arith.constant 0 : index
      %c0_14 = arith.constant 0 : index
      %16 = vector.load %arg6[%c0_13, %c0_14] : memref<128x128xf32, #tpu.memory_space<vmem>>, vector<128x128xf32>
      tpu.vector_store %arg6[%c0_13, %c0_14], %15 {strides = array<i32>} : memref<128x128xf32, #tpu.memory_space<vmem>>, vector<128x128xf32>,
    } else {
    }
    return
  }
  func.func @transform_0(%arg0: i32, %arg1: i32, %arg2: i32) -> (i32, i32) {
    %c0_i32 = arith.constant 0 : i32
    return %arg0, %arg2 : i32, i32
  }
  func.func @transform_1(%arg0: i32, %arg1: i32, %arg2: i32) -> (i32, i32) {
    %c0_i32 = arith.constant 0 : i32
    return %arg2, %arg1 : i32, i32
  }
  func.func @transform_2(%arg0: i32, %arg1: i32, %arg2: i32) -> (i32, i32) {
    %c0_i32 = arith.constant 0 : i32
    %c0_i32_0 = arith.constant 0 : i32
    return %c0_i32, %arg1 : i32, i32
  }
  func.func @transform_3(%arg0: i32, %arg1: i32, %arg2: i32) -> (i32, i32) {
    %c0_i32 = arith.constant 0 : i32
    return %arg0, %arg1 : i32, i32
  }
}

module attributes {stable_mosaic.version = 11 : i64} {
  func.func @_pool_logit_kernel(%arg0: i32, %arg1: memref<2x9x64xbf16, #tpu.memory_space<vmem>>, %arg2: memref<64x1xf32, #tpu.memory_space<vmem>>, %arg3: memref<64x1xf32, #tpu.memory_space<vmem>>, %arg4: memref<2x2xf32, #tpu.memory_space<vmem>>) attributes {dimension_semantics = [#tpu.dimension_semantics<arbitrary>], iteration_bounds = array<i64: 1>, scalar_prefetch = 0 : i64, scratch_operands = 0 : i64, tpu.core_type = #tpu.core_type<tc>, window_params = [{pipeline_mode = #tpu.pipeline_mode<synchronous>, transform_indices = @transform_0, window_bounds = array<i64: 2, 9, 64>}, {pipeline_mode = #tpu.pipeline_mode<synchronous>, transform_indices = @transform_1, window_bounds = array<i64: 64, 1>}, {pipeline_mode = #tpu.pipeline_mode<synchronous>, transform_indices = @transform_2, window_bounds = array<i64: 64, 1>}, {pipeline_mode = #tpu.pipeline_mode<synchronous>, transform_indices = @transform_3, window_bounds = array<i64: 2, 2>}]} {
    %c0 = arith.constant 0 : index
    %c0_0 = arith.constant 0 : index
    %c0_1 = arith.constant 0 : index
    %0 = vector.load %arg1[%c0, %c0_0, %c0_1] : memref<2x9x64xbf16, #tpu.memory_space<vmem>>, vector<2x9x64xbf16>
    %1 = arith.extf %0 : vector<2x9x64xbf16> to vector<2x9x64xf32>
    %cst = arith.constant dense<0.000000e+00> : vector<2x64xf32>
    %2 = vector.multi_reduction <add>, %1, %cst [1] : vector<2x9x64xf32> to vector<2x64xf32>
    %cst_2 = arith.constant 9.000000e+00 : f32
    %3 = vector.broadcast %cst_2 : f32 to vector<2x64xf32>
    %4 = arith.divf %2, %3 : vector<2x64xf32>
    %cst_3 = arith.constant dense<0xFF800000> : vector<2x64xf32>
    %5 = vector.multi_reduction <maximumf>, %1, %cst_3 [1] : vector<2x9x64xf32> to vector<2x64xf32>
    %c0_4 = arith.constant 0 : index
    %c0_5 = arith.constant 0 : index
    %6 = vector.load %arg2[%c0_4, %c0_5] : memref<64x1xf32, #tpu.memory_space<vmem>>, vector<64x1xf32>
    %cst_6 = arith.constant dense<0.000000e+00> : vector<2x1xf32>
    %7 = tpu.matmul %4, %6, %cst_6 {dimension_numbers = #tpu.dot_dimension_numbers<[1], [0], [0], [1], [0, 0, 1, 1], [], []>} : vector<2x64xf32>, vector<64x1xf32>, vector<2x1xf32> -> vector<2x1xf32>
    %c0_7 = arith.constant 0 : index
    %c0_8 = arith.constant 0 : index
    %8 = vector.load %arg4[%c0_7, %c0_8] : memref<2x2xf32, #tpu.memory_space<vmem>>, vector<2x1xf32>
    tpu.vector_store %arg4[%c0_7, %c0_8], %7 {strides = array<i32>} : memref<2x2xf32, #tpu.memory_space<vmem>>, vector<2x1xf32>,
    %c0_9 = arith.constant 0 : index
    %c0_10 = arith.constant 0 : index
    %9 = vector.load %arg3[%c0_9, %c0_10] : memref<64x1xf32, #tpu.memory_space<vmem>>, vector<64x1xf32>
    %cst_11 = arith.constant dense<0.000000e+00> : vector<2x1xf32>
    %10 = tpu.matmul %5, %9, %cst_11 {dimension_numbers = #tpu.dot_dimension_numbers<[1], [0], [0], [1], [0, 0, 1, 1], [], []>} : vector<2x64xf32>, vector<64x1xf32>, vector<2x1xf32> -> vector<2x1xf32>
    %c0_12 = arith.constant 0 : index
    %c1 = arith.constant 1 : index
    %11 = vector.load %arg4[%c0_12, %c1] : memref<2x2xf32, #tpu.memory_space<vmem>>, vector<2x1xf32>
    tpu.vector_store %arg4[%c0_12, %c1], %10 {strides = array<i32>} : memref<2x2xf32, #tpu.memory_space<vmem>>, vector<2x1xf32>,
    return
  }
  func.func @transform_0(%arg0: i32) -> (i32, i32, i32) {
    %c0_i32 = arith.constant 0 : i32
    %c0_i32_0 = arith.constant 0 : i32
    %c0_i32_1 = arith.constant 0 : i32
    %c0_i32_2 = arith.constant 0 : i32
    return %c0_i32, %c0_i32_0, %c0_i32_1 : i32, i32, i32
  }
  func.func @transform_1(%arg0: i32) -> (i32, i32) {
    %c0_i32 = arith.constant 0 : i32
    %c0_i32_0 = arith.constant 0 : i32
    %c0_i32_1 = arith.constant 0 : i32
    return %c0_i32, %c0_i32_0 : i32, i32
  }
  func.func @transform_2(%arg0: i32) -> (i32, i32) {
    %c0_i32 = arith.constant 0 : i32
    %c0_i32_0 = arith.constant 0 : i32
    %c0_i32_1 = arith.constant 0 : i32
    return %c0_i32, %c0_i32_0 : i32, i32
  }
  func.func @transform_3(%arg0: i32) -> (i32, i32) {
    %c0_i32 = arith.constant 0 : i32
    %c0_i32_0 = arith.constant 0 : i32
    %c0_i32_1 = arith.constant 0 : i32
    return %c0_i32, %c0_i32_0 : i32, i32
  }
}

</mosaic_0001>

<bundles_post_ra>
// kernel: discriminator_forward.7
= control target key start
LH: loop header
LB: loop body
LE: loop exit
PB: predicated region body
PF: predicated region fallthrough
CT: control target
= control target key end

     0   :  { %s1563_s12 = smov 0   ;;  %s1565_s13 = smov 0   ;;  %s1704_s0 = inlined_call_operand.vmem [shape: bf16[512,128], index: 0, kind: input, shape index: {}]   ;;  %s1705_s1 = inlined_call_operand.vmem [shape: bf16[128,128], index: 1, kind: input, shape index: {}]   ;;  %s1706_s2 = inlined_call_operand.vmem [shape: f32[1,128], index: 2, kind: input, shape index: {}]   ;;  %s1707_s3 = inlined_call_operand.vmem [shape: bf16[512,128], index: 3, kind: output, shape index: {}]  }
   0x1   :  { %s1567_s14 = smov 0  }
   0x2 LB: > { %s32_s15 = sadd.s32 1, %s1537_s13  ;;  %p1192_p0 = scmp.ge.s32.totalorder %s1541_s14, 1  ;;  %s1541_s14 = sphi %s1567_s14, %s13_s14   ;;  %s1537_s13 = sphi %s1565_s13, %s1709_s13   ;;  %s1533_s12 = sphi %s1563_s12, %s1708_s12  }
   0x3   : > { %p34_p1 = scmp.ge.s32.totalorder %s32_s15, 2  ;;  %p188_p2 = scmp.lt.s32.totalorder %s1541_s14, 3 }
   0x5   : > { %s1711_s15 = smov (%p34_p1, %s32_s15), 0  ;;  %p189_p3 = pnand %p1192_p0, %p188_p2 }
   0x6   : > { %s1193_s18 = sshll.u32 (!%p189_p3), %s1533_s12, 5 }
   0x7   : > { %192 = sbr.rel (%p189_p3) target bundleno = 280 (0x118), region = 32  ;;  %p230_p4 = scmp.lt.s32.totalorder (!%p189_p3), %s1193_s18, 63 }
   0xc   : > { %v1495_v0 = vld [vmem:[%s1705_s1 + $0x38] sm:$0xff]   ;;  %v1496_v1 = vld [vmem:[%s1705_s1 + $0x30] sm:$0xff]   ;;  %s1713_s18 = smov (!%p230_p4, %s1193_s18), 63  ;;  %v1497_v2 = vld [vmem:[%s1705_s1 + $0x28] sm:$0xff]  }
   0xd   : > { %1407 = vmatprep.subr.bf16.mxu0 %v1495_v0  ;;  %1455 = vmatprep.subr.bf16.mxu1 %v1495_v0  ;;  %s1194_s23 = sshll.u32 %s1713_s18, 2  ;;  %v1498_v3 = vld [vmem:[%s1705_s1 + $0x20] sm:$0xff]   ;;  %v1499_v6 = vld [vmem:[%s1705_s1 + $0x18] sm:$0xff]   ;;  %v1500_v7 = vld [vmem:[%s1705_s1 + $0x10] sm:$0xff]  }
   0xe   : > { %1408 = vmatpush3.bf16.msra.mxu0 %v1495_v0  ;;  %1463 = vmatpush3.bf16.msra.mxu1 %v1495_v0  ;;  %s1598_s26 = scalar_lea.vmem %s1704_s0, %s1194_s23  ;;  %v1501_v8 = vld [vmem:[%s1705_s1 + $0x8] sm:$0xff]   ;;  %v1502_v9 = vld [vmem:[%s1705_s1] sm:$0xff]   ;;  %s1649_s17 = scalar_lea.vmem %s1707_s3, %s1194_s23 }
   0xf   : > { %1409 = vmatprep.subr.bf16.mxu0 %v1496_v1  ;;  %1456 = vmatprep.subr.bf16.mxu1 %v1496_v1  ;;  %v1503_v4 = vld [vmem:[%s1598_s26] sm:$0xff]   ;;  %v1505_v10 = vld [vmem:[%s1598_s26 + $0x8] sm:$0xff]   ;;  %v1507_v12 = vld [vmem:[%s1598_s26 + $0x10] sm:$0xff]  }
  0x10   : > { %v1504_v5 = vld [vmem:[%s1598_s26 + $0x40] sm:$0xff]   ;;  %1423 = vmatprep.mubr.bf16.mxu0 %v1503_v4  ;;  %v1506_v11 = vld [vmem:[%s1598_s26 + $0x48] sm:$0xff]   ;;  %v1508_v13 = vld [vmem:[%s1598_s26 + $0x50] sm:$0xff]  }
  0x11   : > { %1439 = vmatprep.mubr.bf16.mxu1 %v1504_v5  ;;  %v1509_v14 = vld [vmem:[%s1598_s26 + $0x18] sm:$0xff]   ;;  %v1511_v16 = vld [vmem:[%s1598_s26 + $0x20] sm:$0xff]   ;;  %v1513_v18 = vld [vmem:[%s1598_s26 + $0x28] sm:$0xff]  }
  0x12   : > { %1410 = vmatpush3.bf16.msra.mxu0 %v1496_v1  ;;  %1464 = vmatpush3.bf16.msra.mxu1 %v1496_v1  ;;  %v1510_v15 = vld [vmem:[%s1598_s26 + $0x58] sm:$0xff]   ;;  %v1512_v17 = vld [vmem:[%s1598_s26 + $0x60] sm:$0xff]   ;;  %v1514_v19 = vld [vmem:[%s1598_s26 + $0x68] sm:$0xff]  }
  0x13   : > { %1411 = vmatprep.subr.bf16.mxu0 %v1497_v2  ;;  %1457 = vmatprep.subr.bf16.mxu1 %v1497_v2  ;;  %v1515_v20 = vld [vmem:[%s1598_s26 + $0x30] sm:$0xff]   ;;  %v1517_v22 = vld [vmem:[%s1598_s26 + $0x38] sm:$0xff]   ;;  %v1634_v24 = vld [vmem:[%s1706_s2] ss:$0 sm:$0xff] }
  0x14   : > { %v1516_v21 = vld [vmem:[%s1598_s26 + $0x70] sm:$0xff]   ;;  %v1518_v23 = vld [vmem:[%s1598_s26 + $0x78] sm:$0xff]  }
  0x16   : > { %1412 = vmatpush3.bf16.msra.mxu0 %v1497_v2  ;;  %1465 = vmatpush3.bf16.msra.mxu1 %v1497_v2 }
  0x17   : > { %1413 = vmatprep.subr.bf16.mxu0 %v1498_v3  ;;  %1458 = vmatprep.subr.bf16.mxu1 %v1498_v3 }
  0x1a   : > { %1414 = vmatpush3.bf16.msra.mxu0 %v1498_v3  ;;  %1466 = vmatpush3.bf16.msra.mxu1 %v1498_v3 }
  0x1b   : > { %1415 = vmatprep.subr.bf16.mxu0 %v1499_v6  ;;  %1459 = vmatprep.subr.bf16.mxu1 %v1499_v6 }
  0x1e   : > { %1416 = vmatpush3.bf16.msra.mxu0 %v1499_v6  ;;  %1467 = vmatpush3.bf16.msra.mxu1 %v1499_v6 }
  0x1f   : > { %1417 = vmatprep.subr.bf16.mxu0 %v1500_v7  ;;  %1460 = vmatprep.subr.bf16.mxu1 %v1500_v7 }
  0x22   : > { %1418 = vmatpush3.bf16.msra.mxu0 %v1500_v7  ;;  %1468 = vmatpush3.bf16.msra.mxu1 %v1500_v7 }
  0x23   : > { %1419 = vmatprep.subr.bf16.mxu0 %v1501_v8  ;;  %1461 = vmatprep.subr.bf16.mxu1 %v1501_v8 }
  0x26   : > { %1420 = vmatpush3.bf16.msra.mxu0 %v1501_v8  ;;  %1469 = vmatpush3.bf16.msra.mxu1 %v1501_v8 }
  0x27   : > { %1421 = vmatprep.subr.bf16.mxu0 %v1502_v9  ;;  %1462 = vmatprep.subr.bf16.mxu1 %v1502_v9 }
  0x2a   : > { %1422 = vmatpush3.bf16.msra.mxu0 %v1502_v9  ;;  %1470 = vmatpush3.bf16.msra.mxu1 %v1502_v9 }
  0x2d   : > { %1424 = vmatmul.mubr.bf16.vlgmr.msra.gmra.mxu0 %v1505_v10  ;;  %1440 = vmatmul.mubr.bf16.vlgmr.msra.gmra.mxu1 %v1506_v11 }
  0x2e   : > { %1427 = vmatprep.mubr.bf16.mxu0 %v1507_v12  ;;  %1443 = vmatprep.mubr.bf16.mxu1 %v1508_v13 }
  0x35   : > { %1428 = vmatmul.mubr.bf16.gmra.mxu0 %v1509_v14  ;;  %1444 = vmatmul.mubr.bf16.gmra.mxu1 %v1510_v15 }
  0x36   : > { %1431 = vmatprep.mubr.bf16.mxu0 %v1511_v16  ;;  %1447 = vmatprep.mubr.bf16.mxu1 %v1512_v17 }
  0x3d   : > { %1432 = vmatmul.mubr.bf16.gmra.mxu0 %v1513_v18  ;;  %1448 = vmatmul.mubr.bf16.gmra.mxu1 %v1514_v19 }
  0x3e   : > { %1435 = vmatprep.mubr.bf16.mxu0 %v1515_v20  ;;  %1451 = vmatprep.mubr.bf16.mxu1 %v1516_v21 }
  0x45   : > { %1436 = vmatmul.mubr.bf16.gmra.mxu0 %v1517_v22  ;;  %1452 = vmatmul.mubr.bf16.gmra.mxu1 %v1518_v23 }
  0xed   : > { %v1425_v25 = vpop.f32.mrf.mxu0  ;;  %v1441_v26 = vpop.f32.mrf.mxu1 }
  0xee   : > { %v789_v27 = vadd.f32 %v1425_v25, %v1634_v24  ;;  %v805_v28 = vadd.f32 %v1441_v26, %v1634_v24 }
  0xef   : > { %v554_v29 = vpop.f32.mrf.mxu0  ;;  %v618_v30 = vpop.f32.mrf.mxu1 }
  0xf0   : > { %vm821_vm0 = vcmp.ge.f32.partialorder %v789_v27, 0.0  ;;  %v853_v31 = vmul.f32 0.2, %v789_v27  ;;  %vm837_vm1 = vcmp.ge.f32.partialorder %v805_v28, 0.0  ;;  %v869_v32 = vmul.f32 0.2, %v805_v28 }
  0xf1   : > { %v787_v33 = vadd.f32 %v1634_v24, %v554_v29  ;;  %v803_v34 = vadd.f32 %v1634_v24, %v618_v30  ;;  %v1426_v35 = vpop.f32.mrf.mxu0  ;;  %v1442_v36 = vpop.f32.mrf.mxu1 }
  0xf2   : > { %v885_v37 = vsel %vm821_vm0, %v789_v27, %v853_v31  ;;  %v790_v38 = vadd.f32 %v1426_v35, %v1634_v24  ;;  %v806_v39 = vadd.f32 %v1442_v36, %v1634_v24  ;;  %v901_v40 = vsel %vm837_vm1, %v805_v28, %v869_v32 }
  0xf3   : > { %vm819_vm2 = vcmp.ge.f32.partialorder %v787_v33, 0.0  ;;  %v851_v41 = vmul.f32 0.2, %v787_v33  ;;  %vm835_vm3 = vcmp.ge.f32.partialorder %v803_v34, 0.0  ;;  %v557_v42 = vpop.f32.mrf.mxu0  ;;  %v621_v43 = vpop.f32.mrf.mxu1  ;;  %v867_v47 = vmul.f32 0.2, %v803_v34 }
  0xf4   : > { %vm822_vm4 = vcmp.ge.f32.partialorder %v790_v38, 0.0  ;;  %v854_v44 = vmul.f32 0.2, %v790_v38  ;;  %vm838_vm5 = vcmp.ge.f32.partialorder %v806_v39, 0.0  ;;  %v870_v45 = vmul.f32 0.2, %v806_v39 }
  0xf5   : > { %v883_v46 = vsel %vm819_vm2, %v787_v33, %v851_v41  ;;  %v788_v48 = vadd.f32 %v1634_v24, %v557_v42  ;;  %v804_v49 = vadd.f32 %v1634_v24, %v621_v43  ;;  %v1429_v50 = vpop.f32.mrf.mxu0  ;;  %v1445_v51 = vpop.f32.mrf.mxu1  ;;  %v899_v63 = vsel %vm835_vm3, %v803_v34, %v867_v47 }
  0xf6   : > { %v886_v52 = vsel %vm822_vm4, %v790_v38, %v854_v44  ;;  %v902_v53 = vsel %vm838_vm5, %v806_v39, %v870_v45  ;;  %v793_v54 = vadd.f32 %v1429_v50, %v1634_v24  ;;  %v809_v55 = vadd.f32 %v1445_v51, %v1634_v24 }
  0xf7   : > { %v1296_v56 = vpack.c.bf16 %v886_v52, %v885_v37  ;;  %v1336_v57 = vpack.c.bf16 %v902_v53, %v901_v40  ;;  %vm820_vm6 = vcmp.ge.f32.partialorder %v788_v48, 0.0  ;;  %v852_v58 = vmul.f32 0.2, %v788_v48  ;;  %v570_v59 = vpop.f32.mrf.mxu0  ;;  %v634_v60 = vpop.f32.mrf.mxu1 }
  0xf8   : > { %vm836_vm7 = vcmp.ge.f32.partialorder %v804_v49, 0.0  ;;  %v868_v61 = vmul.f32 0.2, %v804_v49  ;;  %vm825_vm8 = vcmp.ge.f32.partialorder %v793_v54, 0.0  ;;  %v857_v62 = vmul.f32 0.2, %v793_v54 }
  0xf9   : > { %1368 = vst [vmem:[%s1649_s17 + $0x8] sm:$0xff] %v1296_v56   ;;  %1376 = vst [vmem:[%s1649_s17 + $0x48] sm:$0xff] %v1336_v57   ;;  %v884_v0 = vsel %vm820_vm6, %v788_v48, %v852_v58  ;;  %v873_v1 = vmul.f32 0.2, %v809_v55  ;;  %v791_v2 = vadd.f32 %v1634_v24, %v570_v59  ;;  %v1430_v3 = vpop.f32.mrf.mxu0  ;;  %v1446_v4 = vpop.f32.mrf.mxu1  ;;  %vm841_vm9 = vcmp.ge.f32.partialorder %v809_v55, 0.0 }
  0xfa   : > { %v1291_v5 = vpack.c.bf16 %v884_v0, %v883_v46  ;;  %v900_v6 = vsel %vm836_vm7, %v804_v49, %v868_v61  ;;  %v807_v7 = vadd.f32 %v1634_v24, %v634_v60  ;;  %v889_v9 = vsel %vm825_vm8, %v793_v54, %v857_v62 }
  0xfb   : > { %v1331_v8 = vpack.c.bf16 %v900_v6, %v899_v63  ;;  %vm823_vm10 = vcmp.ge.f32.partialorder %v791_v2, 0.0  ;;  %v855_v10 = vmul.f32 0.2, %v791_v2  ;;  %v573_v11 = vpop.f32.mrf.mxu0  ;;  %v637_v12 = vpop.f32.mrf.mxu1  ;;  %v794_v14 = vadd.f32 %v1430_v3, %v1634_v24 }
  0xfc   : > { %1292 = vst [vmem:[%s1649_s17] sm:$0xff] %v1291_v5   ;;  %vm839_vm11 = vcmp.ge.f32.partialorder %v807_v7, 0.0  ;;  %v871_v13 = vmul.f32 0.2, %v807_v7  ;;  %v810_v15 = vadd.f32 %v1446_v4, %v1634_v24  ;;  %v905_v16 = vsel %vm841_vm9, %v809_v55, %v873_v1 }
  0xfd   : > { %1375 = vst [vmem:[%s1649_s17 + $0x40] sm:$0xff] %v1331_v8   ;;  %v887_v17 = vsel %vm823_vm10, %v791_v2, %v855_v10  ;;  %v792_v18 = vadd.f32 %v1634_v24, %v573_v11  ;;  %v808_v19 = vadd.f32 %v1634_v24, %v637_v12  ;;  %v1433_v20 = vpop.f32.mrf.mxu0  ;;  %v1449_v21 = vpop.f32.mrf.mxu1  ;;  %vm826_vm12 = vcmp.ge.f32.partialorder %v794_v14, 0.0 }
  0xfe   : > { %v903_v22 = vsel %vm839_vm11, %v807_v7, %v871_v13  ;;  %v858_v23 = vmul.f32 0.2, %v794_v14  ;;  %vm842_vm13 = vcmp.ge.f32.partialorder %v810_v15, 0.0  ;;  %v874_v25 = vmul.f32 0.2, %v810_v15 }
  0xff   : > { %vm824_vm14 = vcmp.ge.f32.partialorder %v792_v18, 0.0  ;;  %v856_v26 = vmul.f32 0.2, %v792_v18  ;;  %vm840_vm15 = vcmp.ge.f32.partialorder %v808_v19, 0.0  ;;  %v586_v27 = vpop.f32.mrf.mxu0  ;;  %v650_v28 = vpop.f32.mrf.mxu1  ;;  %v872_v30 = vmul.f32 0.2, %v808_v19 }
 0x100   : > { %v890_v29 = vsel %vm826_vm12, %v794_v14, %v858_v23  ;;  %v797_v31 = vadd.f32 %v1433_v20, %v1634_v24  ;;  %v813_v32 = vadd.f32 %v1449_v21, %v1634_v24  ;;  %v906_v34 = vsel %vm842_vm13, %v810_v15, %v874_v25 }
 0x101   : > { %v1306_v33 = vpack.c.bf16 %v890_v29, %v889_v9  ;;  %v888_v35 = vsel %vm824_vm14, %v792_v18, %v856_v26  ;;  %v795_v36 = vadd.f32 %v1634_v24, %v586_v27  ;;  %v1434_v37 = vpop.f32.mrf.mxu0  ;;  %v1450_v38 = vpop.f32.mrf.mxu1  ;;  %v1346_v39 = vpack.c.bf16 %v906_v34, %v905_v16 }
 0x102   : > { %v1301_v40 = vpack.c.bf16 %v888_v35, %v887_v17  ;;  %v904_v41 = vsel %vm840_vm15, %v808_v19, %v872_v30  ;;  %vm829_vm0 = vcmp.ge.f32.partialorder %v797_v31, 0.0  ;;  %v861_v43 = vmul.f32 0.2, %v797_v31 }
 0x103   : > { %1370 = vst [vmem:[%s1649_s17 + $0x18] sm:$0xff] %v1306_v33   ;;  %v1341_v42 = vpack.c.bf16 %v904_v41, %v903_v22  ;;  %vm845_vm1 = vcmp.ge.f32.partialorder %v813_v32, 0.0  ;;  %v877_v44 = vmul.f32 0.2, %v813_v32  ;;  %v589_v45 = vpop.f32.mrf.mxu0  ;;  %v653_v46 = vpop.f32.mrf.mxu1  ;;  %1378 = vst [vmem:[%s1649_s17 + $0x58] sm:$0xff] %v1346_v39   ;;  %vm827_vm2 = vcmp.ge.f32.partialorder %v795_v36, 0.0 }
 0x104   : > { %1369 = vst [vmem:[%s1649_s17 + $0x10] sm:$0xff] %v1301_v40   ;;  %v859_v47 = vmul.f32 0.2, %v795_v36  ;;  %v811_v48 = vadd.f32 %v1634_v24, %v650_v28  ;;  %v798_v49 = vadd.f32 %v1434_v37, %v1634_v24  ;;  %v893_v50 = vsel %vm829_vm0, %v797_v31, %v861_v43 }
 0x105   : > { %1377 = vst [vmem:[%s1649_s17 + $0x50] sm:$0xff] %v1341_v42   ;;  %v814_v51 = vadd.f32 %v1450_v38, %v1634_v24  ;;  %v796_v52 = vadd.f32 %v1634_v24, %v589_v45  ;;  %v1437_v53 = vpop.f32.mrf.mxu0  ;;  %v1453_v54 = vpop.f32.mrf.mxu1  ;;  %v909_v55 = vsel %vm845_vm1, %v813_v32, %v877_v44  ;;  %v812_v63 = vadd.f32 %v1634_v24, %v653_v46 }
 0x106   : > { %v891_v56 = vsel %vm827_vm2, %v795_v36, %v859_v47  ;;  %vm843_vm3 = vcmp.ge.f32.partialorder %v811_v48, 0.0  ;;  %vm830_vm4 = vcmp.ge.f32.partialorder %v798_v49, 0.0  ;;  %v862_v57 = vmul.f32 0.2, %v798_v49 }
 0x107   : > { %vm846_vm5 = vcmp.ge.f32.partialorder %v814_v51, 0.0  ;;  %v878_v58 = vmul.f32 0.2, %v814_v51  ;;  %vm828_vm6 = vcmp.ge.f32.partialorder %v796_v52, 0.0  ;;  %v602_v59 = vpop.f32.mrf.mxu0  ;;  %v666_v60 = vpop.f32.mrf.mxu1  ;;  %v875_v61 = vmul.f32 0.2, %v811_v48 }
 0x108   : > { %v860_v62 = vmul.f32 0.2, %v796_v52  ;;  %v801_v0 = vadd.f32 %v1437_v53, %v1634_v24  ;;  %v894_v1 = vsel %vm830_vm4, %v798_v49, %v862_v57  ;;  %v817_v3 = vadd.f32 %v1453_v54, %v1634_v24 }
 0x109   : > { %v910_v2 = vsel %vm846_vm5, %v814_v51, %v878_v58  ;;  %v799_v4 = vadd.f32 %v1634_v24, %v602_v59  ;;  %v1438_v5 = vpop.f32.mrf.mxu0  ;;  %v1454_v6 = vpop.f32.mrf.mxu1  ;;  %v1316_v7 = vpack.c.bf16 %v894_v1, %v893_v50  ;;  %vm844_vm7 = vcmp.ge.f32.partialorder %v812_v63, 0.0 }
 0x10a   : > { %v1356_v8 = vpack.c.bf16 %v910_v2, %v909_v55  ;;  %v892_v9 = vsel %vm828_vm6, %v796_v52, %v860_v62  ;;  %v876_v11 = vmul.f32 0.2, %v812_v63  ;;  %v865_v12 = vmul.f32 0.2, %v801_v0 }
 0x10b   : > { %v1311_v10 = vpack.c.bf16 %v892_v9, %v891_v56  ;;  %v907_v13 = vsel %vm843_vm3, %v811_v48, %v875_v61  ;;  %1372 = vst [vmem:[%s1649_s17 + $0x28] sm:$0xff] %v1316_v7   ;;  %vm833_vm8 = vcmp.ge.f32.partialorder %v801_v0, 0.0  ;;  %v881_v15 = vmul.f32 0.2, %v817_v3  ;;  %v605_v18 = vpop.f32.mrf.mxu0  ;;  %v669_v19 = vpop.f32.mrf.mxu1 }
 0x10c   : > { %1380 = vst [vmem:[%s1649_s17 + $0x68] sm:$0xff] %v1356_v8   ;;  %v908_v14 = vsel %vm844_vm7, %v812_v63, %v876_v11  ;;  %v815_v16 = vadd.f32 %v1634_v24, %v666_v60  ;;  %v802_v17 = vadd.f32 %v1438_v5, %v1634_v24  ;;  %vm849_vm9 = vcmp.ge.f32.partialorder %v817_v3, 0.0 }
 0x10d   : > { %1371 = vst [vmem:[%s1649_s17 + $0x20] sm:$0xff] %v1311_v10   ;;  %v1351_v20 = vpack.c.bf16 %v908_v14, %v907_v13  ;;  %vm831_vm10 = vcmp.ge.f32.partialorder %v799_v4, 0.0  ;;  %v818_v21 = vadd.f32 %v1454_v6, %v1634_v24  ;;  %v897_v22 = vsel %vm833_vm8, %v801_v0, %v865_v12 }
 0x10e   : > { %v863_v23 = vmul.f32 0.2, %v799_v4  ;;  %vm834_vm11 = vcmp.ge.f32.partialorder %v802_v17, 0.0  ;;  %v866_v25 = vmul.f32 0.2, %v802_v17  ;;  %v800_v27 = vadd.f32 %v1634_v24, %v605_v18 }
 0x10f   : > { %1379 = vst [vmem:[%s1649_s17 + $0x60] sm:$0xff] %v1351_v20   ;;  %vm850_vm12 = vcmp.ge.f32.partialorder %v818_v21, 0.0  ;;  %v882_v26 = vmul.f32 0.2, %v818_v21  ;;  %v816_v28 = vadd.f32 %v1634_v24, %v669_v19  ;;  %v913_v29 = vsel %vm849_vm9, %v817_v3, %v881_v15 }
 0x110   : > { %vm847_vm13 = vcmp.ge.f32.partialorder %v815_v16, 0.0  ;;  %v879_v30 = vmul.f32 0.2, %v815_v16  ;;  %v898_v31 = vsel %vm834_vm11, %v802_v17, %v866_v25  ;;  %vm832_vm14 = vcmp.ge.f32.partialorder %v800_v27, 0.0 }
 0x111   : > { %v1326_v32 = vpack.c.bf16 %v898_v31, %v897_v22  ;;  %v914_v33 = vsel %vm850_vm12, %v818_v21, %v882_v26  ;;  %v864_v34 = vmul.f32 0.2, %v800_v27  ;;  %vm848_vm15 = vcmp.ge.f32.partialorder %v816_v28, 0.0 }
 0x112   : > { %v1366_v35 = vpack.c.bf16 %v914_v33, %v913_v29  ;;  %v880_v36 = vmul.f32 0.2, %v816_v28  ;;  %v895_v37 = vsel %vm831_vm10, %v799_v4, %v863_v23  ;;  %v911_v39 = vsel %vm847_vm13, %v815_v16, %v879_v30 }
 0x113   : > { %1374 = vst [vmem:[%s1649_s17 + $0x38] sm:$0xff] %v1326_v32   ;;  %v896_v38 = vsel %vm832_vm14, %v800_v27, %v864_v34 }
 0x114   : > { %1382 = vst [vmem:[%s1649_s17 + $0x78] sm:$0xff] %v1366_v35   ;;  %v1321_v24 = vpack.c.bf16 %v896_v38, %v895_v37  ;;  %v912_v40 = vsel %vm848_vm15, %v816_v28, %v880_v36 }
 0x115   : > { %v1361_v41 = vpack.c.bf16 %v912_v40, %v911_v39 }
 0x116   : > { %1373 = vst [vmem:[%s1649_s17 + $0x30] sm:$0xff] %v1321_v24  }
 0x117   : > { %1381 = vst [vmem:[%s1649_s17 + $0x70] sm:$0xff] %v1361_v41  }
 0x118 PF: > { %s13_s14 = sadd.s32 1, %s1541_s14   ;;  %s1708_s12 = smov %s1537_s13 }
 0x119   : > { %p10_p5 = scmp.ge.s32.totalorder %s13_s14, 4   ;;  %s1709_s13 = smov %s1711_s15 }
 0x11b   :  { %12 = sbr.rel (!%p10_p5) target bundleno = 2 (0x2), region = 76 }

// kernel: discriminator_forward.8
= control target key start
LH: loop header
LB: loop body
LE: loop exit
PB: predicated region body
PF: predicated region fallthrough
CT: control target
= control target key end

     0   :  { %s777_s1 = inlined_call_operand.vmem [shape: bf16[128,128], index: 1, kind: input, shape index: {}]   ;;  %s778_s0 = inlined_call_operand.vmem [shape: bf16[128,128], index: 0, kind: input, shape index: {}]   ;;  %s779_s2 = inlined_call_operand.vmem [shape: f32[1,128], index: 2, kind: input, shape index: {}]   ;;  %s780_s3 = inlined_call_operand.vmem [shape: bf16[128,128], index: 3, kind: output, shape index: {}]  }
   0x1   :  { %v642_v0 = vld [vmem:[%s777_s1 + $0x38] sm:$0xff]   ;;  %v643_v1 = vld [vmem:[%s777_s1 + $0x30] sm:$0xff]   ;;  %v644_v2 = vld [vmem:[%s777_s1 + $0x28] sm:$0xff]  }
   0x2   :  { %594 = vmatprep.subr.bf16.mxu0 %v642_v0  ;;  %626 = vmatprep.subr.bf16.mxu1 %v642_v0  ;;  %v645_v3 = vld [vmem:[%s777_s1 + $0x20] sm:$0xff]   ;;  %v646_v6 = vld [vmem:[%s777_s1 + $0x18] sm:$0xff]   ;;  %v647_v7 = vld [vmem:[%s777_s1 + $0x10] sm:$0xff]  }
   0x3   :  { %595 = vmatpush3.bf16.msra.mxu0 %v642_v0  ;;  %634 = vmatpush3.bf16.msra.mxu1 %v642_v0  ;;  %v650_v4 = vld [vmem:[%s778_s0] sm:$0xff]   ;;  %v648_v8 = vld [vmem:[%s777_s1 + $0x8] sm:$0xff]   ;;  %v654_v12 = vld [vmem:[%s778_s0 + $0x10] sm:$0xff]  }
   0x4   :  { %596 = vmatprep.subr.bf16.mxu0 %v643_v1  ;;  %627 = vmatprep.subr.bf16.mxu1 %v643_v1  ;;  %v651_v5 = vld [vmem:[%s778_s0 + $0x20] sm:$0xff]   ;;  %v652_v10 = vld [vmem:[%s778_s0 + $0x8] sm:$0xff]   ;;  %v655_v13 = vld [vmem:[%s778_s0 + $0x30] sm:$0xff]  }
   0x5   :  { %610 = vmatprep.mubr.bf16.mxu0 %v650_v4  ;;  %618 = vmatprep.mubr.bf16.mxu1 %v651_v5  ;;  %v649_v9 = vld [vmem:[%s777_s1] sm:$0xff]   ;;  %v653_v11 = vld [vmem:[%s778_s0 + $0x28] sm:$0xff]   ;;  %v656_v14 = vld [vmem:[%s778_s0 + $0x18] sm:$0xff]  }
   0x6   :  { %v657_v15 = vld [vmem:[%s778_s0 + $0x38] sm:$0xff]   ;;  %v729_v16 = vld [vmem:[%s779_s2] ss:$0 sm:$0xff] }
   0x7   :  { %597 = vmatpush3.bf16.msra.mxu0 %v643_v1  ;;  %635 = vmatpush3.bf16.msra.mxu1 %v643_v1 }
   0x8   :  { %598 = vmatprep.subr.bf16.mxu0 %v644_v2  ;;  %628 = vmatprep.subr.bf16.mxu1 %v644_v2 }
   0xb   :  { %599 = vmatpush3.bf16.msra.mxu0 %v644_v2  ;;  %636 = vmatpush3.bf16.msra.mxu1 %v644_v2 }
   0xc   :  { %600 = vmatprep.subr.bf16.mxu0 %v645_v3  ;;  %629 = vmatprep.subr.bf16.mxu1 %v645_v3 }
   0xf   :  { %601 = vmatpush3.bf16.msra.mxu0 %v645_v3  ;;  %637 = vmatpush3.bf16.msra.mxu1 %v645_v3 }
  0x10   :  { %602 = vmatprep.subr.bf16.mxu0 %v646_v6  ;;  %630 = vmatprep.subr.bf16.mxu1 %v646_v6 }
  0x13   :  { %603 = vmatpush3.bf16.msra.mxu0 %v646_v6  ;;  %638 = vmatpush3.bf16.msra.mxu1 %v646_v6 }
  0x14   :  { %604 = vmatprep.subr.bf16.mxu0 %v647_v7  ;;  %631 = vmatprep.subr.bf16.mxu1 %v647_v7 }
  0x17   :  { %605 = vmatpush3.bf16.msra.mxu0 %v647_v7  ;;  %639 = vmatpush3.bf16.msra.mxu1 %v647_v7 }
  0x18   :  { %606 = vmatprep.subr.bf16.mxu0 %v648_v8  ;;  %632 = vmatprep.subr.bf16.mxu1 %v648_v8 }
  0x1b   :  { %607 = vmatpush3.bf16.msra.mxu0 %v648_v8  ;;  %640 = vmatpush3.bf16.msra.mxu1 %v648_v8 }
  0x1c   :  { %608 = vmatprep.subr.bf16.mxu0 %v649_v9  ;;  %633 = vmatprep.subr.bf16.mxu1 %v649_v9 }
  0x1f   :  { %609 = vmatpush3.bf16.msra.mxu0 %v649_v9  ;;  %641 = vmatpush3.bf16.msra.mxu1 %v649_v9 }
  0x22   :  { %611 = vmatmul.mubr.bf16.vlgmr.msra.gmra.mxu0 %v652_v10  ;;  %619 = vmatmul.mubr.bf16.vlgmr.msra.gmra.mxu1 %v653_v11 }
  0x23   :  { %614 = vmatprep.mubr.bf16.mxu0 %v654_v12  ;;  %622 = vmatprep.mubr.bf16.mxu1 %v655_v13 }
  0x2a   :  { %615 = vmatmul.mubr.bf16.gmra.mxu0 %v656_v14  ;;  %623 = vmatmul.mubr.bf16.gmra.mxu1 %v657_v15 }
  0xe2   :  { %v612_v17 = vpop.f32.mrf.mxu0  ;;  %v620_v18 = vpop.f32.mrf.mxu1 }
  0xe3   :  { %v336_v19 = vadd.f32 %v612_v17, %v729_v16  ;;  %v344_v20 = vadd.f32 %v620_v18, %v729_v16 }
  0xe4   :  { %v213_v21 = vpop.f32.mrf.mxu0  ;;  %v245_v22 = vpop.f32.mrf.mxu1 }
  0xe5   :  { %vm352_vm0 = vcmp.ge.f32.partialorder %v336_v19, 0.0  ;;  %v368_v23 = vmul.f32 0.2, %v336_v19  ;;  %vm360_vm1 = vcmp.ge.f32.partialorder %v344_v20, 0.0  ;;  %v376_v24 = vmul.f32 0.2, %v344_v20 }
  0xe6   :  { %v334_v25 = vadd.f32 %v729_v16, %v213_v21  ;;  %v342_v26 = vadd.f32 %v729_v16, %v245_v22  ;;  %v613_v27 = vpop.f32.mrf.mxu0  ;;  %v621_v28 = vpop.f32.mrf.mxu1 }
  0xe7   :  { %v337_v29 = vadd.f32 %v613_v27, %v729_v16  ;;  %v345_v30 = vadd.f32 %v621_v28, %v729_v16  ;;  %v384_v31 = vsel %vm352_vm0, %v336_v19, %v368_v23  ;;  %v392_v32 = vsel %vm360_vm1, %v344_v20, %v376_v24 }
  0xe8   :  { %vm350_vm2 = vcmp.ge.f32.partialorder %v334_v25, 0.0  ;;  %v366_v33 = vmul.f32 0.2, %v334_v25  ;;  %v216_v34 = vpop.f32.mrf.mxu0  ;;  %v248_v35 = vpop.f32.mrf.mxu1  ;;  %vm358_vm5 = vcmp.ge.f32.partialorder %v342_v26, 0.0  ;;  %v374_v38 = vmul.f32 0.2, %v342_v26 }
  0xe9   :  { %vm353_vm3 = vcmp.ge.f32.partialorder %v337_v29, 0.0  ;;  %v369_v36 = vmul.f32 0.2, %v337_v29  ;;  %vm361_vm4 = vcmp.ge.f32.partialorder %v345_v30, 0.0  ;;  %v377_v37 = vmul.f32 0.2, %v345_v30 }
  0xea   :  { %v335_v39 = vadd.f32 %v729_v16, %v216_v34  ;;  %v343_v40 = vadd.f32 %v729_v16, %v248_v35  ;;  %v616_v41 = vpop.f32.mrf.mxu0  ;;  %v624_v42 = vpop.f32.mrf.mxu1  ;;  %v382_v53 = vsel %vm350_vm2, %v334_v25, %v366_v33  ;;  %v390_v58 = vsel %vm358_vm5, %v342_v26, %v374_v38 }
  0xeb   :  { %v385_v43 = vsel %vm353_vm3, %v337_v29, %v369_v36  ;;  %v393_v44 = vsel %vm361_vm4, %v345_v30, %v377_v37  ;;  %v340_v45 = vadd.f32 %v616_v41, %v729_v16  ;;  %v348_v46 = vadd.f32 %v624_v42, %v729_v16 }
  0xec   :  { %v539_v47 = vpack.c.bf16 %v385_v43, %v384_v31  ;;  %v559_v48 = vpack.c.bf16 %v393_v44, %v392_v32  ;;  %vm351_vm6 = vcmp.ge.f32.partialorder %v335_v39, 0.0  ;;  %v367_v49 = vmul.f32 0.2, %v335_v39  ;;  %v229_v50 = vpop.f32.mrf.mxu0  ;;  %v261_v51 = vpop.f32.mrf.mxu1 }
  0xed   :  { %vm359_vm7 = vcmp.ge.f32.partialorder %v343_v40, 0.0  ;;  %v375_v52 = vmul.f32 0.2, %v343_v40  ;;  %v338_v55 = vadd.f32 %v729_v16, %v229_v50  ;;  %v346_v61 = vadd.f32 %v729_v16, %v261_v51 }
  0xee   :  { %571 = vst [vmem:[%s780_s3 + $0x8] sm:$0xff] %v539_v47   ;;  %575 = vst [vmem:[%s780_s3 + $0x28] sm:$0xff] %v559_v48   ;;  %v383_v54 = vsel %vm351_vm6, %v335_v39, %v367_v49  ;;  %v617_v56 = vpop.f32.mrf.mxu0  ;;  %v625_v57 = vpop.f32.mrf.mxu1  ;;  %vm356_vm8 = vcmp.ge.f32.partialorder %v340_v45, 0.0  ;;  %v372_v63 = vmul.f32 0.2, %v340_v45  ;;  %vm364_vm9 = vcmp.ge.f32.partialorder %v348_v46, 0.0 }
  0xef   :  { %v534_v59 = vpack.c.bf16 %v383_v54, %v382_v53  ;;  %v391_v60 = vsel %vm359_vm7, %v343_v40, %v375_v52  ;;  %v380_v2 = vmul.f32 0.2, %v348_v46  ;;  %vm354_vm10 = vcmp.ge.f32.partialorder %v338_v55, 0.0 }
  0xf0   :  { %v554_v62 = vpack.c.bf16 %v391_v60, %v390_v58  ;;  %v232_v0 = vpop.f32.mrf.mxu0  ;;  %v264_v1 = vpop.f32.mrf.mxu1  ;;  %v341_v3 = vadd.f32 %v617_v56, %v729_v16  ;;  %v349_v4 = vadd.f32 %v625_v57, %v729_v16  ;;  %v370_v5 = vmul.f32 0.2, %v338_v55 }
  0xf1   :  { %535 = vst [vmem:[%s780_s3] sm:$0xff] %v534_v59   ;;  %vm362_vm11 = vcmp.ge.f32.partialorder %v346_v61, 0.0  ;;  %v339_v6 = vadd.f32 %v729_v16, %v232_v0  ;;  %v347_v7 = vadd.f32 %v729_v16, %v264_v1  ;;  %v378_v8 = vmul.f32 0.2, %v346_v61 }
  0xf2   :  { %574 = vst [vmem:[%s780_s3 + $0x20] sm:$0xff] %v554_v62   ;;  %vm357_vm12 = vcmp.ge.f32.partialorder %v341_v3, 0.0  ;;  %v373_v9 = vmul.f32 0.2, %v341_v3  ;;  %vm365_vm13 = vcmp.ge.f32.partialorder %v349_v4, 0.0  ;;  %v388_v12 = vsel %vm356_vm8, %v340_v45, %v372_v63 }
  0xf3   :  { %v381_v10 = vmul.f32 0.2, %v349_v4  ;;  %vm355_vm14 = vcmp.ge.f32.partialorder %v339_v6, 0.0  ;;  %v371_v11 = vmul.f32 0.2, %v339_v6  ;;  %vm363_vm15 = vcmp.ge.f32.partialorder %v347_v7, 0.0 }
  0xf4   :  { %v396_v13 = vsel %vm364_vm9, %v348_v46, %v380_v2  ;;  %v389_v14 = vsel %vm357_vm12, %v341_v3, %v373_v9  ;;  %v379_v15 = vmul.f32 0.2, %v347_v7  ;;  %v386_v17 = vsel %vm354_vm10, %v338_v55, %v370_v5 }
  0xf5   :  { %v549_v18 = vpack.c.bf16 %v389_v14, %v388_v12  ;;  %v397_v19 = vsel %vm365_vm13, %v349_v4, %v381_v10  ;;  %v387_v20 = vsel %vm355_vm14, %v339_v6, %v371_v11  ;;  %v394_v16 = vsel %vm362_vm11, %v346_v61, %v378_v8 }
  0xf6   :  { %v569_v21 = vpack.c.bf16 %v397_v19, %v396_v13  ;;  %v544_v22 = vpack.c.bf16 %v387_v20, %v386_v17  ;;  %v395_v23 = vsel %vm363_vm15, %v347_v7, %v379_v15 }
  0xf7   :  { %573 = vst [vmem:[%s780_s3 + $0x18] sm:$0xff] %v549_v18   ;;  %v564_v24 = vpack.c.bf16 %v395_v23, %v394_v16 }
  0xf8   :  { %577 = vst [vmem:[%s780_s3 + $0x38] sm:$0xff] %v569_v21   ;;  %572 = vst [vmem:[%s780_s3 + $0x10] sm:$0xff] %v544_v22  }
  0xf9   :  { %576 = vst [vmem:[%s780_s3 + $0x30] sm:$0xff] %v564_v24  }

// kernel: discriminator_forward.9
= control target key start
LH: loop header
LB: loop body
LE: loop exit
PB: predicated region body
PF: predicated region fallthrough
CT: control target
= control target key end

     0   :  { %s971_s1 = inlined_call_operand.vmem [shape: bf16[256,128], index: 1, kind: input, shape index: {}]   ;;  %s972_s0 = inlined_call_operand.vmem [shape: bf16[128,256], index: 0, kind: input, shape index: {}]   ;;  %s973_s2 = inlined_call_operand.vmem [shape: f32[1,128], index: 2, kind: input, shape index: {}]   ;;  %s974_s3 = inlined_call_operand.vmem [shape: bf16[128,128], index: 3, kind: output, shape index: {}]  }
   0x1   :  { %v770_v0 = vld [vmem:[%s971_s1 + $0x78] sm:$0xff]   ;;  %v772_v2 = vld [vmem:[%s971_s1 + $0x70] sm:$0xff]   ;;  %v774_v4 = vld [vmem:[%s971_s1 + $0x68] sm:$0xff]  }
   0x2   :  { %v771_v1 = vld [vmem:[%s971_s1 + $0x38] sm:$0xff]   ;;  %690 = vmatprep.subr.bf16.mxu0 %v770_v0  ;;  %754 = vmatprep.subr.bf16.mxu1 %v770_v0  ;;  %v773_v3 = vld [vmem:[%s971_s1 + $0x30] sm:$0xff]   ;;  %v775_v5 = vld [vmem:[%s971_s1 + $0x28] sm:$0xff]  }
   0x3   :  { %691 = vmatpush3.bf16.msra.mxu0 %v771_v1  ;;  %762 = vmatpush3.bf16.msra.mxu1 %v771_v1  ;;  %v776_v6 = vld [vmem:[%s971_s1 + $0x60] sm:$0xff]   ;;  %v778_v8 = vld [vmem:[%s971_s1 + $0x58] sm:$0xff]   ;;  %v780_v10 = vld [vmem:[%s971_s1 + $0x50] sm:$0xff]  }
   0x4   :  { %692 = vmatprep.subr.bf16.mxu0 %v772_v2  ;;  %755 = vmatprep.subr.bf16.mxu1 %v772_v2  ;;  %v777_v7 = vld [vmem:[%s971_s1 + $0x20] sm:$0xff]   ;;  %v779_v9 = vld [vmem:[%s971_s1 + $0x18] sm:$0xff]   ;;  %v781_v13 = vld [vmem:[%s971_s1 + $0x10] sm:$0xff]  }
   0x5   :  { %v788_v11 = vld [vmem:[%s972_s0 + $0x4] ss:$8 sps:$4 sm:$0xff]   ;;  %v786_v18 = vld [vmem:[%s972_s0] ss:$8 sps:$4 sm:$0xff]   ;;  %v792_v20 = vld [vmem:[%s972_s0 + $0x14] ss:$8 sps:$4 sm:$0xff]  }
   0x6   :  { %v791_v12 = vld [vmem:[%s972_s0 + $0x44] ss:$8 sps:$4 sm:$0xff]   ;;  %307 = vmatprep.mubr.bf16.mxu0 %v788_v11  ;;  %v789_v19 = vld [vmem:[%s972_s0 + $0x40] ss:$8 sps:$4 sm:$0xff]   ;;  %v794_v21 = vld [vmem:[%s972_s0 + $0x54] ss:$8 sps:$4 sm:$0xff]  }
   0x7   :  { %693 = vmatpush3.bf16.msra.mxu0 %v773_v3  ;;  %763 = vmatpush3.bf16.msra.mxu1 %v773_v3  ;;  %v782_v14 = vld [vmem:[%s971_s1 + $0x48] sm:$0xff]   ;;  %v784_v16 = vld [vmem:[%s971_s1 + $0x40] sm:$0xff]   ;;  %v796_v22 = vld [vmem:[%s972_s0 + $0x10] ss:$8 sps:$4 sm:$0xff]  }
   0x8   :  { %694 = vmatprep.subr.bf16.mxu0 %v774_v4  ;;  %756 = vmatprep.subr.bf16.mxu1 %v774_v4  ;;  %v783_v15 = vld [vmem:[%s971_s1 + $0x8] sm:$0xff]   ;;  %v785_v17 = vld [vmem:[%s971_s1] sm:$0xff]   ;;  %v797_v23 = vld [vmem:[%s972_s0 + $0x50] ss:$8 sps:$4 sm:$0xff]  }
   0x9   :  { %339 = vmatprep.mubr.bf16.mxu1 %v791_v12  ;;  %v798_v24 = vld [vmem:[%s972_s0 + $0x24] ss:$8 sps:$4 sm:$0xff]   ;;  %v802_v26 = vld [vmem:[%s972_s0 + $0x20] ss:$8 sps:$4 sm:$0xff]   ;;  %v804_v28 = vld [vmem:[%s972_s0 + $0x34] ss:$8 sps:$4 sm:$0xff]  }
   0xa   :  { %v800_v25 = vld [vmem:[%s972_s0 + $0x64] ss:$8 sps:$4 sm:$0xff]   ;;  %v803_v27 = vld [vmem:[%s972_s0 + $0x60] ss:$8 sps:$4 sm:$0xff]   ;;  %v806_v29 = vld [vmem:[%s972_s0 + $0x74] ss:$8 sps:$4 sm:$0xff]  }
   0xb   :  { %695 = vmatpush3.bf16.msra.mxu0 %v775_v5  ;;  %764 = vmatpush3.bf16.msra.mxu1 %v775_v5  ;;  %v808_v30 = vld [vmem:[%s972_s0 + $0x30] ss:$8 sps:$4 sm:$0xff]   ;;  %v929_v35 = vld [vmem:[%s973_s2] ss:$0 sm:$0xff] }
   0xc   :  { %696 = vmatprep.subr.bf16.mxu0 %v776_v6  ;;  %757 = vmatprep.subr.bf16.mxu1 %v776_v6  ;;  %v809_v31 = vld [vmem:[%s972_s0 + $0x70] ss:$8 sps:$4 sm:$0xff]  }
   0xf   :  { %697 = vmatpush3.bf16.msra.mxu0 %v777_v7  ;;  %765 = vmatpush3.bf16.msra.mxu1 %v777_v7 }
  0x10   :  { %698 = vmatprep.subr.bf16.mxu0 %v778_v8  ;;  %758 = vmatprep.subr.bf16.mxu1 %v778_v8 }
  0x13   :  { %699 = vmatpush3.bf16.msra.mxu0 %v779_v9  ;;  %766 = vmatpush3.bf16.msra.mxu1 %v779_v9 }
  0x14   :  { %700 = vmatprep.subr.bf16.mxu0 %v780_v10  ;;  %759 = vmatprep.subr.bf16.mxu1 %v780_v10 }
  0x17   :  { %701 = vmatpush3.bf16.msra.mxu0 %v781_v13  ;;  %767 = vmatpush3.bf16.msra.mxu1 %v781_v13 }
  0x18   :  { %702 = vmatprep.subr.bf16.mxu0 %v782_v14  ;;  %760 = vmatprep.subr.bf16.mxu1 %v782_v14 }
  0x1b   :  { %703 = vmatpush3.bf16.msra.mxu0 %v783_v15  ;;  %768 = vmatpush3.bf16.msra.mxu1 %v783_v15 }
  0x1c   :  { %704 = vmatprep.subr.bf16.mxu0 %v784_v16  ;;  %761 = vmatprep.subr.bf16.mxu1 %v784_v16 }
  0x1f   :  { %705 = vmatpush3.bf16.msra.mxu0 %v785_v17  ;;  %769 = vmatpush3.bf16.msra.mxu1 %v785_v17 }
  0x22   :  { %308 = vmatmul.mubr.bf16.vlgmr.msra.gmra.mxu0 %v786_v18  ;;  %340 = vmatmul.mubr.bf16.vlgmr.msra.gmra.mxu1 %v789_v19 }
  0x23   :  { %315 = vmatprep.mubr.bf16.mxu0 %v792_v20  ;;  %347 = vmatprep.mubr.bf16.mxu1 %v794_v21 }
  0x2a   :  { %316 = vmatmul.mubr.bf16.gmra.mxu0 %v796_v22  ;;  %348 = vmatmul.mubr.bf16.gmra.mxu1 %v797_v23 }
  0x2b   :  { %323 = vmatprep.mubr.bf16.mxu0 %v798_v24  ;;  %355 = vmatprep.mubr.bf16.mxu1 %v800_v25 }
  0x32   :  { %324 = vmatmul.mubr.bf16.gmra.mxu0 %v802_v26  ;;  %356 = vmatmul.mubr.bf16.gmra.mxu1 %v803_v27 }
  0x33   :  { %331 = vmatprep.mubr.bf16.mxu0 %v804_v28  ;;  %363 = vmatprep.mubr.bf16.mxu1 %v806_v29 }
  0x3a   :  { %332 = vmatmul.mubr.bf16.gmra.mxu0 %v808_v30  ;;  %364 = vmatmul.mubr.bf16.gmra.mxu1 %v809_v31 }
  0xe2   :  { %v706_v32 = vpop.f32.mrf.mxu0  ;;  %v730_v33 = vpop.f32.mrf.mxu1 }
  0xe4   :  { %v707_v34 = vpop.f32.mrf.mxu0  ;;  %v731_v36 = vpop.f32.mrf.mxu1 }
  0xe5   :  { %v708_v37 = vadd.f32 %v707_v34, %v706_v32  ;;  %v732_v38 = vadd.f32 %v731_v36, %v730_v33 }
  0xe6   :  { %v709_v39 = vpop.f32.mrf.mxu0  ;;  %v733_v40 = vpop.f32.mrf.mxu1 }
  0xe7   :  { %v430_v41 = vadd.f32 %v708_v37, %v929_v35  ;;  %v438_v42 = vadd.f32 %v732_v38, %v929_v35 }
  0xe8   :  { %v710_v43 = vpop.f32.mrf.mxu0  ;;  %v734_v44 = vpop.f32.mrf.mxu1 }
  0xe9   :  { %v711_v45 = vadd.f32 %v710_v43, %v709_v39  ;;  %v735_v46 = vadd.f32 %v734_v44, %v733_v40  ;;  %v462_v49 = vmul.f32 0.2, %v430_v41  ;;  %v470_v50 = vmul.f32 0.2, %v438_v42 }
  0xea   :  { %v712_v47 = vpop.f32.mrf.mxu0  ;;  %v736_v48 = vpop.f32.mrf.mxu1  ;;  %vm446_vm0 = vcmp.ge.f32.partialorder %v430_v41, 0.0  ;;  %vm454_vm1 = vcmp.ge.f32.partialorder %v438_v42, 0.0 }
  0xeb   :  { %v431_v51 = vadd.f32 %v711_v45, %v929_v35  ;;  %v439_v52 = vadd.f32 %v735_v46, %v929_v35  ;;  %v478_v61 = vsel %vm446_vm0, %v430_v41, %v462_v49  ;;  %v486_v62 = vsel %vm454_vm1, %v438_v42, %v470_v50 }
  0xec   :  { %v713_v53 = vpop.f32.mrf.mxu0  ;;  %v737_v54 = vpop.f32.mrf.mxu1 }
  0xed   :  { %v714_v55 = vadd.f32 %v713_v53, %v712_v47  ;;  %v738_v56 = vadd.f32 %v737_v54, %v736_v48  ;;  %vm447_vm2 = vcmp.ge.f32.partialorder %v431_v51, 0.0  ;;  %v463_v57 = vmul.f32 0.2, %v431_v51 }
  0xee   :  { %vm455_vm3 = vcmp.ge.f32.partialorder %v439_v52, 0.0  ;;  %v471_v58 = vmul.f32 0.2, %v439_v52  ;;  %v715_v59 = vpop.f32.mrf.mxu0  ;;  %v739_v60 = vpop.f32.mrf.mxu1 }
  0xef   :  { %v479_v63 = vsel %vm447_vm2, %v431_v51, %v463_v57  ;;  %v432_v1 = vadd.f32 %v714_v55, %v929_v35  ;;  %v440_v2 = vadd.f32 %v738_v56, %v929_v35 }
  0xf0   :  { %v487_v0 = vsel %vm455_vm3, %v439_v52, %v471_v58  ;;  %v716_v3 = vpop.f32.mrf.mxu0  ;;  %v740_v4 = vpop.f32.mrf.mxu1  ;;  %v646_v5 = vpack.c.bf16 %v479_v63, %v478_v61 }
  0xf1   :  { %v666_v6 = vpack.c.bf16 %v487_v0, %v486_v62  ;;  %v717_v7 = vadd.f32 %v716_v3, %v715_v59  ;;  %v741_v8 = vadd.f32 %v740_v4, %v739_v60  ;;  %v464_v11 = vmul.f32 0.2, %v432_v1 }
  0xf2   :  { %v718_v9 = vpop.f32.mrf.mxu0  ;;  %v742_v10 = vpop.f32.mrf.mxu1  ;;  %647 = vst [vmem:[%s974_s3] sm:$0xff] %v646_v5   ;;  %v472_v12 = vmul.f32 0.2, %v440_v2  ;;  %vm448_vm4 = vcmp.ge.f32.partialorder %v432_v1, 0.0  ;;  %vm456_vm5 = vcmp.ge.f32.partialorder %v440_v2, 0.0 }
  0xf3   :  { %686 = vst [vmem:[%s974_s3 + $0x20] sm:$0xff] %v666_v6   ;;  %v433_v13 = vadd.f32 %v717_v7, %v929_v35  ;;  %v441_v14 = vadd.f32 %v741_v8, %v929_v35  ;;  %v480_v25 = vsel %vm448_vm4, %v432_v1, %v464_v11 }
  0xf4   :  { %v719_v15 = vpop.f32.mrf.mxu0  ;;  %v743_v16 = vpop.f32.mrf.mxu1  ;;  %v488_v26 = vsel %vm456_vm5, %v440_v2, %v472_v12 }
  0xf5   :  { %v720_v17 = vadd.f32 %v719_v15, %v718_v9  ;;  %v744_v18 = vadd.f32 %v743_v16, %v742_v10  ;;  %vm449_vm6 = vcmp.ge.f32.partialorder %v433_v13, 0.0  ;;  %v465_v19 = vmul.f32 0.2, %v433_v13 }
  0xf6   :  { %vm457_vm7 = vcmp.ge.f32.partialorder %v441_v14, 0.0  ;;  %v473_v20 = vmul.f32 0.2, %v441_v14  ;;  %v721_v21 = vpop.f32.mrf.mxu0  ;;  %v745_v22 = vpop.f32.mrf.mxu1 }
  0xf7   :  { %v434_v23 = vadd.f32 %v720_v17, %v929_v35  ;;  %v442_v24 = vadd.f32 %v744_v18, %v929_v35  ;;  %v481_v27 = vsel %vm449_vm6, %v433_v13, %v465_v19 }
  0xf8   :  { %v489_v28 = vsel %vm457_vm7, %v441_v14, %v473_v20  ;;  %v722_v29 = vpop.f32.mrf.mxu0  ;;  %v746_v30 = vpop.f32.mrf.mxu1  ;;  %v651_v31 = vpack.c.bf16 %v481_v27, %v480_v25 }
  0xf9   :  { %v671_v32 = vpack.c.bf16 %v489_v28, %v488_v26  ;;  %v723_v33 = vadd.f32 %v722_v29, %v721_v21  ;;  %v747_v34 = vadd.f32 %v746_v30, %v745_v22  ;;  %v466_v38 = vmul.f32 0.2, %v434_v23 }
  0xfa   :  { %v724_v36 = vpop.f32.mrf.mxu0  ;;  %v748_v37 = vpop.f32.mrf.mxu1  ;;  %683 = vst [vmem:[%s974_s3 + $0x8] sm:$0xff] %v651_v31   ;;  %v474_v39 = vmul.f32 0.2, %v442_v24  ;;  %vm450_vm8 = vcmp.ge.f32.partialorder %v434_v23, 0.0  ;;  %vm458_vm9 = vcmp.ge.f32.partialorder %v442_v24, 0.0 }
  0xfb   :  { %687 = vst [vmem:[%s974_s3 + $0x28] sm:$0xff] %v671_v32   ;;  %v435_v40 = vadd.f32 %v723_v33, %v929_v35  ;;  %v443_v41 = vadd.f32 %v747_v34, %v929_v35  ;;  %v482_v50 = vsel %vm450_vm8, %v434_v23, %v466_v38 }
  0xfc   :  { %v725_v42 = vpop.f32.mrf.mxu0  ;;  %v749_v43 = vpop.f32.mrf.mxu1  ;;  %v490_v51 = vsel %vm458_vm9, %v442_v24, %v474_v39 }
  0xfd   :  { %v726_v44 = vadd.f32 %v725_v42, %v724_v36  ;;  %v750_v45 = vadd.f32 %v749_v43, %v748_v37  ;;  %vm451_vm10 = vcmp.ge.f32.partialorder %v435_v40, 0.0  ;;  %v467_v46 = vmul.f32 0.2, %v435_v40 }
  0xfe   :  { %vm459_vm11 = vcmp.ge.f32.partialorder %v443_v41, 0.0  ;;  %v475_v47 = vmul.f32 0.2, %v443_v41  ;;  %v727_v48 = vpop.f32.mrf.mxu0  ;;  %v751_v49 = vpop.f32.mrf.mxu1 }
  0xff   :  { %v483_v52 = vsel %vm451_vm10, %v435_v40, %v467_v46  ;;  %v436_v54 = vadd.f32 %v726_v44, %v929_v35  ;;  %v444_v55 = vadd.f32 %v750_v45, %v929_v35 }
 0x100   :  { %v491_v53 = vsel %vm459_vm11, %v443_v41, %v475_v47  ;;  %v728_v56 = vpop.f32.mrf.mxu0  ;;  %v752_v57 = vpop.f32.mrf.mxu1  ;;  %v656_v58 = vpack.c.bf16 %v483_v52, %v482_v50 }
 0x101   :  { %v676_v59 = vpack.c.bf16 %v491_v53, %v490_v51  ;;  %v729_v60 = vadd.f32 %v728_v56, %v727_v48  ;;  %v753_v61 = vadd.f32 %v752_v57, %v751_v49  ;;  %v468_v62 = vmul.f32 0.2, %v436_v54 }
 0x102   :  { %684 = vst [vmem:[%s974_s3 + $0x10] sm:$0xff] %v656_v58   ;;  %v476_v63 = vmul.f32 0.2, %v444_v55  ;;  %vm452_vm12 = vcmp.ge.f32.partialorder %v436_v54, 0.0  ;;  %vm460_vm13 = vcmp.ge.f32.partialorder %v444_v55, 0.0 }
 0x103   :  { %688 = vst [vmem:[%s974_s3 + $0x30] sm:$0xff] %v676_v59   ;;  %v437_v0 = vadd.f32 %v729_v60, %v929_v35  ;;  %v445_v1 = vadd.f32 %v753_v61, %v929_v35  ;;  %v484_v4 = vsel %vm452_vm12, %v436_v54, %v468_v62 }
 0x104   :  { %v492_v5 = vsel %vm460_vm13, %v444_v55, %v476_v63 }
 0x105   :  { %vm453_vm14 = vcmp.ge.f32.partialorder %v437_v0, 0.0  ;;  %v469_v2 = vmul.f32 0.2, %v437_v0  ;;  %vm461_vm15 = vcmp.ge.f32.partialorder %v445_v1, 0.0  ;;  %v477_v3 = vmul.f32 0.2, %v445_v1 }
 0x107   :  { %v485_v6 = vsel %vm453_vm14, %v437_v0, %v469_v2  ;;  %v493_v7 = vsel %vm461_vm15, %v445_v1, %v477_v3 }
 0x108   :  { %v661_v8 = vpack.c.bf16 %v485_v6, %v484_v4  ;;  %v681_v9 = vpack.c.bf16 %v493_v7, %v492_v5 }
 0x10a   :  { %685 = vst [vmem:[%s974_s3 + $0x18] sm:$0xff] %v661_v8   ;;  %689 = vst [vmem:[%s974_s3 + $0x38] sm:$0xff] %v681_v9  }

// kernel: discriminator_forward.10
= control target key start
LH: loop header
LB: loop body
LE: loop exit
PB: predicated region body
PF: predicated region fallthrough
CT: control target
= control target key end

     0   :  { %s1508_s1 = inlined_call_operand.vmem [shape: bf16[512,128], index: 1, kind: input, shape index: {}]   ;;  %s1509_s0 = inlined_call_operand.vmem [shape: bf16[128,512], index: 0, kind: input, shape index: {}]   ;;  %s1510_s2 = inlined_call_operand.vmem [shape: f32[1,128], index: 2, kind: input, shape index: {}]   ;;  %s1511_s3 = inlined_call_operand.vmem [shape: bf16[128,128], index: 3, kind: output, shape index: {}]  }
   0x1   :  { %v1171_v0 = vld [vmem:[%s1508_s1 + $0x78] sm:$0xff]   ;;  %v1175_v4 = vld [vmem:[%s1508_s1 + $0x70] sm:$0xff]   ;;  %v1179_v8 = vld [vmem:[%s1508_s1 + $0x68] sm:$0xff]  }
   0x2   :  { %v1172_v1 = vld [vmem:[%s1508_s1 + $0xf8] sm:$0xff]   ;;  %1043 = vmatprep.subr.bf16.mxu0 %v1171_v0  ;;  %v1176_v5 = vld [vmem:[%s1508_s1 + $0xf0] sm:$0xff]   ;;  %v1180_v9 = vld [vmem:[%s1508_s1 + $0xe8] sm:$0xff]  }
   0x3   :  { %v1173_v2 = vld [vmem:[%s1508_s1 + $0x38] sm:$0xff]   ;;  %1107 = vmatprep.subr.bf16.mxu1 %v1172_v1  ;;  %v1177_v6 = vld [vmem:[%s1508_s1 + $0x30] sm:$0xff]   ;;  %v1181_v10 = vld [vmem:[%s1508_s1 + $0x28] sm:$0xff]  }
   0x4   :  { %v1174_v3 = vld [vmem:[%s1508_s1 + $0xb8] sm:$0xff]   ;;  %1044 = vmatpush3.bf16.msra.mxu0 %v1173_v2  ;;  %v1178_v7 = vld [vmem:[%s1508_s1 + $0xb0] sm:$0xff]   ;;  %v1182_v11 = vld [vmem:[%s1508_s1 + $0xa8] sm:$0xff]  }
   0x5   :  { %1108 = vmatpush3.bf16.msra.mxu1 %v1174_v3  ;;  %1045 = vmatprep.subr.bf16.mxu0 %v1175_v4  ;;  %v1183_v12 = vld [vmem:[%s1508_s1 + $0x60] sm:$0xff]   ;;  %v1187_v16 = vld [vmem:[%s1508_s1 + $0x58] sm:$0xff]   ;;  %v1191_v20 = vld [vmem:[%s1508_s1 + $0x50] sm:$0xff]  }
   0x6   :  { %1109 = vmatprep.subr.bf16.mxu1 %v1176_v5  ;;  %v1184_v13 = vld [vmem:[%s1508_s1 + $0xe0] sm:$0xff]   ;;  %v1188_v17 = vld [vmem:[%s1508_s1 + $0xd8] sm:$0xff]   ;;  %v1192_v21 = vld [vmem:[%s1508_s1 + $0xd0] sm:$0xff]  }
   0x7   :  { %v1185_v14 = vld [vmem:[%s1508_s1 + $0x20] sm:$0xff]   ;;  %v1189_v18 = vld [vmem:[%s1508_s1 + $0x18] sm:$0xff]   ;;  %v1193_v22 = vld [vmem:[%s1508_s1 + $0x10] sm:$0xff]  }
   0x8   :  { %1046 = vmatpush3.bf16.msra.mxu0 %v1177_v6  ;;  %v1186_v15 = vld [vmem:[%s1508_s1 + $0xa0] sm:$0xff]   ;;  %v1190_v19 = vld [vmem:[%s1508_s1 + $0x98] sm:$0xff]   ;;  %v1194_v23 = vld [vmem:[%s1508_s1 + $0x90] sm:$0xff]  }
   0x9   :  { %1110 = vmatpush3.bf16.msra.mxu1 %v1178_v7  ;;  %1047 = vmatprep.subr.bf16.mxu0 %v1179_v8  ;;  %v1195_v24 = vld [vmem:[%s1508_s1 + $0x48] sm:$0xff]   ;;  %v1199_v28 = vld [vmem:[%s1508_s1 + $0x40] sm:$0xff]  }
   0xa   :  { %1111 = vmatprep.subr.bf16.mxu1 %v1180_v9  ;;  %v1196_v25 = vld [vmem:[%s1508_s1 + $0xc8] sm:$0xff]   ;;  %v1200_v29 = vld [vmem:[%s1508_s1 + $0xc0] sm:$0xff]  }
   0xb   :  { %v1197_v26 = vld [vmem:[%s1508_s1 + $0x8] sm:$0xff]   ;;  %v1201_v30 = vld [vmem:[%s1508_s1] sm:$0xff]  }
   0xc   :  { %1048 = vmatpush3.bf16.msra.mxu0 %v1181_v10  ;;  %v1198_v27 = vld [vmem:[%s1508_s1 + $0x88] sm:$0xff]   ;;  %v1202_v31 = vld [vmem:[%s1508_s1 + $0x80] sm:$0xff]  }
   0xd   :  { %1112 = vmatpush3.bf16.msra.mxu1 %v1182_v11  ;;  %1049 = vmatprep.subr.bf16.mxu0 %v1183_v12  ;;  %v1203_v32 = vld [vmem:[%s1509_s0] ss:$16 sps:$4 sm:$0xff]   ;;  %v1205_v33 = vld [vmem:[%s1509_s0 + $0x4] ss:$16 sps:$4 sm:$0xff]   ;;  %v1206_v34 = vld [vmem:[%s1509_s0 + $0x8] ss:$16 sps:$4 sm:$0xff]  }
   0xe   :  { %1113 = vmatprep.subr.bf16.mxu1 %v1184_v13  ;;  %v1208_v35 = vld [vmem:[%s1509_s0 + $0xc] ss:$16 sps:$4 sm:$0xff]   ;;  %531 = vmatprep.mubr.bf16.mxu0 %v1205_v33  ;;  %v1209_v36 = vld [vmem:[%s1509_s0 + $0x24] ss:$16 sps:$4 sm:$0xff]   ;;  %v1213_v38 = vld [vmem:[%s1509_s0 + $0x20] ss:$16 sps:$4 sm:$0xff]  }
   0xf   :  { %628 = vmatprep.mubr.bf16.mxu1 %v1208_v35  ;;  %v1211_v37 = vld [vmem:[%s1509_s0 + $0x2c] ss:$16 sps:$4 sm:$0xff]   ;;  %v1214_v39 = vld [vmem:[%s1509_s0 + $0x28] ss:$16 sps:$4 sm:$0xff]   ;;  %v1215_v40 = vld [vmem:[%s1509_s0 + $0x44] ss:$16 sps:$4 sm:$0xff]  }
  0x10   :  { %1050 = vmatpush3.bf16.msra.mxu0 %v1185_v14  ;;  %v1217_v41 = vld [vmem:[%s1509_s0 + $0x4c] ss:$16 sps:$4 sm:$0xff]   ;;  %v1219_v42 = vld [vmem:[%s1509_s0 + $0x40] ss:$16 sps:$4 sm:$0xff]   ;;  %v1220_v43 = vld [vmem:[%s1509_s0 + $0x48] ss:$16 sps:$4 sm:$0xff]  }
  0x11   :  { %1114 = vmatpush3.bf16.msra.mxu1 %v1186_v15  ;;  %1051 = vmatprep.subr.bf16.mxu0 %v1187_v16  ;;  %v1221_v44 = vld [vmem:[%s1509_s0 + $0x64] ss:$16 sps:$4 sm:$0xff]   ;;  %v1223_v45 = vld [vmem:[%s1509_s0 + $0x6c] ss:$16 sps:$4 sm:$0xff]   ;;  %v1225_v46 = vld [vmem:[%s1509_s0 + $0x60] ss:$16 sps:$4 sm:$0xff]  }
  0x12   :  { %1115 = vmatprep.subr.bf16.mxu1 %v1188_v17  ;;  %v1226_v47 = vld [vmem:[%s1509_s0 + $0x68] ss:$16 sps:$4 sm:$0xff]   ;;  %v1227_v48 = vld [vmem:[%s1509_s0 + $0x84] ss:$16 sps:$4 sm:$0xff]   ;;  %v1229_v49 = vld [vmem:[%s1509_s0 + $0x8c] ss:$16 sps:$4 sm:$0xff]  }
  0x13   :  { %v1231_v50 = vld [vmem:[%s1509_s0 + $0x80] ss:$16 sps:$4 sm:$0xff]   ;;  %v1232_v51 = vld [vmem:[%s1509_s0 + $0x88] ss:$16 sps:$4 sm:$0xff]   ;;  %v1233_v52 = vld [vmem:[%s1509_s0 + $0xa4] ss:$16 sps:$4 sm:$0xff]  }
  0x14   :  { %1052 = vmatpush3.bf16.msra.mxu0 %v1189_v18  ;;  %v1235_v53 = vld [vmem:[%s1509_s0 + $0xac] ss:$16 sps:$4 sm:$0xff]   ;;  %v1237_v54 = vld [vmem:[%s1509_s0 + $0xa0] ss:$16 sps:$4 sm:$0xff]   ;;  %v1238_v55 = vld [vmem:[%s1509_s0 + $0xa8] ss:$16 sps:$4 sm:$0xff]  }
  0x15   :  { %1116 = vmatpush3.bf16.msra.mxu1 %v1190_v19  ;;  %1053 = vmatprep.subr.bf16.mxu0 %v1191_v20  ;;  %v1239_v56 = vld [vmem:[%s1509_s0 + $0xc4] ss:$16 sps:$4 sm:$0xff]   ;;  %v1241_v57 = vld [vmem:[%s1509_s0 + $0xcc] ss:$16 sps:$4 sm:$0xff]   ;;  %v1243_v58 = vld [vmem:[%s1509_s0 + $0xc0] ss:$16 sps:$4 sm:$0xff]  }
  0x16   :  { %1117 = vmatprep.subr.bf16.mxu1 %v1192_v21  ;;  %v1244_v59 = vld [vmem:[%s1509_s0 + $0xc8] ss:$16 sps:$4 sm:$0xff]   ;;  %v1245_v60 = vld [vmem:[%s1509_s0 + $0xe4] ss:$16 sps:$4 sm:$0xff]   ;;  %v1247_v61 = vld [vmem:[%s1509_s0 + $0xec] ss:$16 sps:$4 sm:$0xff]  }
  0x17   :  { %v1249_v62 = vld [vmem:[%s1509_s0 + $0xe0] ss:$16 sps:$4 sm:$0xff]   ;;  %v1250_v63 = vld [vmem:[%s1509_s0 + $0xe8] ss:$16 sps:$4 sm:$0xff]  }
  0x18   :  { %1054 = vmatpush3.bf16.msra.mxu0 %v1193_v22  ;;  %v1466_v7 = vld [vmem:[%s1510_s2] ss:$0 sm:$0xff] }
  0x19   :  { %1118 = vmatpush3.bf16.msra.mxu1 %v1194_v23  ;;  %1055 = vmatprep.subr.bf16.mxu0 %v1195_v24 }
  0x1a   :  { %1119 = vmatprep.subr.bf16.mxu1 %v1196_v25 }
  0x1c   :  { %1056 = vmatpush3.bf16.msra.mxu0 %v1197_v26 }
  0x1d   :  { %1120 = vmatpush3.bf16.msra.mxu1 %v1198_v27  ;;  %1057 = vmatprep.subr.bf16.mxu0 %v1199_v28 }
  0x1e   :  { %1121 = vmatprep.subr.bf16.mxu1 %v1200_v29 }
  0x20   :  { %1058 = vmatpush3.bf16.msra.mxu0 %v1201_v30 }
  0x21   :  { %1122 = vmatpush3.bf16.msra.mxu1 %v1202_v31 }
  0x23   :  { %532 = vmatmul.mubr.bf16.vlgmr.msra.gmra.mxu0 %v1203_v32 }
  0x24   :  { %629 = vmatmul.mubr.bf16.vlgmr.msra.gmra.mxu1 %v1206_v34  ;;  %539 = vmatprep.mubr.bf16.mxu0 %v1209_v36 }
  0x25   :  { %636 = vmatprep.mubr.bf16.mxu1 %v1211_v37 }
  0x2b   :  { %540 = vmatmul.mubr.bf16.gmra.mxu0 %v1213_v38 }
  0x2c   :  { %637 = vmatmul.mubr.bf16.gmra.mxu1 %v1214_v39  ;;  %547 = vmatprep.mubr.bf16.mxu0 %v1215_v40 }
  0x2d   :  { %644 = vmatprep.mubr.bf16.mxu1 %v1217_v41 }
  0x33   :  { %548 = vmatmul.mubr.bf16.gmra.mxu0 %v1219_v42 }
  0x34   :  { %645 = vmatmul.mubr.bf16.gmra.mxu1 %v1220_v43  ;;  %555 = vmatprep.mubr.bf16.mxu0 %v1221_v44 }
  0x35   :  { %652 = vmatprep.mubr.bf16.mxu1 %v1223_v45 }
  0x3b   :  { %556 = vmatmul.mubr.bf16.gmra.mxu0 %v1225_v46 }
  0x3c   :  { %653 = vmatmul.mubr.bf16.gmra.mxu1 %v1226_v47  ;;  %563 = vmatprep.mubr.bf16.mxu0 %v1227_v48 }
  0x3d   :  { %660 = vmatprep.mubr.bf16.mxu1 %v1229_v49 }
  0x43   :  { %564 = vmatmul.mubr.bf16.gmra.mxu0 %v1231_v50 }
  0x44   :  { %661 = vmatmul.mubr.bf16.gmra.mxu1 %v1232_v51  ;;  %571 = vmatprep.mubr.bf16.mxu0 %v1233_v52 }
  0x45   :  { %668 = vmatprep.mubr.bf16.mxu1 %v1235_v53 }
  0x4b   :  { %572 = vmatmul.mubr.bf16.gmra.mxu0 %v1237_v54 }
  0x4c   :  { %669 = vmatmul.mubr.bf16.gmra.mxu1 %v1238_v55  ;;  %579 = vmatprep.mubr.bf16.mxu0 %v1239_v56 }
  0x4d   :  { %676 = vmatprep.mubr.bf16.mxu1 %v1241_v57 }
  0x53   :  { %580 = vmatmul.mubr.bf16.gmra.mxu0 %v1243_v58 }
  0x54   :  { %677 = vmatmul.mubr.bf16.gmra.mxu1 %v1244_v59  ;;  %587 = vmatprep.mubr.bf16.mxu0 %v1245_v60 }
  0x55   :  { %684 = vmatprep.mubr.bf16.mxu1 %v1247_v61 }
  0x5b   :  { %588 = vmatmul.mubr.bf16.gmra.mxu0 %v1249_v62 }
  0x5c   :  { %685 = vmatmul.mubr.bf16.gmra.mxu1 %v1250_v63 }
  0xe3   :  { %v1059_v0 = vpop.f32.mrf.mxu0 }
  0xe4   :  { %v1123_v1 = vpop.f32.mrf.mxu1 }
  0xe5   :  { %v1060_v2 = vpop.f32.mrf.mxu0 }
  0xe6   :  { %v1061_v3 = vadd.f32 %v1060_v2, %v1059_v0  ;;  %v1124_v4 = vpop.f32.mrf.mxu1 }
  0xe7   :  { %v1125_v5 = vadd.f32 %v1124_v4, %v1123_v1  ;;  %v1062_v6 = vpop.f32.mrf.mxu0 }
  0xe8   :  { %v1126_v8 = vpop.f32.mrf.mxu1 }
  0xe9   :  { %v631_v9 = vadd.f32 %v1125_v5, %v1061_v3  ;;  %v1063_v10 = vpop.f32.mrf.mxu0 }
  0xea   :  { %v1064_v11 = vadd.f32 %v1063_v10, %v1062_v6  ;;  %v1127_v12 = vpop.f32.mrf.mxu1 }
  0xeb   :  { %v751_v13 = vadd.f32 %v1466_v7, %v631_v9  ;;  %v1128_v14 = vadd.f32 %v1127_v12, %v1126_v8  ;;  %v1065_v15 = vpop.f32.mrf.mxu0 }
  0xec   :  { %v1129_v16 = vpop.f32.mrf.mxu1 }
  0xed   :  { %v634_v17 = vadd.f32 %v1128_v14, %v1064_v11  ;;  %v1066_v18 = vpop.f32.mrf.mxu0  ;;  %v783_v21 = vmul.f32 0.2, %v751_v13  ;;  %vm767_vm0 = vcmp.ge.f32.partialorder %v751_v13, 0.0 }
  0xee   :  { %v1067_v19 = vadd.f32 %v1066_v18, %v1065_v15  ;;  %v1130_v20 = vpop.f32.mrf.mxu1 }
  0xef   :  { %v752_v22 = vadd.f32 %v1466_v7, %v634_v17  ;;  %v1131_v23 = vadd.f32 %v1130_v20, %v1129_v16  ;;  %v1068_v24 = vpop.f32.mrf.mxu0  ;;  %v799_v31 = vsel %vm767_vm0, %v751_v13, %v783_v21 }
  0xf0   :  { %v1132_v25 = vpop.f32.mrf.mxu1 }
  0xf1   :  { %vm768_vm1 = vcmp.ge.f32.partialorder %v752_v22, 0.0  ;;  %v784_v26 = vmul.f32 0.2, %v752_v22  ;;  %v639_v27 = vadd.f32 %v1131_v23, %v1067_v19  ;;  %v1069_v28 = vpop.f32.mrf.mxu0 }
  0xf2   :  { %v1070_v29 = vadd.f32 %v1069_v28, %v1068_v24  ;;  %v1133_v30 = vpop.f32.mrf.mxu1 }
  0xf3   :  { %v800_v32 = vsel %vm768_vm1, %v752_v22, %v784_v26  ;;  %v753_v33 = vadd.f32 %v1466_v7, %v639_v27  ;;  %v1134_v34 = vadd.f32 %v1133_v30, %v1132_v25  ;;  %v1071_v35 = vpop.f32.mrf.mxu0 }
  0xf4   :  { %v999_v36 = vpack.c.bf16 %v800_v32, %v799_v31  ;;  %v1135_v37 = vpop.f32.mrf.mxu1 }
  0xf5   :  { %v642_v38 = vadd.f32 %v1134_v34, %v1070_v29  ;;  %v1072_v39 = vpop.f32.mrf.mxu0  ;;  %v785_v42 = vmul.f32 0.2, %v753_v33  ;;  %vm769_vm2 = vcmp.ge.f32.partialorder %v753_v33, 0.0 }
  0xf6   :  { %1000 = vst [vmem:[%s1511_s3] sm:$0xff] %v999_v36   ;;  %v1073_v40 = vadd.f32 %v1072_v39, %v1071_v35  ;;  %v1136_v41 = vpop.f32.mrf.mxu1 }
  0xf7   :  { %v754_v43 = vadd.f32 %v1466_v7, %v642_v38  ;;  %v1137_v44 = vadd.f32 %v1136_v41, %v1135_v37  ;;  %v1074_v45 = vpop.f32.mrf.mxu0  ;;  %v801_v52 = vsel %vm769_vm2, %v753_v33, %v785_v42 }
  0xf8   :  { %v1138_v46 = vpop.f32.mrf.mxu1 }
  0xf9   :  { %vm770_vm3 = vcmp.ge.f32.partialorder %v754_v43, 0.0  ;;  %v786_v47 = vmul.f32 0.2, %v754_v43  ;;  %v647_v48 = vadd.f32 %v1137_v44, %v1073_v40  ;;  %v1075_v49 = vpop.f32.mrf.mxu0 }
  0xfa   :  { %v1076_v50 = vadd.f32 %v1075_v49, %v1074_v45  ;;  %v1139_v51 = vpop.f32.mrf.mxu1 }
  0xfb   :  { %v802_v53 = vsel %vm770_vm3, %v754_v43, %v786_v47  ;;  %v755_v54 = vadd.f32 %v1466_v7, %v647_v48  ;;  %v1140_v55 = vadd.f32 %v1139_v51, %v1138_v46  ;;  %v1077_v56 = vpop.f32.mrf.mxu0 }
  0xfc   :  { %v1004_v57 = vpack.c.bf16 %v802_v53, %v801_v52  ;;  %v1141_v58 = vpop.f32.mrf.mxu1 }
  0xfd   :  { %v650_v59 = vadd.f32 %v1140_v55, %v1076_v50  ;;  %v1078_v60 = vpop.f32.mrf.mxu0  ;;  %v787_v63 = vmul.f32 0.2, %v755_v54  ;;  %vm771_vm4 = vcmp.ge.f32.partialorder %v755_v54, 0.0 }
  0xfe   :  { %1036 = vst [vmem:[%s1511_s3 + $0x8] sm:$0xff] %v1004_v57   ;;  %v1079_v61 = vadd.f32 %v1078_v60, %v1077_v56  ;;  %v1142_v62 = vpop.f32.mrf.mxu1 }
  0xff   :  { %v756_v0 = vadd.f32 %v1466_v7, %v650_v59  ;;  %v1143_v1 = vadd.f32 %v1142_v62, %v1141_v58  ;;  %v1080_v2 = vpop.f32.mrf.mxu0  ;;  %v803_v10 = vsel %vm771_vm4, %v755_v54, %v787_v63 }
 0x100   :  { %v1144_v3 = vpop.f32.mrf.mxu1 }
 0x101   :  { %vm772_vm5 = vcmp.ge.f32.partialorder %v756_v0, 0.0  ;;  %v788_v4 = vmul.f32 0.2, %v756_v0  ;;  %v655_v5 = vadd.f32 %v1143_v1, %v1079_v61  ;;  %v1081_v6 = vpop.f32.mrf.mxu0 }
 0x102   :  { %v1082_v8 = vadd.f32 %v1081_v6, %v1080_v2  ;;  %v1145_v9 = vpop.f32.mrf.mxu1 }
 0x103   :  { %v804_v11 = vsel %vm772_vm5, %v756_v0, %v788_v4  ;;  %v757_v12 = vadd.f32 %v1466_v7, %v655_v5  ;;  %v1146_v13 = vadd.f32 %v1145_v9, %v1144_v3  ;;  %v1083_v14 = vpop.f32.mrf.mxu0 }
 0x104   :  { %v1009_v15 = vpack.c.bf16 %v804_v11, %v803_v10  ;;  %v1147_v16 = vpop.f32.mrf.mxu1 }
 0x105   :  { %v658_v17 = vadd.f32 %v1146_v13, %v1082_v8  ;;  %v1084_v18 = vpop.f32.mrf.mxu0  ;;  %v789_v21 = vmul.f32 0.2, %v757_v12  ;;  %vm773_vm6 = vcmp.ge.f32.partialorder %v757_v12, 0.0 }
 0x106   :  { %1037 = vst [vmem:[%s1511_s3 + $0x10] sm:$0xff] %v1009_v15   ;;  %v1085_v19 = vadd.f32 %v1084_v18, %v1083_v14  ;;  %v1148_v20 = vpop.f32.mrf.mxu1 }
 0x107   :  { %v758_v22 = vadd.f32 %v1466_v7, %v658_v17  ;;  %v1149_v23 = vadd.f32 %v1148_v20, %v1147_v16  ;;  %v1086_v24 = vpop.f32.mrf.mxu0  ;;  %v805_v31 = vsel %vm773_vm6, %v757_v12, %v789_v21 }
 0x108   :  { %v1150_v25 = vpop.f32.mrf.mxu1 }
 0x109   :  { %vm774_vm7 = vcmp.ge.f32.partialorder %v758_v22, 0.0  ;;  %v790_v26 = vmul.f32 0.2, %v758_v22  ;;  %v663_v27 = vadd.f32 %v1149_v23, %v1085_v19  ;;  %v1087_v28 = vpop.f32.mrf.mxu0 }
 0x10a   :  { %v1088_v29 = vadd.f32 %v1087_v28, %v1086_v24  ;;  %v1151_v30 = vpop.f32.mrf.mxu1 }
 0x10b   :  { %v806_v32 = vsel %vm774_vm7, %v758_v22, %v790_v26  ;;  %v759_v33 = vadd.f32 %v1466_v7, %v663_v27  ;;  %v1152_v34 = vadd.f32 %v1151_v30, %v1150_v25  ;;  %v1089_v35 = vpop.f32.mrf.mxu0 }
 0x10c   :  { %v1014_v36 = vpack.c.bf16 %v806_v32, %v805_v31  ;;  %v1153_v37 = vpop.f32.mrf.mxu1 }
 0x10d   :  { %v666_v38 = vadd.f32 %v1152_v34, %v1088_v29  ;;  %v1090_v39 = vpop.f32.mrf.mxu0  ;;  %v791_v42 = vmul.f32 0.2, %v759_v33  ;;  %vm775_vm8 = vcmp.ge.f32.partialorder %v759_v33, 0.0 }
 0x10e   :  { %1038 = vst [vmem:[%s1511_s3 + $0x18] sm:$0xff] %v1014_v36   ;;  %v1091_v40 = vadd.f32 %v1090_v39, %v1089_v35  ;;  %v1154_v41 = vpop.f32.mrf.mxu1 }
 0x10f   :  { %v760_v43 = vadd.f32 %v1466_v7, %v666_v38  ;;  %v1155_v44 = vadd.f32 %v1154_v41, %v1153_v37  ;;  %v1092_v45 = vpop.f32.mrf.mxu0  ;;  %v807_v52 = vsel %vm775_vm8, %v759_v33, %v791_v42 }
 0x110   :  { %v1156_v46 = vpop.f32.mrf.mxu1 }
 0x111   :  { %vm776_vm9 = vcmp.ge.f32.partialorder %v760_v43, 0.0  ;;  %v792_v47 = vmul.f32 0.2, %v760_v43  ;;  %v671_v48 = vadd.f32 %v1155_v44, %v1091_v40  ;;  %v1093_v49 = vpop.f32.mrf.mxu0 }
 0x112   :  { %v1094_v50 = vadd.f32 %v1093_v49, %v1092_v45  ;;  %v1157_v51 = vpop.f32.mrf.mxu1 }
 0x113   :  { %v808_v53 = vsel %vm776_vm9, %v760_v43, %v792_v47  ;;  %v761_v54 = vadd.f32 %v1466_v7, %v671_v48  ;;  %v1158_v55 = vadd.f32 %v1157_v51, %v1156_v46  ;;  %v1095_v56 = vpop.f32.mrf.mxu0 }
 0x114   :  { %v1019_v57 = vpack.c.bf16 %v808_v53, %v807_v52  ;;  %v1159_v58 = vpop.f32.mrf.mxu1 }
 0x115   :  { %v674_v59 = vadd.f32 %v1158_v55, %v1094_v50  ;;  %v1096_v60 = vpop.f32.mrf.mxu0  ;;  %v793_v63 = vmul.f32 0.2, %v761_v54  ;;  %vm777_vm10 = vcmp.ge.f32.partialorder %v761_v54, 0.0 }
 0x116   :  { %1039 = vst [vmem:[%s1511_s3 + $0x20] sm:$0xff] %v1019_v57   ;;  %v1097_v61 = vadd.f32 %v1096_v60, %v1095_v56  ;;  %v1160_v62 = vpop.f32.mrf.mxu1 }
 0x117   :  { %v762_v0 = vadd.f32 %v1466_v7, %v674_v59  ;;  %v1161_v1 = vadd.f32 %v1160_v62, %v1159_v58  ;;  %v1098_v2 = vpop.f32.mrf.mxu0  ;;  %v809_v10 = vsel %vm777_vm10, %v761_v54, %v793_v63 }
 0x118   :  { %v1162_v3 = vpop.f32.mrf.mxu1 }
 0x119   :  { %vm778_vm11 = vcmp.ge.f32.partialorder %v762_v0, 0.0  ;;  %v794_v4 = vmul.f32 0.2, %v762_v0  ;;  %v679_v5 = vadd.f32 %v1161_v1, %v1097_v61  ;;  %v1099_v6 = vpop.f32.mrf.mxu0 }
 0x11a   :  { %v1100_v8 = vadd.f32 %v1099_v6, %v1098_v2  ;;  %v1163_v9 = vpop.f32.mrf.mxu1 }
 0x11b   :  { %v810_v11 = vsel %vm778_vm11, %v762_v0, %v794_v4  ;;  %v763_v12 = vadd.f32 %v1466_v7, %v679_v5  ;;  %v1164_v13 = vadd.f32 %v1163_v9, %v1162_v3  ;;  %v1101_v14 = vpop.f32.mrf.mxu0 }
 0x11c   :  { %v1024_v15 = vpack.c.bf16 %v810_v11, %v809_v10  ;;  %v1165_v16 = vpop.f32.mrf.mxu1 }
 0x11d   :  { %v682_v17 = vadd.f32 %v1164_v13, %v1100_v8  ;;  %v1102_v18 = vpop.f32.mrf.mxu0  ;;  %v795_v21 = vmul.f32 0.2, %v763_v12  ;;  %vm779_vm12 = vcmp.ge.f32.partialorder %v763_v12, 0.0 }
 0x11e   :  { %1040 = vst [vmem:[%s1511_s3 + $0x28] sm:$0xff] %v1024_v15   ;;  %v1103_v19 = vadd.f32 %v1102_v18, %v1101_v14  ;;  %v1166_v20 = vpop.f32.mrf.mxu1 }
 0x11f   :  { %v764_v22 = vadd.f32 %v1466_v7, %v682_v17  ;;  %v1167_v23 = vadd.f32 %v1166_v20, %v1165_v16  ;;  %v1104_v24 = vpop.f32.mrf.mxu0  ;;  %v811_v31 = vsel %vm779_vm12, %v763_v12, %v795_v21 }
 0x120   :  { %v1168_v25 = vpop.f32.mrf.mxu1 }
 0x121   :  { %vm780_vm13 = vcmp.ge.f32.partialorder %v764_v22, 0.0  ;;  %v796_v26 = vmul.f32 0.2, %v764_v22  ;;  %v687_v27 = vadd.f32 %v1167_v23, %v1103_v19  ;;  %v1105_v28 = vpop.f32.mrf.mxu0 }
 0x122   :  { %v1106_v29 = vadd.f32 %v1105_v28, %v1104_v24  ;;  %v1169_v30 = vpop.f32.mrf.mxu1 }
 0x123   :  { %v812_v32 = vsel %vm780_vm13, %v764_v22, %v796_v26  ;;  %v765_v33 = vadd.f32 %v1466_v7, %v687_v27  ;;  %v1170_v34 = vadd.f32 %v1169_v30, %v1168_v25 }
 0x124   :  { %v1029_v35 = vpack.c.bf16 %v812_v32, %v811_v31 }
 0x125   :  { %v690_v36 = vadd.f32 %v1170_v34, %v1106_v29  ;;  %v797_v37 = vmul.f32 0.2, %v765_v33  ;;  %vm781_vm14 = vcmp.ge.f32.partialorder %v765_v33, 0.0 }
 0x126   :  { %1041 = vst [vmem:[%s1511_s3 + $0x30] sm:$0xff] %v1029_v35  }
 0x127   :  { %v766_v38 = vadd.f32 %v1466_v7, %v690_v36  ;;  %v813_v40 = vsel %vm781_vm14, %v765_v33, %v797_v37 }
 0x129   :  { %vm782_vm15 = vcmp.ge.f32.partialorder %v766_v38, 0.0  ;;  %v798_v39 = vmul.f32 0.2, %v766_v38 }
 0x12b   :  { %v814_v41 = vsel %vm782_vm15, %v766_v38, %v798_v39 }
 0x12c   :  { %v1034_v42 = vpack.c.bf16 %v814_v41, %v813_v40 }
 0x12e   :  { %1042 = vst [vmem:[%s1511_s3 + $0x38] sm:$0xff] %v1034_v42  }

// kernel: discriminator_forward.12
= control target key start
LH: loop header
LB: loop body
LE: loop exit
PB: predicated region body
PF: predicated region fallthrough
CT: control target
= control target key end

     0   :  { %s884_s1 = inlined_call_operand.vmem [shape: bf16[128,128], index: 1, kind: input, shape index: {}]   ;;  %s885_s0 = inlined_call_operand.vmem [shape: bf16[128,128], index: 0, kind: input, shape index: {}]   ;;  %s886_s2 = inlined_call_operand.vmem [shape: f32[1,128], index: 2, kind: input, shape index: {}]   ;;  %s887_s3 = inlined_call_operand.vmem [shape: bf16[128,128], index: 3, kind: output, shape index: {0}]   ;;  %s888_s4 = inlined_call_operand.vmem [shape: f32[128,128], index: 4, kind: output, shape index: {1}]  }
   0x1   :  { %v696_v0 = vld [vmem:[%s884_s1 + $0x38] sm:$0xff]   ;;  %v697_v1 = vld [vmem:[%s884_s1 + $0x30] sm:$0xff]   ;;  %v698_v2 = vld [vmem:[%s884_s1 + $0x28] sm:$0xff]  }
   0x2   :  { %648 = vmatprep.subr.bf16.mxu0 %v696_v0  ;;  %680 = vmatprep.subr.bf16.mxu1 %v696_v0  ;;  %v699_v3 = vld [vmem:[%s884_s1 + $0x20] sm:$0xff]   ;;  %v700_v6 = vld [vmem:[%s884_s1 + $0x18] sm:$0xff]   ;;  %v701_v7 = vld [vmem:[%s884_s1 + $0x10] sm:$0xff]  }
   0x3   :  { %649 = vmatpush3.bf16.msra.mxu0 %v696_v0  ;;  %688 = vmatpush3.bf16.msra.mxu1 %v696_v0  ;;  %v704_v4 = vld [vmem:[%s885_s0] sm:$0xff]   ;;  %v702_v8 = vld [vmem:[%s884_s1 + $0x8] sm:$0xff]   ;;  %v708_v12 = vld [vmem:[%s885_s0 + $0x10] sm:$0xff]  }
   0x4   :  { %650 = vmatprep.subr.bf16.mxu0 %v697_v1  ;;  %681 = vmatprep.subr.bf16.mxu1 %v697_v1  ;;  %v705_v5 = vld [vmem:[%s885_s0 + $0x20] sm:$0xff]   ;;  %v706_v10 = vld [vmem:[%s885_s0 + $0x8] sm:$0xff]   ;;  %v710_v13 = vld [vmem:[%s885_s0 + $0x30] sm:$0xff]  }
   0x5   :  { %664 = vmatprep.mubr.bf16.mxu0 %v704_v4  ;;  %672 = vmatprep.mubr.bf16.mxu1 %v705_v5  ;;  %v703_v9 = vld [vmem:[%s884_s1] sm:$0xff]   ;;  %v707_v11 = vld [vmem:[%s885_s0 + $0x28] sm:$0xff]   ;;  %v709_v14 = vld [vmem:[%s885_s0 + $0x18] sm:$0xff]  }
   0x6   :  { %v711_v15 = vld [vmem:[%s885_s0 + $0x38] sm:$0xff]   ;;  %v788_v16 = vld [vmem:[%s886_s2] ss:$0 sm:$0xff] }
   0x7   :  { %651 = vmatpush3.bf16.msra.mxu0 %v697_v1  ;;  %689 = vmatpush3.bf16.msra.mxu1 %v697_v1 }
   0x8   :  { %652 = vmatprep.subr.bf16.mxu0 %v698_v2  ;;  %682 = vmatprep.subr.bf16.mxu1 %v698_v2 }
   0xb   :  { %653 = vmatpush3.bf16.msra.mxu0 %v698_v2  ;;  %690 = vmatpush3.bf16.msra.mxu1 %v698_v2 }
   0xc   :  { %654 = vmatprep.subr.bf16.mxu0 %v699_v3  ;;  %683 = vmatprep.subr.bf16.mxu1 %v699_v3 }
   0xf   :  { %655 = vmatpush3.bf16.msra.mxu0 %v699_v3  ;;  %691 = vmatpush3.bf16.msra.mxu1 %v699_v3 }
  0x10   :  { %656 = vmatprep.subr.bf16.mxu0 %v700_v6  ;;  %684 = vmatprep.subr.bf16.mxu1 %v700_v6 }
  0x13   :  { %657 = vmatpush3.bf16.msra.mxu0 %v700_v6  ;;  %692 = vmatpush3.bf16.msra.mxu1 %v700_v6 }
  0x14   :  { %658 = vmatprep.subr.bf16.mxu0 %v701_v7  ;;  %685 = vmatprep.subr.bf16.mxu1 %v701_v7 }
  0x17   :  { %659 = vmatpush3.bf16.msra.mxu0 %v701_v7  ;;  %693 = vmatpush3.bf16.msra.mxu1 %v701_v7 }
  0x18   :  { %660 = vmatprep.subr.bf16.mxu0 %v702_v8  ;;  %686 = vmatprep.subr.bf16.mxu1 %v702_v8 }
  0x1b   :  { %661 = vmatpush3.bf16.msra.mxu0 %v702_v8  ;;  %694 = vmatpush3.bf16.msra.mxu1 %v702_v8 }
  0x1c   :  { %662 = vmatprep.subr.bf16.mxu0 %v703_v9  ;;  %687 = vmatprep.subr.bf16.mxu1 %v703_v9 }
  0x1f   :  { %663 = vmatpush3.bf16.msra.mxu0 %v703_v9  ;;  %695 = vmatpush3.bf16.msra.mxu1 %v703_v9 }
  0x22   :  { %665 = vmatmul.mubr.bf16.vlgmr.msra.gmra.mxu0 %v706_v10  ;;  %673 = vmatmul.mubr.bf16.vlgmr.msra.gmra.mxu1 %v707_v11 }
  0x23   :  { %668 = vmatprep.mubr.bf16.mxu0 %v708_v12  ;;  %676 = vmatprep.mubr.bf16.mxu1 %v710_v13 }
  0x2a   :  { %669 = vmatmul.mubr.bf16.gmra.mxu0 %v709_v14  ;;  %677 = vmatmul.mubr.bf16.gmra.mxu1 %v711_v15 }
  0xe2   :  { %v666_v17 = vpop.f32.mrf.mxu0  ;;  %v674_v18 = vpop.f32.mrf.mxu1 }
  0xe3   :  { %v338_v19 = vadd.f32 %v666_v17, %v788_v16  ;;  %v346_v20 = vadd.f32 %v674_v18, %v788_v16 }
  0xe4   :  { %v215_v21 = vpop.f32.mrf.mxu0  ;;  %v247_v22 = vpop.f32.mrf.mxu1 }
  0xe5   :  { %v336_v23 = vadd.f32 %v788_v16, %v215_v21  ;;  %v344_v24 = vadd.f32 %v788_v16, %v247_v22  ;;  %vm362_vm0 = vcmp.ge.f32.partialorder %v346_v20, 0.0  ;;  %v378_v25 = vmul.f32 0.2, %v346_v20 }
  0xe6   :  { %v667_v26 = vpop.f32.mrf.mxu0  ;;  %v675_v27 = vpop.f32.mrf.mxu1  ;;  %vm354_vm1 = vcmp.ge.f32.partialorder %v338_v19, 0.0  ;;  %v370_v28 = vmul.f32 0.2, %v338_v19 }
  0xe7   :  { %v339_v29 = vadd.f32 %v667_v26, %v788_v16  ;;  %v347_v30 = vadd.f32 %v675_v27, %v788_v16  ;;  %v394_v31 = vsel %vm362_vm0, %v346_v20, %v378_v25  ;;  %vm352_vm2 = vcmp.ge.f32.partialorder %v336_v23, 0.0 }
  0xe8   :  { %500 = vadd.xlane.f32.xlu0 %v394_v31  ;;  %v250_v32 = vpop.f32.mrf.mxu1  ;;  %v386_v33 = vsel %vm354_vm1, %v338_v19, %v370_v28  ;;  %v218_v34 = vpop.f32.mrf.mxu0  ;;  %v368_v35 = vmul.f32 0.2, %v336_v23  ;;  %v376_v36 = vmul.f32 0.2, %v344_v24  ;;  %vm360_vm4 = vcmp.ge.f32.partialorder %v344_v24, 0.0 }
  0xe9   :  { %v345_v37 = vadd.f32 %v788_v16, %v250_v32  ;;  %484 = vadd.xlane.f32.xlu1 %v386_v33  ;;  %v337_v38 = vadd.f32 %v788_v16, %v218_v34  ;;  %vm355_vm3 = vcmp.ge.f32.partialorder %v339_v29, 0.0  ;;  %v371_v39 = vmul.f32 0.2, %v339_v29 }
  0xea   :  { %v670_v40 = vpop.f32.mrf.mxu0  ;;  %v678_v41 = vpop.f32.mrf.mxu1  ;;  %v384_v42 = vsel %vm352_vm2, %v336_v23, %v368_v35  ;;  %vm363_vm5 = vcmp.ge.f32.partialorder %v347_v30, 0.0  ;;  %v379_v43 = vmul.f32 0.2, %v347_v30  ;;  %v392_v53 = vsel %vm360_vm4, %v344_v24, %v376_v36 }
  0xeb   :  { %v342_v44 = vadd.f32 %v670_v40, %v788_v16  ;;  %v350_v45 = vadd.f32 %v678_v41, %v788_v16  ;;  %v387_v46 = vsel %vm355_vm3, %v339_v29, %v371_v39  ;;  %vm361_vm6 = vcmp.ge.f32.partialorder %v345_v37, 0.0 }
  0xec   :  { %480 = vadd.xlane.f32.xlu0 %v384_v42  ;;  %v593_v47 = vpack.c.bf16 %v387_v46, %v386_v33  ;;  %v231_v48 = vpop.f32.mrf.mxu0  ;;  %v263_v49 = vpop.f32.mrf.mxu1  ;;  %v395_v50 = vsel %vm363_vm5, %v347_v30, %v379_v43  ;;  %v377_v51 = vmul.f32 0.2, %v345_v37  ;;  %vm353_vm7 = vcmp.ge.f32.partialorder %v337_v38, 0.0 }
  0xed   :  { %486 = vadd.xlane.f32.xlu1 %v387_v46  ;;  %v340_v52 = vadd.f32 %v788_v16, %v231_v48  ;;  %v613_v54 = vpack.c.bf16 %v395_v50, %v394_v31  ;;  %v369_v55 = vmul.f32 0.2, %v337_v38  ;;  %v348_v57 = vadd.f32 %v788_v16, %v263_v49 }
  0xee   :  { %625 = vst [vmem:[%s887_s3 + $0x8] sm:$0xff] %v593_v47   ;;  %v671_v56 = vpop.f32.mrf.mxu0  ;;  %v679_v58 = vpop.f32.mrf.mxu1  ;;  %v393_v59 = vsel %vm361_vm6, %v345_v37, %v377_v51  ;;  %vm358_vm8 = vcmp.ge.f32.partialorder %v342_v44, 0.0  ;;  %v374_v60 = vmul.f32 0.2, %v342_v44  ;;  %vm366_vm9 = vcmp.ge.f32.partialorder %v350_v45, 0.0 }
  0xef   :  { %v343_v61 = vadd.f32 %v671_v56, %v788_v16  ;;  %629 = vst [vmem:[%s887_s3 + $0x28] sm:$0xff] %v613_v54   ;;  %v608_v62 = vpack.c.bf16 %v393_v59, %v392_v53  ;;  %v385_v63 = vsel %vm353_vm7, %v337_v38, %v369_v55  ;;  %v351_v0 = vadd.f32 %v679_v58, %v788_v16 }
  0xf0   :  { %496 = vadd.xlane.f32.xlu0 %v392_v53  ;;  %v234_v1 = vpop.f32.mrf.mxu0  ;;  %v266_v2 = vpop.f32.mrf.mxu1  ;;  %v588_v3 = vpack.c.bf16 %v385_v63, %v384_v42  ;;  %vm356_vm10 = vcmp.ge.f32.partialorder %v340_v52, 0.0  ;;  %v372_v4 = vmul.f32 0.2, %v340_v52  ;;  %v390_v8 = vsel %vm358_vm8, %v342_v44, %v374_v60 }
  0xf1   :  { %502 = vadd.xlane.f32.xlu1 %v395_v50  ;;  %v341_v5 = vadd.f32 %v788_v16, %v234_v1  ;;  %v349_v6 = vadd.f32 %v788_v16, %v266_v2  ;;  %628 = vst [vmem:[%s887_s3 + $0x20] sm:$0xff] %v608_v62   ;;  %vm359_vm11 = vcmp.ge.f32.partialorder %v343_v61, 0.0  ;;  %v375_v7 = vmul.f32 0.2, %v343_v61 }
  0xf2   :  { %589 = vst [vmem:[%s887_s3] sm:$0xff] %v588_v3   ;;  %vm364_vm12 = vcmp.ge.f32.partialorder %v348_v57, 0.0  ;;  %v380_v9 = vmul.f32 0.2, %v348_v57  ;;  %v382_v10 = vmul.f32 0.2, %v350_v45  ;;  %v388_v14 = vsel %vm356_vm10, %v340_v52, %v372_v4 }
  0xf3   :  { %v391_v11 = vsel %vm359_vm11, %v343_v61, %v375_v7  ;;  %vm357_vm13 = vcmp.ge.f32.partialorder %v341_v5, 0.0  ;;  %v373_v12 = vmul.f32 0.2, %v341_v5  ;;  %vm365_vm14 = vcmp.ge.f32.partialorder %v349_v6, 0.0 }
  0xf4   :  { %482 = vadd.xlane.f32.xlu0 %v385_v63  ;;  %v603_v13 = vpack.c.bf16 %v391_v11, %v390_v8  ;;  %v396_v15 = vsel %vm364_vm12, %v348_v57, %v380_v9  ;;  %v381_v16 = vmul.f32 0.2, %v349_v6  ;;  %v398_v18 = vsel %vm366_vm9, %v350_v45, %v382_v10 }
  0xf5   :  { %498 = vadd.xlane.f32.xlu1 %v393_v59  ;;  %v389_v17 = vsel %vm357_vm13, %v341_v5, %v373_v12  ;;  %vm367_vm15 = vcmp.ge.f32.partialorder %v351_v0, 0.0  ;;  %v383_v19 = vmul.f32 0.2, %v351_v0 }
  0xf6   :  { %627 = vst [vmem:[%s887_s3 + $0x18] sm:$0xff] %v603_v13   ;;  %v598_v20 = vpack.c.bf16 %v389_v17, %v388_v14  ;;  %v397_v21 = vsel %vm365_vm14, %v349_v6, %v381_v16 }
  0xf7   :  { %v618_v22 = vpack.c.bf16 %v397_v21, %v396_v15  ;;  %v399_v23 = vsel %vm367_vm15, %v351_v0, %v383_v19 }
  0xf8   :  { %492 = vadd.xlane.f32.xlu0 %v390_v8  ;;  %626 = vst [vmem:[%s887_s3 + $0x10] sm:$0xff] %v598_v20   ;;  %v623_v24 = vpack.c.bf16 %v399_v23, %v398_v18 }
  0xf9   :  { %494 = vadd.xlane.f32.xlu1 %v391_v11  ;;  %630 = vst [vmem:[%s887_s3 + $0x30] sm:$0xff] %v618_v22  }
  0xfa   :  { %631 = vst [vmem:[%s887_s3 + $0x38] sm:$0xff] %v623_v24  }
  0xfc   :  { %488 = vadd.xlane.f32.xlu0 %v388_v14 }
  0xfd   :  { %490 = vadd.xlane.f32.xlu1 %v389_v17 }
 0x100   :  { %504 = vadd.xlane.f32.xlu0 %v396_v15 }
 0x101   :  { %506 = vadd.xlane.f32.xlu1 %v397_v21 }
 0x104   :  { %508 = vadd.xlane.f32.xlu0 %v398_v18 }
 0x105   :  { %510 = vadd.xlane.f32.xlu1 %v399_v23 }
 0x171   :  { %v501_v25 = vpop.xlane.xlu0 %500 }
 0x172   :  { %522 = vst [vmem:[%s888_s4 + $0x50] sm:$0xff] %v501_v25  ;;  %v485_v26 = vpop.xlane.xlu1 %484 }
 0x173   :  { %514 = vst [vmem:[%s888_s4 + $0x10] sm:$0xff] %v485_v26 }
 0x175   :  { %v481_v27 = vpop.xlane.xlu0 %480 }
 0x176   :  { %512 = vst [vmem:[%s888_s4] sm:$0xff] %v481_v27  ;;  %v487_v28 = vpop.xlane.xlu1 %486 }
 0x177   :  { %515 = vst [vmem:[%s888_s4 + $0x18] sm:$0xff] %v487_v28 }
 0x179   :  { %v497_v29 = vpop.xlane.xlu0 %496 }
 0x17a   :  { %520 = vst [vmem:[%s888_s4 + $0x40] sm:$0xff] %v497_v29  ;;  %v503_v30 = vpop.xlane.xlu1 %502 }
 0x17b   :  { %523 = vst [vmem:[%s888_s4 + $0x58] sm:$0xff] %v503_v30 }
 0x17d   :  { %v483_v31 = vpop.xlane.xlu0 %482 }
 0x17e   :  { %v499_v32 = vpop.xlane.xlu1 %498  ;;  %513 = vst [vmem:[%s888_s4 + $0x8] sm:$0xff] %v483_v31 }
 0x17f   :  { %521 = vst [vmem:[%s888_s4 + $0x48] sm:$0xff] %v499_v32 }
 0x181   :  { %v493_v33 = vpop.xlane.xlu0 %492 }
 0x182   :  { %518 = vst [vmem:[%s888_s4 + $0x30] sm:$0xff] %v493_v33  ;;  %v495_v34 = vpop.xlane.xlu1 %494 }
 0x183   :  { %519 = vst [vmem:[%s888_s4 + $0x38] sm:$0xff] %v495_v34 }
 0x185   :  { %v489_v35 = vpop.xlane.xlu0 %488 }
 0x186   :  { %516 = vst [vmem:[%s888_s4 + $0x20] sm:$0xff] %v489_v35  ;;  %v491_v36 = vpop.xlane.xlu1 %490 }
 0x187   :  { %517 = vst [vmem:[%s888_s4 + $0x28] sm:$0xff] %v491_v36 }
 0x189   :  { %v505_v37 = vpop.xlane.xlu0 %504 }
 0x18a   :  { %524 = vst [vmem:[%s888_s4 + $0x60] sm:$0xff] %v505_v37  ;;  %v507_v38 = vpop.xlane.xlu1 %506 }
 0x18b   :  { %525 = vst [vmem:[%s888_s4 + $0x68] sm:$0xff] %v507_v38 }
 0x18d   :  { %v509_v39 = vpop.xlane.xlu0 %508 }
 0x18e   :  { %526 = vst [vmem:[%s888_s4 + $0x70] sm:$0xff] %v509_v39  ;;  %v511_v40 = vpop.xlane.xlu1 %510 }
 0x18f   :  { %527 = vst [vmem:[%s888_s4 + $0x78] sm:$0xff] %v511_v40 }

// kernel: discriminator_forward.11
= control target key start
LH: loop header
LB: loop body
LE: loop exit
PB: predicated region body
PF: predicated region fallthrough
CT: control target
= control target key end

     0   :  { %v337_v1 = vmov 0.0   ;;  %vm338_vm0 = vmmov 0   ;;  %vm23_vm1 = vcmask 523264   ;;  %vm25_vm2 = vcmask 516096   ;;  %s449_s0 = inlined_call_operand.vmem [shape: bf16[2,9,64], index: 0, kind: input, shape index: {}]   ;;  %s450_s1 = inlined_call_operand.vmem [shape: f32[64,1], index: 1, kind: input, shape index: {}]   ;;  %s451_s2 = inlined_call_operand.vmem [shape: f32[64,1], index: 2, kind: input, shape index: {}]   ;;  %s452_s3 = inlined_call_operand.hbm [shape: f32[2,2], index: 3, kind: output, shape index: {}]  }
   0x1   :  { %v157_v0 = vld [vmem:[%s451_s2 + $0x38] sm:$0xff]  ;;  %292 = vmatprep.subr.mxu1 %v337_v1  ;;  %v156_v2 = vld [vmem:[%s451_s2 + $0x30] sm:$0xff]  ;;  %308 = vmatprep.mubr.msk.f32.mxu1 %vm338_vm0, %v337_v1  ;;  %v155_v3 = vld [vmem:[%s451_s2 + $0x28] sm:$0xff] }
   0x2   :  { %293 = vmatpush3.msra.mxu1 %v157_v0  ;;  %v15_v4 = vld [vmem:[%s449_s0] ss:$8 sps:$4 sm:$0xff]   ;;  %273 = vmatprep.subr.mxu0 %v337_v1  ;;  %v16_v5 = vld [vmem:[%s449_s0 + $0x4] sm:$0x1]  ;;  %v18_v6 = vld [vmem:[%s449_s0 + $0xc] sm:$0x1] }
   0x3   :  { %294 = vmatprep.subr.mxu1 %v337_v1  ;;  %v19_v7 = vunpack.c.l.bf16 %v15_v4  ;;  %v21_v8 = vunpack.c.h.bf16 %v15_v4  ;;  %v71_v9 = vld [vmem:[%s450_s1 + $0x38] sm:$0xff]  ;;  %289 = vmatprep.mubr.msk.f32.mxu0 %vm338_vm0, %v337_v1  ;;  %v20_v10 = vunpack.c.l.bf16 %v16_v5  ;;  %v22_v11 = vunpack.c.l.bf16 %v18_v6  ;;  %v70_v12 = vld [vmem:[%s450_s1 + $0x30] sm:$0xff]  ;;  %v154_v13 = vld [vmem:[%s451_s2 + $0x20] sm:$0xff] }
   0x4   :  { %295 = vmatpush3.msra.mxu1 %v156_v2  ;;  %274 = vmatpush3.msra.mxu0 %v71_v9  ;;  %v69_v16 = vld [vmem:[%s450_s1 + $0x28] sm:$0xff]  ;;  %v153_v22 = vld [vmem:[%s451_s2 + $0x18] sm:$0xff]  ;;  %v68_v25 = vld [vmem:[%s450_s1 + $0x20] sm:$0xff] }
   0x5   :  { %296 = vmatprep.subr.mxu1 %v337_v1  ;;  %v46_v14 = vsel %vm23_vm1, %v19_v7, -inf  ;;  %v55_v15 = vsel %vm23_vm1, %v21_v8, -inf  ;;  %275 = vmatprep.subr.mxu0 %v337_v1  ;;  %v24_v17 = vsel %vm23_vm1, %v19_v7, 0.0  ;;  %v47_v18 = vsel %vm25_vm2, %v20_v10, -inf }
   0x6   :  { %297 = vmatpush3.msra.mxu1 %v155_v3  ;;  %v56_v19 = vsel %vm25_vm2, %v22_v11, -inf  ;;  %276 = vmatpush3.msra.mxu0 %v70_v12  ;;  %v26_v20 = vsel %vm25_vm2, %v20_v10, 0.0  ;;  %v34_v21 = vsel %vm23_vm1, %v21_v8, 0.0  ;;  %v48_v23 = vmax.f32 %v46_v14, %v47_v18 }
   0x7   :  { %298 = vmatprep.subr.mxu1 %v337_v1  ;;  %v57_v24 = vmax.f32 %v55_v15, %v56_v19  ;;  %277 = vmatprep.subr.mxu0 %v337_v1  ;;  %v27_v26 = vadd.f32 %v26_v20, %v24_v17  ;;  %v35_v27 = vsel %vm25_vm2, %v22_v11, 0.0 }
   0x8   :  { %8 = vsyncpa [#allocation3], 0  ;;  %299 = vmatpush3.msra.mxu1 %v154_v13  ;;  %278 = vmatpush3.msra.mxu0 %v69_v16  ;;  %v36_v28 = vadd.f32 %v35_v27, %v34_v21  ;;  %v152_v29 = vld [vmem:[%s451_s2 + $0x10] sm:$0xff]  ;;  %v49_v30 = vrot.slane %v48_v23, 4  ;;  %v67_v32 = vld [vmem:[%s450_s1 + $0x18] sm:$0xff]  ;;  %vm74_vm3 = vcmask 1041409  }
   0x9   :  { %300 = vmatprep.subr.mxu1 %v337_v1  ;;  %v58_v31 = vrot.slane %v57_v24, 4  ;;  %279 = vmatprep.subr.mxu0 %v337_v1  ;;  %v28_v33 = vrot.slane %v27_v26, 4  ;;  %v151_v35 = vld [vmem:[%s451_s2 + $0x8] sm:$0xff]  ;;  %v66_v38 = vld [vmem:[%s450_s1 + $0x10] sm:$0xff]  ;;  %v150_v41 = vld [vmem:[%s451_s2] sm:$0xff]  ;;  %vm148_vm4 = vcmask 1024  }
   0xa   :  { %301 = vmatpush3.msra.mxu1 %v153_v22  ;;  %280 = vmatpush3.msra.mxu0 %v68_v25  ;;  %v37_v34 = vrot.slane %v36_v28, 4  ;;  %v50_v36 = vmax.f32 %v48_v23, %v49_v30  ;;  %v65_v44 = vld [vmem:[%s450_s1 + $0x8] sm:$0xff]  ;;  %v64_v49 = vld [vmem:[%s450_s1] sm:$0xff]  ;;  %s339_s1 = smov 1   ;;  %s340_s21 = smov [#allocation2]   ;;  %vm237_vm5 = vcmask 9224  }
   0xb   :  { %302 = vmatprep.subr.mxu1 %v337_v1  ;;  %v59_v37 = vmax.f32 %v57_v24, %v58_v31  ;;  %281 = vmatprep.subr.mxu0 %v337_v1  ;;  %v29_v39 = vadd.f32 %v28_v33, %v27_v26  ;;  %s245_s22 = sshll.u32 %s340_s21, 4  ;;  %s246_s22 = int_to_ptr.vmem [resolvable:$true] %s245_s22 }
   0xc   :  { %303 = vmatpush3.msra.mxu1 %v152_v29  ;;  %282 = vmatpush3.msra.mxu0 %v67_v32  ;;  %v38_v40 = vadd.f32 %v37_v34, %v36_v28  ;;  %v51_v42 = vrot.slane %v50_v36, 2  ;;  %s315_s23 = scalar_lea.vmem %s246_s22, 32  ;;  %p320_p1 = scmp.lt.s32.totalorder %s246_s22, %s246_s22 }
   0xd   :  { %304 = vmatprep.subr.mxu1 %v337_v1  ;;  %v60_v43 = vrot.slane %v59_v37, 2  ;;  %283 = vmatprep.subr.mxu0 %v337_v1  ;;  %v30_v45 = vrot.slane %v29_v39, 2  ;;  %p316_p0 = scmp.ne.s32.totalorder %s246_s22, %s315_s23  ;;  %p321_p2 = scmp.lt.s32.totalorder %s315_s23, %s315_s23 }
   0xe   :  { %305 = vmatpush3.msra.mxu1 %v151_v35  ;;  %284 = vmatpush3.msra.mxu0 %v66_v38  ;;  %v39_v46 = vrot.slane %v38_v40, 2  ;;  %v52_v47 = vmax.f32 %v50_v36, %v51_v42 }
   0xf   :  { %306 = vmatprep.subr.mxu1 %v337_v1  ;;  %v61_v48 = vmax.f32 %v59_v37, %v60_v43  ;;  %285 = vmatprep.subr.mxu0 %v337_v1  ;;  %v31_v50 = vadd.f32 %v30_v45, %v29_v39  ;;  %p322_p3 = por %p321_p2, %p320_p1 }
  0x10   :  { %307 = vmatpush3.msra.mxu1 %v150_v41  ;;  %286 = vmatpush3.msra.mxu0 %v65_v44  ;;  %v40_v51 = vadd.f32 %v39_v46, %v38_v40  ;;  %v53_v52 = vrot.slane %v52_v47, 1 }
  0x11   :  { %v62_v53 = vrot.slane %v61_v48, 1  ;;  %287 = vmatprep.subr.mxu0 %v337_v1  ;;  %v32_v54 = vrot.slane %v31_v50, 1  ;;  %p323_p4 = pnand %p322_p3, %p316_p0 }
  0x12   :  { %288 = vmatpush3.msra.mxu0 %v64_v49  ;;  %v41_v55 = vrot.slane %v40_v51, 1  ;;  %v54_v56 = vmax.f32 %v52_v47, %v53_v52 }
  0x13   :  { %v63_v57 = vmax.f32 %v61_v48, %v62_v53  ;;  %v33_v58 = vadd.f32 %v32_v54, %v31_v50 }
  0x14   :  { %v42_v59 = vadd.f32 %v41_v55, %v40_v51 }
  0x15   :  { %v160_v60 = vsel %vm74_vm3, %v63_v57, %v54_v56  ;;  %v44_v61 = vmul.f32 0.11111111, %v33_v58 }
  0x16   :  { %309 = vmatmul.mubr.msk.f32.vlgmr.msra.gmra.mxu1 %vm23_vm1, %v160_v60  ;;  %v45_v62 = vmul.f32 0.11111111, %v42_v59 }
  0x18   :  { %v75_v63 = vsel %vm74_vm3, %v45_v62, %v44_v61 }
  0x19   :  { %290 = vmatmul.mubr.msk.f32.vlgmr.msra.gmra.mxu0 %vm23_vm1, %v75_v63 }
  0xd6   :  { %v229_v0 = vpop.f32.mrf.mxu1 }
  0xd7   :  { %234 = vrot.lane.b32.xlu0 %v229_v0, %s339_s1 }
  0xd8   :  { %v310_v1 = vpop.f32.mrf.mxu1 }
  0xd9   :  { %v144_v2 = vpop.f32.mrf.mxu0 }
  0xda   :  { %149 = vst.msk [vmem:[#allocation2] sm:$0x3] %vm148_vm4, %v144_v2 }
  0xdb   :  { %v291_v3 = vpop.f32.mrf.mxu0 }
 0x149   :  { %v235_v4 = vpop.permute.xlu0 %234 }
 0x14a   :  { %238 = vst.msk [vmem:[#allocation2] sm:$0x3] %vm237_vm5, %v235_v4 }
 0x14b   :  { %326 = shalt.err (!%p323_p4)
}
 0x14c   :  { %248 = dma.vmem_to_hbm [thread:$0]  %s246_s22, 32, %s452_s3, [#allocation3]  }
 0x14d   :  { %335 = dma.done.wait [#allocation3], 32  }
 0x14e   :  { %336 = vsyncadd [#allocation3], 4294967264 }
 0x14f   :  { %252 = vsyncpa [#allocation3], 1 }

// kernel: discriminator_forward.13
= control target key start
LH: loop header
LB: loop body
LE: loop exit
PB: predicated region body
PF: predicated region fallthrough
CT: control target
= control target key end

     0   :  { %s1609_s12 = smov 0   ;;  %s1611_s13 = smov 0   ;;  %s1863_s0 = inlined_call_operand.vmem [shape: bf16[128,1024], index: 0, kind: input, shape index: {}]   ;;  %s1864_s1 = inlined_call_operand.vmem [shape: bf16[1024,128], index: 1, kind: input, shape index: {}]   ;;  %s1865_s2 = inlined_call_operand.vmem [shape: f32[1,128], index: 2, kind: input, shape index: {}]   ;;  %s1866_s3 = inlined_call_operand.vmem [shape: f32[128,128], index: 3, kind: output, shape index: {}]  }
   0x1   :  { %s1613_s14 = smov 0   ;;  %s1615_s15 = smov 0  }
   0x2   :  { %s1617_s16 = smov 0  }
   0x3 LB: > { %s25_s17 = sadd.s32 1, %s1582_s15  ;;  %p48_p1 = scmp.ne.s32.totalorder %s1574_s13, %s1570_s12  ;;  %s1586_s16 = sphi %s1617_s16, %s13_s16   ;;  %s1582_s15 = sphi %s1615_s15, %s1870_s15   ;;  %s1578_s14 = sphi %s1613_s14, %s1869_s14   ;;  %s1574_s13 = sphi %s1611_s13, %s1868_s13   ;;  %s1570_s12 = sphi %s1609_s12, %s1867_s12  }
   0x4   : > { %p26_p0 = scmp.ge.s32.totalorder %s25_s17, 2  ;;  %p49_p2 = scmp.eq.s32.totalorder %s1586_s16, 0 }
   0x5   : > { %s41_s19 = sadd.s32 1, %s1574_s13  ;;  %p1219_p5 = scmp.ge.s32.totalorder %s1586_s16, 2 }
   0x6   : > { %s1872_s17 = smov (%p26_p0, %s25_s17), 0  ;;  %p50_p3 = por %p49_p2, %p48_p1 }
   0x7   : > { %s37_s18 = ssub.s32 %s1582_s15, %s1872_s17  ;;  %162 = sbr.rel (%p1219_p5) target bundleno = 32 (0x20), region = 20 }
   0x8   : > { %p39_p4 = scmp.eq.s32.totalorder %s37_s18, 0 }
   0xa   : > { %s1644_s20 = scalar_select %p39_p4, %s1574_s13, %s41_s19  }
   0xc   : > { %165 = sbr.rel (!%p50_p3) target bundleno = 32 (0x20), region = 24  ;;  %s167_s21 = sand.u32 (%p50_p3), 1, %s1574_s13  }
   0xd   : > { %s1298_s22 = sshll.u32 (%p50_p3), %s1582_s15, 4  ;;  %s1220_s23 = sshll.u32 (%p50_p3), %s167_s21, 8 }
   0xe   : > { %s1652_s26 = scalar_lea.vmem (%p50_p3), %s1863_s0, %s1298_s22  ;;  %s1657_s27 = scalar_lea.vmem (%p50_p3), [#allocation3], %s1220_s23 }
   0xf   : > { %v188_v0 = vld [vmem:[%s1652_s26] sm:$0xff] (%p50_p3)  ;;  %v190_v1 = vld [vmem:[%s1652_s26 + $0x8] sm:$0xff] (%p50_p3) }
  0x10   : > { %v192_v2 = vld [vmem:[%s1652_s26 + $0x20] sm:$0xff] (%p50_p3)  ;;  %189 = vst [vmem:[%s1657_s27] sm:$0xff] (%p50_p3), %v188_v0  ;;  %191 = vst [vmem:[%s1657_s27 + $0x8] sm:$0xff] (%p50_p3), %v190_v1  ;;  %v194_v3 = vld [vmem:[%s1652_s26 + $0x28] sm:$0xff] (%p50_p3) }
  0x11   : > { %193 = vst [vmem:[%s1657_s27 + $0x10] sm:$0xff] %v192_v2  ;;  %v196_v4 = vld [vmem:[%s1652_s26 + $0x40] sm:$0xff]  ;;  %v198_v5 = vld [vmem:[%s1652_s26 + $0x48] sm:$0xff]  ;;  %195 = vst [vmem:[%s1657_s27 + $0x18] sm:$0xff] %v194_v3 }
  0x12   : > { %197 = vst [vmem:[%s1657_s27 + $0x20] sm:$0xff] %v196_v4  ;;  %199 = vst [vmem:[%s1657_s27 + $0x28] sm:$0xff] %v198_v5  ;;  %v200_v6 = vld [vmem:[%s1652_s26 + $0x60] sm:$0xff]  ;;  %v202_v7 = vld [vmem:[%s1652_s26 + $0x68] sm:$0xff] }
  0x13   : > { %v204_v8 = vld [vmem:[%s1652_s26 + $0x80] sm:$0xff]  ;;  %201 = vst [vmem:[%s1657_s27 + $0x30] sm:$0xff] %v200_v6  ;;  %203 = vst [vmem:[%s1657_s27 + $0x38] sm:$0xff] %v202_v7  ;;  %v206_v9 = vld [vmem:[%s1652_s26 + $0x88] sm:$0xff] }
  0x14   : > { %205 = vst [vmem:[%s1657_s27 + $0x40] sm:$0xff] %v204_v8  ;;  %v208_v10 = vld [vmem:[%s1652_s26 + $0xa0] sm:$0xff]  ;;  %v210_v11 = vld [vmem:[%s1652_s26 + $0xa8] sm:$0xff]  ;;  %207 = vst [vmem:[%s1657_s27 + $0x48] sm:$0xff] %v206_v9 }
  0x15   : > { %209 = vst [vmem:[%s1657_s27 + $0x50] sm:$0xff] %v208_v10  ;;  %211 = vst [vmem:[%s1657_s27 + $0x58] sm:$0xff] %v210_v11  ;;  %v212_v12 = vld [vmem:[%s1652_s26 + $0xc0] sm:$0xff]  ;;  %v214_v13 = vld [vmem:[%s1652_s26 + $0xc8] sm:$0xff] }
  0x16   : > { %v216_v14 = vld [vmem:[%s1652_s26 + $0xe0] sm:$0xff]  ;;  %213 = vst [vmem:[%s1657_s27 + $0x60] sm:$0xff] %v212_v12  ;;  %215 = vst [vmem:[%s1657_s27 + $0x68] sm:$0xff] %v214_v13  ;;  %v218_v15 = vld [vmem:[%s1652_s26 + $0xe8] sm:$0xff] }
  0x17   : > { %217 = vst [vmem:[%s1657_s27 + $0x70] sm:$0xff] %v216_v14  ;;  %v220_v16 = vld [vmem:[%s1652_s26 + $0x100] sm:$0xff]  ;;  %v222_v17 = vld [vmem:[%s1652_s26 + $0x108] sm:$0xff]  ;;  %219 = vst [vmem:[%s1657_s27 + $0x78] sm:$0xff] %v218_v15 }
  0x18   : > { %221 = vst [vmem:[%s1657_s27 + $0x80] sm:$0xff] %v220_v16  ;;  %223 = vst [vmem:[%s1657_s27 + $0x88] sm:$0xff] %v222_v17  ;;  %v224_v18 = vld [vmem:[%s1652_s26 + $0x120] sm:$0xff]  ;;  %v226_v19 = vld [vmem:[%s1652_s26 + $0x128] sm:$0xff] }
  0x19   : > { %v228_v20 = vld [vmem:[%s1652_s26 + $0x140] sm:$0xff]  ;;  %225 = vst [vmem:[%s1657_s27 + $0x90] sm:$0xff] %v224_v18  ;;  %227 = vst [vmem:[%s1657_s27 + $0x98] sm:$0xff] %v226_v19  ;;  %v230_v21 = vld [vmem:[%s1652_s26 + $0x148] sm:$0xff] }
  0x1a   : > { %229 = vst [vmem:[%s1657_s27 + $0xa0] sm:$0xff] %v228_v20  ;;  %v232_v22 = vld [vmem:[%s1652_s26 + $0x160] sm:$0xff]  ;;  %v234_v23 = vld [vmem:[%s1652_s26 + $0x168] sm:$0xff]  ;;  %231 = vst [vmem:[%s1657_s27 + $0xa8] sm:$0xff] %v230_v21 }
  0x1b   : > { %233 = vst [vmem:[%s1657_s27 + $0xb0] sm:$0xff] %v232_v22  ;;  %235 = vst [vmem:[%s1657_s27 + $0xb8] sm:$0xff] %v234_v23  ;;  %v236_v24 = vld [vmem:[%s1652_s26 + $0x180] sm:$0xff]  ;;  %v238_v25 = vld [vmem:[%s1652_s26 + $0x188] sm:$0xff] }
  0x1c   : > { %v240_v26 = vld [vmem:[%s1652_s26 + $0x1a0] sm:$0xff]  ;;  %237 = vst [vmem:[%s1657_s27 + $0xc0] sm:$0xff] %v236_v24  ;;  %239 = vst [vmem:[%s1657_s27 + $0xc8] sm:$0xff] %v238_v25  ;;  %v242_v27 = vld [vmem:[%s1652_s26 + $0x1a8] sm:$0xff] }
  0x1d   : > { %241 = vst [vmem:[%s1657_s27 + $0xd0] sm:$0xff] %v240_v26  ;;  %v244_v28 = vld [vmem:[%s1652_s26 + $0x1c0] sm:$0xff]  ;;  %v246_v29 = vld [vmem:[%s1652_s26 + $0x1c8] sm:$0xff]  ;;  %243 = vst [vmem:[%s1657_s27 + $0xd8] sm:$0xff] %v242_v27 }
  0x1e   : > { %245 = vst [vmem:[%s1657_s27 + $0xe0] sm:$0xff] %v244_v28  ;;  %247 = vst [vmem:[%s1657_s27 + $0xe8] sm:$0xff] %v246_v29  ;;  %v248_v30 = vld [vmem:[%s1652_s26 + $0x1e0] sm:$0xff]  ;;  %v250_v31 = vld [vmem:[%s1652_s26 + $0x1e8] sm:$0xff] }
  0x1f   : > { %249 = vst [vmem:[%s1657_s27 + $0xf0] sm:$0xff] %v248_v30  ;;  %251 = vst [vmem:[%s1657_s27 + $0xf8] sm:$0xff] %v250_v31 }
  0x20 PF: > { %p1223_p6 = scmp.ge.s32.totalorder %s1586_s16, 1  ;;  %p268_p7 = scmp.lt.s32.totalorder %s1586_s16, 3 }
  0x22   : > { %p269_p8 = pnand %p1223_p6, %p268_p7 }
  0x23   : > { %s275_s28 = sand.u32 (!%p269_p8), 1, %s1570_s12   ;;  %s1225_s29 = sshll.u32 (!%p269_p8), %s1578_s14, 6 }
  0x24   : > { %272 = sbr.rel (%p269_p8) target bundleno = 363 (0x16b), region = 51  ;;  %s1224_s30 = sshll.u32 (!%p269_p8), %s275_s28, 8 }
  0x25   : > { %p315_p9 = scmp.lt.s32.totalorder (!%p269_p8), %s1225_s29, 127  ;;  %s1729_s8 = scalar_lea.vmem (!%p269_p8), [#allocation3], %s1224_s30 }
  0x26   : > { %p1227_p10 = scmp.ne.s32.totalorder (!%p269_p8), %s1578_s14, 0 }
  0x29   : > { %s1874_s29 = smov (!%p315_p9, %s1225_s29), 127  ;;  %339 = sbr.rel (%p1227_p10) target bundleno = 55 (0x37), region = 59 }
  0x2a   : > { %s1226_s4 = sshll.u32 %s1874_s29, 2 }
  0x2b   : > { %s1727_s7 = scalar_lea.vmem %s1864_s1, %s1226_s4 }
  0x2e   : > { %v1588_v32 = vmov 0.0  }
  0x2f   : > { %340 = vst [vmem:[#allocation2 + $0x30] sm:$0xff] %v1588_v32  ;;  %341 = vst [vmem:[#allocation2] sm:$0xff] %v1588_v32 }
  0x30   : > { %342 = vst [vmem:[#allocation2 + $0x58] sm:$0xff] %v1588_v32  ;;  %343 = vst [vmem:[#allocation2 + $0x18] sm:$0xff] %v1588_v32 }
  0x31   : > { %344 = vst [vmem:[#allocation2 + $0x50] sm:$0xff] %v1588_v32  ;;  %345 = vst [vmem:[#allocation2 + $0x68] sm:$0xff] %v1588_v32 }
  0x32   : > { %346 = vst [vmem:[#allocation2 + $0x8] sm:$0xff] %v1588_v32  ;;  %347 = vst [vmem:[#allocation2 + $0x48] sm:$0xff] %v1588_v32 }
  0x33   : > { %348 = vst [vmem:[#allocation2 + $0x40] sm:$0xff] %v1588_v32  ;;  %349 = vst [vmem:[#allocation2 + $0x20] sm:$0xff] %v1588_v32 }
  0x34   : > { %350 = vst [vmem:[#allocation2 + $0x10] sm:$0xff] %v1588_v32  ;;  %351 = vst [vmem:[#allocation2 + $0x38] sm:$0xff] %v1588_v32 }
  0x35   : > { %352 = vst [vmem:[#allocation2 + $0x60] sm:$0xff] %v1588_v32  ;;  %353 = vst [vmem:[#allocation2 + $0x70] sm:$0xff] %v1588_v32 }
  0x36   : > { %354 = vst [vmem:[#allocation2 + $0x78] sm:$0xff] %v1588_v32  ;;  %355 = vst [vmem:[#allocation2 + $0x28] sm:$0xff] %v1588_v32 }
  0x37 PF: > { %v1468_v33 = vld [vmem:[%s1727_s7 + $0x78] sm:$0xff]   ;;  %v1472_v37 = vld [vmem:[%s1727_s7 + $0x70] sm:$0xff]   ;;  %v1476_v41 = vld [vmem:[%s1727_s7 + $0x68] sm:$0xff]   ;;  %p1292_p11 = scmp.ne.s32.totalorder %s1578_s14, 1 }
  0x38   : > { %v1469_v34 = vld [vmem:[%s1727_s7 + $0xf8] sm:$0xff]   ;;  %1299 = vmatprep.subr.bf16.mxu0 %v1468_v33  ;;  %v1473_v38 = vld [vmem:[%s1727_s7 + $0xf0] sm:$0xff]   ;;  %v1477_v42 = vld [vmem:[%s1727_s7 + $0xe8] sm:$0xff]  }
  0x39   : > { %v1470_v35 = vld [vmem:[%s1727_s7 + $0x38] sm:$0xff]   ;;  %1363 = vmatprep.subr.bf16.mxu1 %v1469_v34  ;;  %v1474_v39 = vld [vmem:[%s1727_s7 + $0x30] sm:$0xff]   ;;  %v1478_v43 = vld [vmem:[%s1727_s7 + $0x28] sm:$0xff]  }
  0x3a   : > { %v1471_v36 = vld [vmem:[%s1727_s7 + $0xb8] sm:$0xff]   ;;  %1300 = vmatpush3.bf16.msra.mxu0 %v1470_v35  ;;  %v1475_v40 = vld [vmem:[%s1727_s7 + $0xb0] sm:$0xff]   ;;  %v1479_v44 = vld [vmem:[%s1727_s7 + $0xa8] sm:$0xff]  }
  0x3b   : > { %1364 = vmatpush3.bf16.msra.mxu1 %v1471_v36  ;;  %1301 = vmatprep.subr.bf16.mxu0 %v1472_v37  ;;  %v1480_v45 = vld [vmem:[%s1727_s7 + $0x60] sm:$0xff]   ;;  %v1484_v49 = vld [vmem:[%s1727_s7 + $0x58] sm:$0xff]   ;;  %v1488_v53 = vld [vmem:[%s1727_s7 + $0x50] sm:$0xff]  }
  0x3c   : > { %1365 = vmatprep.subr.bf16.mxu1 %v1473_v38  ;;  %v1481_v46 = vld [vmem:[%s1727_s7 + $0xe0] sm:$0xff]   ;;  %v1485_v50 = vld [vmem:[%s1727_s7 + $0xd8] sm:$0xff]   ;;  %v1489_v54 = vld [vmem:[%s1727_s7 + $0xd0] sm:$0xff]  }
  0x3d   : > { %v1482_v47 = vld [vmem:[%s1727_s7 + $0x20] sm:$0xff]   ;;  %v1486_v51 = vld [vmem:[%s1727_s7 + $0x18] sm:$0xff]   ;;  %v1490_v55 = vld [vmem:[%s1727_s7 + $0x10] sm:$0xff]  }
  0x3e   : > { %1302 = vmatpush3.bf16.msra.mxu0 %v1474_v39  ;;  %v1483_v48 = vld [vmem:[%s1727_s7 + $0xa0] sm:$0xff]   ;;  %v1487_v52 = vld [vmem:[%s1727_s7 + $0x98] sm:$0xff]   ;;  %v1491_v56 = vld [vmem:[%s1727_s7 + $0x90] sm:$0xff]  }
  0x3f   : > { %1366 = vmatpush3.bf16.msra.mxu1 %v1475_v40  ;;  %1303 = vmatprep.subr.bf16.mxu0 %v1476_v41  ;;  %v1492_v57 = vld [vmem:[%s1727_s7 + $0x48] sm:$0xff]   ;;  %v1496_v61 = vld [vmem:[%s1727_s7 + $0x40] sm:$0xff]   ;;  %v356_v40 = vld [vmem:[#allocation2 + $0x30] sm:$0xff] }
  0x40   : > { %1367 = vmatprep.subr.bf16.mxu1 %v1477_v42  ;;  %v1493_v58 = vld [vmem:[%s1727_s7 + $0xc8] sm:$0xff]   ;;  %v1497_v62 = vld [vmem:[%s1727_s7 + $0xc0] sm:$0xff]  }
  0x41   : > { %v1494_v59 = vld [vmem:[%s1727_s7 + $0x8] sm:$0xff]   ;;  %v1498_v63 = vld [vmem:[%s1727_s7] sm:$0xff]  }
  0x42   : > { %1304 = vmatpush3.bf16.msra.mxu0 %v1478_v43  ;;  %v1495_v60 = vld [vmem:[%s1727_s7 + $0x88] sm:$0xff]   ;;  %v1499_v0 = vld [vmem:[%s1727_s7 + $0x80] sm:$0xff]  }
  0x43   : > { %1368 = vmatpush3.bf16.msra.mxu1 %v1479_v44  ;;  %1305 = vmatprep.subr.bf16.mxu0 %v1480_v45  ;;  %v1500_v1 = vld [vmem:[%s1729_s8] ss:$16 sps:$4 sm:$0xff]   ;;  %v1502_v2 = vld [vmem:[%s1729_s8 + $0x4] ss:$16 sps:$4 sm:$0xff]   ;;  %v1503_v3 = vld [vmem:[%s1729_s8 + $0x8] ss:$16 sps:$4 sm:$0xff]  }
  0x44   : > { %1369 = vmatprep.subr.bf16.mxu1 %v1481_v46  ;;  %v1505_v4 = vld [vmem:[%s1729_s8 + $0xc] ss:$16 sps:$4 sm:$0xff]   ;;  %852 = vmatprep.mubr.bf16.mxu0 %v1502_v2  ;;  %v1506_v5 = vld [vmem:[%s1729_s8 + $0x24] ss:$16 sps:$4 sm:$0xff]   ;;  %v1510_v7 = vld [vmem:[%s1729_s8 + $0x20] ss:$16 sps:$4 sm:$0xff]  }
  0x45   : > { %949 = vmatprep.mubr.bf16.mxu1 %v1505_v4  ;;  %v1508_v6 = vld [vmem:[%s1729_s8 + $0x2c] ss:$16 sps:$4 sm:$0xff]   ;;  %v1511_v8 = vld [vmem:[%s1729_s8 + $0x28] ss:$16 sps:$4 sm:$0xff]   ;;  %v1512_v9 = vld [vmem:[%s1729_s8 + $0x44] ss:$16 sps:$4 sm:$0xff]  }
  0x46   : > { %1306 = vmatpush3.bf16.msra.mxu0 %v1482_v47  ;;  %v1514_v10 = vld [vmem:[%s1729_s8 + $0x4c] ss:$16 sps:$4 sm:$0xff]   ;;  %v1516_v11 = vld [vmem:[%s1729_s8 + $0x40] ss:$16 sps:$4 sm:$0xff]   ;;  %v1517_v12 = vld [vmem:[%s1729_s8 + $0x48] ss:$16 sps:$4 sm:$0xff]  }
  0x47   : > { %1370 = vmatpush3.bf16.msra.mxu1 %v1483_v48  ;;  %1307 = vmatprep.subr.bf16.mxu0 %v1484_v49  ;;  %v1518_v13 = vld [vmem:[%s1729_s8 + $0x64] ss:$16 sps:$4 sm:$0xff]   ;;  %v1520_v14 = vld [vmem:[%s1729_s8 + $0x6c] ss:$16 sps:$4 sm:$0xff]   ;;  %v1522_v15 = vld [vmem:[%s1729_s8 + $0x60] ss:$16 sps:$4 sm:$0xff]  }
  0x48   : > { %1371 = vmatprep.subr.bf16.mxu1 %v1485_v50  ;;  %v1523_v16 = vld [vmem:[%s1729_s8 + $0x68] ss:$16 sps:$4 sm:$0xff]   ;;  %v1524_v17 = vld [vmem:[%s1729_s8 + $0x84] ss:$16 sps:$4 sm:$0xff]   ;;  %v1526_v18 = vld [vmem:[%s1729_s8 + $0x8c] ss:$16 sps:$4 sm:$0xff]  }
  0x49   : > { %v1528_v19 = vld [vmem:[%s1729_s8 + $0x80] ss:$16 sps:$4 sm:$0xff]   ;;  %v1529_v20 = vld [vmem:[%s1729_s8 + $0x88] ss:$16 sps:$4 sm:$0xff]   ;;  %v1530_v21 = vld [vmem:[%s1729_s8 + $0xa4] ss:$16 sps:$4 sm:$0xff]  }
  0x4a   : > { %1308 = vmatpush3.bf16.msra.mxu0 %v1486_v51  ;;  %v1532_v22 = vld [vmem:[%s1729_s8 + $0xac] ss:$16 sps:$4 sm:$0xff]   ;;  %v1534_v23 = vld [vmem:[%s1729_s8 + $0xa0] ss:$16 sps:$4 sm:$0xff]   ;;  %v1535_v24 = vld [vmem:[%s1729_s8 + $0xa8] ss:$16 sps:$4 sm:$0xff]  }
  0x4b   : > { %1372 = vmatpush3.bf16.msra.mxu1 %v1487_v52  ;;  %1309 = vmatprep.subr.bf16.mxu0 %v1488_v53  ;;  %v1536_v25 = vld [vmem:[%s1729_s8 + $0xc4] ss:$16 sps:$4 sm:$0xff]   ;;  %v1538_v26 = vld [vmem:[%s1729_s8 + $0xcc] ss:$16 sps:$4 sm:$0xff]   ;;  %v1540_v27 = vld [vmem:[%s1729_s8 + $0xc0] ss:$16 sps:$4 sm:$0xff]  }
  0x4c   : > { %1373 = vmatprep.subr.bf16.mxu1 %v1489_v54  ;;  %v1541_v28 = vld [vmem:[%s1729_s8 + $0xc8] ss:$16 sps:$4 sm:$0xff]   ;;  %v1542_v29 = vld [vmem:[%s1729_s8 + $0xe4] ss:$16 sps:$4 sm:$0xff]   ;;  %v1544_v30 = vld [vmem:[%s1729_s8 + $0xec] ss:$16 sps:$4 sm:$0xff]  }
  0x4d   : > { %v1546_v31 = vld [vmem:[%s1729_s8 + $0xe0] ss:$16 sps:$4 sm:$0xff]   ;;  %v1547_v32 = vld [vmem:[%s1729_s8 + $0xe8] ss:$16 sps:$4 sm:$0xff]  }
  0x4e   : > { %1310 = vmatpush3.bf16.msra.mxu0 %v1490_v55  ;;  %v357_v49 = vld [vmem:[#allocation2] sm:$0xff] }
  0x4f   : > { %1374 = vmatpush3.bf16.msra.mxu1 %v1491_v56  ;;  %1311 = vmatprep.subr.bf16.mxu0 %v1492_v57 }
  0x50   : > { %1375 = vmatprep.subr.bf16.mxu1 %v1493_v58  ;;  %v358_v58 = vld [vmem:[#allocation2 + $0x58] sm:$0xff] }
  0x52   : > { %1312 = vmatpush3.bf16.msra.mxu0 %v1494_v59 }
  0x53   : > { %1376 = vmatpush3.bf16.msra.mxu1 %v1495_v60  ;;  %1313 = vmatprep.subr.bf16.mxu0 %v1496_v61 }
  0x54   : > { %1377 = vmatprep.subr.bf16.mxu1 %v1497_v62 }
  0x56   : > { %1314 = vmatpush3.bf16.msra.mxu0 %v1498_v63 }
  0x57   : > { %1378 = vmatpush3.bf16.msra.mxu1 %v1499_v0 }
  0x59   : > { %853 = vmatmul.mubr.bf16.vlgmr.msra.gmra.mxu0 %v1500_v1 }
  0x5a   : > { %950 = vmatmul.mubr.bf16.vlgmr.msra.gmra.mxu1 %v1503_v3  ;;  %860 = vmatprep.mubr.bf16.mxu0 %v1506_v5  ;;  %v359_v3 = vld [vmem:[#allocation2 + $0x18] sm:$0xff] }
  0x5b   : > { %957 = vmatprep.mubr.bf16.mxu1 %v1508_v6 }
  0x61   : > { %861 = vmatmul.mubr.bf16.gmra.mxu0 %v1510_v7 }
  0x62   : > { %958 = vmatmul.mubr.bf16.gmra.mxu1 %v1511_v8  ;;  %868 = vmatprep.mubr.bf16.mxu0 %v1512_v9 }
  0x63   : > { %965 = vmatprep.mubr.bf16.mxu1 %v1514_v10 }
  0x69   : > { %869 = vmatmul.mubr.bf16.gmra.mxu0 %v1516_v11 }
  0x6a   : > { %966 = vmatmul.mubr.bf16.gmra.mxu1 %v1517_v12  ;;  %876 = vmatprep.mubr.bf16.mxu0 %v1518_v13  ;;  %v360_v12 = vld [vmem:[#allocation2 + $0x50] sm:$0xff] }
  0x6b   : > { %973 = vmatprep.mubr.bf16.mxu1 %v1520_v14 }
  0x71   : > { %877 = vmatmul.mubr.bf16.gmra.mxu0 %v1522_v15 }
  0x72   : > { %974 = vmatmul.mubr.bf16.gmra.mxu1 %v1523_v16  ;;  %884 = vmatprep.mubr.bf16.mxu0 %v1524_v17 }
  0x73   : > { %981 = vmatprep.mubr.bf16.mxu1 %v1526_v18 }
  0x79   : > { %885 = vmatmul.mubr.bf16.gmra.mxu0 %v1528_v19 }
  0x7a   : > { %982 = vmatmul.mubr.bf16.gmra.mxu1 %v1529_v20  ;;  %892 = vmatprep.mubr.bf16.mxu0 %v1530_v21  ;;  %v361_v21 = vld [vmem:[#allocation2 + $0x68] sm:$0xff] }
  0x7b   : > { %989 = vmatprep.mubr.bf16.mxu1 %v1532_v22 }
  0x81   : > { %893 = vmatmul.mubr.bf16.gmra.mxu0 %v1534_v23 }
  0x82   : > { %990 = vmatmul.mubr.bf16.gmra.mxu1 %v1535_v24  ;;  %900 = vmatprep.mubr.bf16.mxu0 %v1536_v25 }
  0x83   : > { %997 = vmatprep.mubr.bf16.mxu1 %v1538_v26 }
  0x89   : > { %901 = vmatmul.mubr.bf16.gmra.mxu0 %v1540_v27 }
  0x8a   : > { %998 = vmatmul.mubr.bf16.gmra.mxu1 %v1541_v28  ;;  %908 = vmatprep.mubr.bf16.mxu0 %v1542_v29 }
  0x8b   : > { %1005 = vmatprep.mubr.bf16.mxu1 %v1544_v30  ;;  %v362_v30 = vld [vmem:[#allocation2 + $0x8] sm:$0xff] }
  0x91   : > { %909 = vmatmul.mubr.bf16.gmra.mxu0 %v1546_v31 }
  0x92   : > { %1006 = vmatmul.mubr.bf16.gmra.mxu1 %v1547_v32 }
 0x119   : > { %v1315_v33 = vpop.f32.mrf.mxu0 }
 0x11a   : > { %v1379_v34 = vpop.f32.mrf.mxu1 }
 0x11b   : > { %v1316_v35 = vpop.f32.mrf.mxu0 }
 0x11c   : > { %v1317_v36 = vadd.f32 %v1316_v35, %v1315_v33  ;;  %v1380_v37 = vpop.f32.mrf.mxu1 }
 0x11d   : > { %v1381_v38 = vadd.f32 %v1380_v37, %v1379_v34  ;;  %v1318_v39 = vpop.f32.mrf.mxu0 }
 0x11e   : > { %v1382_v41 = vpop.f32.mrf.mxu1 }
 0x11f   : > { %v952_v42 = vadd.f32 %v1381_v38, %v1317_v36  ;;  %v1319_v43 = vpop.f32.mrf.mxu0 }
 0x120   : > { %v1320_v44 = vadd.f32 %v1319_v43, %v1318_v39  ;;  %v1383_v45 = vpop.f32.mrf.mxu1  ;;  %v363_v39 = vld [vmem:[#allocation2 + $0x48] sm:$0xff] }
 0x121   : > { %v1014_v46 = vadd.f32 %v952_v42, %v356_v40  ;;  %v1384_v47 = vadd.f32 %v1383_v45, %v1382_v41  ;;  %v1321_v48 = vpop.f32.mrf.mxu0 }
 0x122   : > { %v1385_v50 = vpop.f32.mrf.mxu1 }
 0x123   : > { %1030 = vst [vmem:[#allocation2 + $0x30] sm:$0xff] %v1014_v46  ;;  %v955_v51 = vadd.f32 %v1384_v47, %v1320_v44  ;;  %v1322_v52 = vpop.f32.mrf.mxu0 }
 0x124   : > { %v1323_v53 = vadd.f32 %v1322_v52, %v1321_v48  ;;  %v1386_v54 = vpop.f32.mrf.mxu1  ;;  %v364_v48 = vld [vmem:[#allocation2 + $0x40] sm:$0xff] }
 0x125   : > { %v1015_v55 = vadd.f32 %v955_v51, %v357_v49  ;;  %v1387_v56 = vadd.f32 %v1386_v54, %v1385_v50  ;;  %v1324_v57 = vpop.f32.mrf.mxu0 }
 0x126   : > { %v1388_v59 = vpop.f32.mrf.mxu1 }
 0x127   : > { %1031 = vst [vmem:[#allocation2] sm:$0xff] %v1015_v55  ;;  %v960_v60 = vadd.f32 %v1387_v56, %v1323_v53  ;;  %v1325_v61 = vpop.f32.mrf.mxu0 }
 0x128   : > { %v1326_v62 = vadd.f32 %v1325_v61, %v1324_v57  ;;  %v1389_v63 = vpop.f32.mrf.mxu1  ;;  %v365_v57 = vld [vmem:[#allocation2 + $0x20] sm:$0xff] }
 0x129   : > { %v1016_v0 = vadd.f32 %v960_v60, %v358_v58  ;;  %v1390_v1 = vadd.f32 %v1389_v63, %v1388_v59  ;;  %v1327_v2 = vpop.f32.mrf.mxu0 }
 0x12a   : > { %v1391_v4 = vpop.f32.mrf.mxu1 }
 0x12b   : > { %1032 = vst [vmem:[#allocation2 + $0x58] sm:$0xff] %v1016_v0  ;;  %v963_v5 = vadd.f32 %v1390_v1, %v1326_v62  ;;  %v1328_v6 = vpop.f32.mrf.mxu0 }
 0x12c   : > { %v1329_v7 = vadd.f32 %v1328_v6, %v1327_v2  ;;  %v1392_v8 = vpop.f32.mrf.mxu1  ;;  %v366_v2 = vld [vmem:[#allocation2 + $0x10] sm:$0xff] }
 0x12d   : > { %v1017_v9 = vadd.f32 %v963_v5, %v359_v3  ;;  %v1393_v10 = vadd.f32 %v1392_v8, %v1391_v4  ;;  %v1330_v11 = vpop.f32.mrf.mxu0 }
 0x12e   : > { %v1394_v13 = vpop.f32.mrf.mxu1 }
 0x12f   : > { %1033 = vst [vmem:[#allocation2 + $0x18] sm:$0xff] %v1017_v9  ;;  %v968_v14 = vadd.f32 %v1393_v10, %v1329_v7  ;;  %v1331_v15 = vpop.f32.mrf.mxu0 }
 0x130   : > { %v1332_v16 = vadd.f32 %v1331_v15, %v1330_v11  ;;  %v1395_v17 = vpop.f32.mrf.mxu1  ;;  %v367_v11 = vld [vmem:[#allocation2 + $0x38] sm:$0xff] }
 0x131   : > { %v1018_v18 = vadd.f32 %v968_v14, %v360_v12  ;;  %v1396_v19 = vadd.f32 %v1395_v17, %v1394_v13  ;;  %v1333_v20 = vpop.f32.mrf.mxu0 }
 0x132   : > { %v1397_v22 = vpop.f32.mrf.mxu1 }
 0x133   : > { %1034 = vst [vmem:[#allocation2 + $0x50] sm:$0xff] %v1018_v18  ;;  %v971_v23 = vadd.f32 %v1396_v19, %v1332_v16  ;;  %v1334_v24 = vpop.f32.mrf.mxu0 }
 0x134   : > { %v1335_v25 = vadd.f32 %v1334_v24, %v1333_v20  ;;  %v1398_v26 = vpop.f32.mrf.mxu1  ;;  %v368_v20 = vld [vmem:[#allocation2 + $0x60] sm:$0xff] }
 0x135   : > { %v1019_v27 = vadd.f32 %v971_v23, %v361_v21  ;;  %v1399_v28 = vadd.f32 %v1398_v26, %v1397_v22  ;;  %v1336_v29 = vpop.f32.mrf.mxu0 }
 0x136   : > { %v1400_v31 = vpop.f32.mrf.mxu1 }
 0x137   : > { %1035 = vst [vmem:[#allocation2 + $0x68] sm:$0xff] %v1019_v27  ;;  %v976_v32 = vadd.f32 %v1399_v28, %v1335_v25  ;;  %v1337_v33 = vpop.f32.mrf.mxu0 }
 0x138   : > { %v1338_v34 = vadd.f32 %v1337_v33, %v1336_v29  ;;  %v1401_v35 = vpop.f32.mrf.mxu1  ;;  %v369_v29 = vld [vmem:[#allocation2 + $0x70] sm:$0xff] }
 0x139   : > { %v1020_v36 = vadd.f32 %v976_v32, %v362_v30  ;;  %v1402_v37 = vadd.f32 %v1401_v35, %v1400_v31  ;;  %v1339_v38 = vpop.f32.mrf.mxu0 }
 0x13a   : > { %v1403_v40 = vpop.f32.mrf.mxu1 }
 0x13b   : > { %1036 = vst [vmem:[#allocation2 + $0x8] sm:$0xff] %v1020_v36  ;;  %v979_v41 = vadd.f32 %v1402_v37, %v1338_v34  ;;  %v1340_v42 = vpop.f32.mrf.mxu0 }
 0x13c   : > { %v1341_v43 = vadd.f32 %v1340_v42, %v1339_v38  ;;  %v1404_v44 = vpop.f32.mrf.mxu1  ;;  %v370_v38 = vld [vmem:[#allocation2 + $0x78] sm:$0xff] }
 0x13d   : > { %v1021_v45 = vadd.f32 %v979_v41, %v363_v39  ;;  %v1405_v46 = vadd.f32 %v1404_v44, %v1403_v40  ;;  %v1342_v47 = vpop.f32.mrf.mxu0 }
 0x13e   : > { %v1406_v49 = vpop.f32.mrf.mxu1 }
 0x13f   : > { %1037 = vst [vmem:[#allocation2 + $0x48] sm:$0xff] %v1021_v45  ;;  %v984_v50 = vadd.f32 %v1405_v46, %v1341_v43  ;;  %v1343_v51 = vpop.f32.mrf.mxu0  ;;  %v371_v46 = vld [vmem:[#allocation2 + $0x28] sm:$0xff] }
 0x140   : > { %v1344_v52 = vadd.f32 %v1343_v51, %v1342_v47  ;;  %v1407_v53 = vpop.f32.mrf.mxu1 }
 0x141   : > { %v1022_v54 = vadd.f32 %v984_v50, %v364_v48  ;;  %v1408_v55 = vadd.f32 %v1407_v53, %v1406_v49  ;;  %v1345_v56 = vpop.f32.mrf.mxu0 }
 0x142   : > { %v1409_v58 = vpop.f32.mrf.mxu1 }
 0x143   : > { %1038 = vst [vmem:[#allocation2 + $0x40] sm:$0xff] %v1022_v54  ;;  %v987_v59 = vadd.f32 %v1408_v55, %v1344_v52  ;;  %v1346_v60 = vpop.f32.mrf.mxu0 }
 0x144   : > { %v1347_v61 = vadd.f32 %v1346_v60, %v1345_v56  ;;  %v1410_v62 = vpop.f32.mrf.mxu1 }
 0x145   : > { %v1023_v63 = vadd.f32 %v987_v59, %v365_v57  ;;  %v1411_v0 = vadd.f32 %v1410_v62, %v1409_v58  ;;  %v1348_v1 = vpop.f32.mrf.mxu0 }
 0x146   : > { %v1412_v3 = vpop.f32.mrf.mxu1 }
 0x147   : > { %1039 = vst [vmem:[#allocation2 + $0x20] sm:$0xff] %v1023_v63  ;;  %v992_v4 = vadd.f32 %v1411_v0, %v1347_v61  ;;  %v1349_v5 = vpop.f32.mrf.mxu0 }
 0x148   : > { %v1350_v6 = vadd.f32 %v1349_v5, %v1348_v1  ;;  %v1413_v7 = vpop.f32.mrf.mxu1 }
 0x149   : > { %v1024_v8 = vadd.f32 %v992_v4, %v366_v2  ;;  %v1414_v9 = vadd.f32 %v1413_v7, %v1412_v3  ;;  %v1351_v10 = vpop.f32.mrf.mxu0 }
 0x14a   : > { %v1415_v12 = vpop.f32.mrf.mxu1 }
 0x14b   : > { %1040 = vst [vmem:[#allocation2 + $0x10] sm:$0xff] %v1024_v8  ;;  %v995_v13 = vadd.f32 %v1414_v9, %v1350_v6  ;;  %v1352_v14 = vpop.f32.mrf.mxu0 }
 0x14c   : > { %v1353_v15 = vadd.f32 %v1352_v14, %v1351_v10  ;;  %v1416_v16 = vpop.f32.mrf.mxu1 }
 0x14d   : > { %v1025_v17 = vadd.f32 %v995_v13, %v367_v11  ;;  %v1417_v18 = vadd.f32 %v1416_v16, %v1415_v12  ;;  %v1354_v19 = vpop.f32.mrf.mxu0 }
 0x14e   : > { %v1418_v21 = vpop.f32.mrf.mxu1 }
 0x14f   : > { %1041 = vst [vmem:[#allocation2 + $0x38] sm:$0xff] %v1025_v17  ;;  %v1000_v22 = vadd.f32 %v1417_v18, %v1353_v15  ;;  %v1355_v23 = vpop.f32.mrf.mxu0 }
 0x150   : > { %v1356_v24 = vadd.f32 %v1355_v23, %v1354_v19  ;;  %v1419_v25 = vpop.f32.mrf.mxu1 }
 0x151   : > { %v1026_v26 = vadd.f32 %v1000_v22, %v368_v20  ;;  %v1420_v27 = vadd.f32 %v1419_v25, %v1418_v21  ;;  %v1357_v28 = vpop.f32.mrf.mxu0 }
 0x152   : > { %v1421_v30 = vpop.f32.mrf.mxu1 }
 0x153   : > { %1042 = vst [vmem:[#allocation2 + $0x60] sm:$0xff] %v1026_v26  ;;  %v1003_v31 = vadd.f32 %v1420_v27, %v1356_v24  ;;  %v1358_v32 = vpop.f32.mrf.mxu0 }
 0x154   : > { %v1359_v33 = vadd.f32 %v1358_v32, %v1357_v28  ;;  %v1422_v34 = vpop.f32.mrf.mxu1 }
 0x155   : > { %v1027_v35 = vadd.f32 %v1003_v31, %v369_v29  ;;  %v1423_v36 = vadd.f32 %v1422_v34, %v1421_v30  ;;  %v1360_v37 = vpop.f32.mrf.mxu0 }
 0x156   : > { %v1424_v39 = vpop.f32.mrf.mxu1 }
 0x157   : > { %1043 = vst [vmem:[#allocation2 + $0x70] sm:$0xff] %v1027_v35  ;;  %v1008_v40 = vadd.f32 %v1423_v36, %v1359_v33  ;;  %v1361_v41 = vpop.f32.mrf.mxu0 }
 0x158   : > { %v1362_v42 = vadd.f32 %v1361_v41, %v1360_v37  ;;  %v1425_v43 = vpop.f32.mrf.mxu1 }
 0x159   : > { %v1028_v44 = vadd.f32 %v1008_v40, %v370_v38  ;;  %v1426_v45 = vadd.f32 %v1425_v43, %v1424_v39 }
 0x15b   : > { %1044 = vst [vmem:[#allocation2 + $0x78] sm:$0xff] %v1028_v44  ;;  %v1011_v47 = vadd.f32 %v1426_v45, %v1362_v42  ;;  %1049 = sbr.rel (%p1292_p11) target bundleno = 363 (0x16b), region = 63 }
 0x15d   : > { %v1029_v48 = vadd.f32 %v1011_v47, %v371_v46 }
 0x15f   : > { %1045 = vst [vmem:[#allocation2 + $0x28] sm:$0xff] %v1029_v48 }
 0x160   : > { %v1050_v49 = vld [vmem:[#allocation2 + $0x30] sm:$0xff]  ;;  %v1293_v50 = vld [vmem:[%s1865_s2] ss:$0 sm:$0xff]  ;;  %v1052_v54 = vld [vmem:[#allocation2 + $0x58] sm:$0xff] }
 0x161   : > { %v1051_v51 = vld [vmem:[#allocation2] sm:$0xff]  ;;  %v1073_v52 = vadd.f32 %v1293_v50, %v1050_v49  ;;  %v1053_v55 = vld [vmem:[#allocation2 + $0x18] sm:$0xff]  ;;  %v1054_v56 = vld [vmem:[#allocation2 + $0x50] sm:$0xff]  ;;  %v1075_v57 = vadd.f32 %v1293_v50, %v1052_v54 }
 0x162   : > { %v1074_v53 = vadd.f32 %v1293_v50, %v1051_v51  ;;  %v1076_v58 = vadd.f32 %v1293_v50, %v1053_v55  ;;  %v1077_v59 = vadd.f32 %v1293_v50, %v1054_v56  ;;  %v1055_v60 = vld [vmem:[#allocation2 + $0x68] sm:$0xff]  ;;  %v1058_v2 = vld [vmem:[#allocation2 + $0x40] sm:$0xff]  ;;  %v1060_v4 = vld [vmem:[#allocation2 + $0x10] sm:$0xff] }
 0x163   : > { %v1056_v61 = vld [vmem:[#allocation2 + $0x8] sm:$0xff]  ;;  %1089 = vst [vmem:[%s1866_s3] sm:$0xff] %v1073_v52  ;;  %v1078_v63 = vadd.f32 %v1293_v50, %v1055_v60  ;;  %v1059_v3 = vld [vmem:[#allocation2 + $0x20] sm:$0xff]  ;;  %1091 = vst [vmem:[%s1866_s3 + $0x10] sm:$0xff] %v1075_v57  ;;  %v1081_v5 = vadd.f32 %v1293_v50, %v1058_v2  ;;  %v1083_v7 = vadd.f32 %v1293_v50, %v1060_v4 }
 0x164   : > { %v1057_v62 = vld [vmem:[#allocation2 + $0x48] sm:$0xff]  ;;  %1090 = vst [vmem:[%s1866_s3 + $0x8] sm:$0xff] %v1074_v53  ;;  %v1079_v0 = vadd.f32 %v1293_v50, %v1056_v61  ;;  %1092 = vst [vmem:[%s1866_s3 + $0x18] sm:$0xff] %v1076_v58  ;;  %v1082_v6 = vadd.f32 %v1293_v50, %v1059_v3  ;;  %v1061_v8 = vld [vmem:[#allocation2 + $0x38] sm:$0xff] }
 0x165   : > { %v1080_v1 = vadd.f32 %v1293_v50, %v1057_v62  ;;  %1093 = vst [vmem:[%s1866_s3 + $0x20] sm:$0xff] %v1077_v59  ;;  %v1062_v9 = vld [vmem:[#allocation2 + $0x60] sm:$0xff]  ;;  %v1063_v10 = vld [vmem:[#allocation2 + $0x70] sm:$0xff]  ;;  %1094 = vst [vmem:[%s1866_s3 + $0x28] sm:$0xff] %v1078_v63  ;;  %v1084_v11 = vadd.f32 %v1293_v50, %v1061_v8 }
 0x166   : > { %1095 = vst [vmem:[%s1866_s3 + $0x30] sm:$0xff] %v1079_v0  ;;  %v1085_v12 = vadd.f32 %v1293_v50, %v1062_v9  ;;  %v1086_v13 = vadd.f32 %v1293_v50, %v1063_v10  ;;  %v1064_v14 = vld [vmem:[#allocation2 + $0x78] sm:$0xff]  ;;  %v1065_v15 = vld [vmem:[#allocation2 + $0x28] sm:$0xff]  ;;  %1097 = vst [vmem:[%s1866_s3 + $0x40] sm:$0xff] %v1081_v5 }
 0x167   : > { %1096 = vst [vmem:[%s1866_s3 + $0x38] sm:$0xff] %v1080_v1  ;;  %1098 = vst [vmem:[%s1866_s3 + $0x48] sm:$0xff] %v1082_v6  ;;  %v1087_v16 = vadd.f32 %v1293_v50, %v1064_v14  ;;  %v1088_v17 = vadd.f32 %v1293_v50, %v1065_v15 }
 0x168   : > { %1099 = vst [vmem:[%s1866_s3 + $0x50] sm:$0xff] %v1083_v7  ;;  %1100 = vst [vmem:[%s1866_s3 + $0x58] sm:$0xff] %v1084_v11 }
 0x169   : > { %1101 = vst [vmem:[%s1866_s3 + $0x60] sm:$0xff] %v1085_v12  ;;  %1102 = vst [vmem:[%s1866_s3 + $0x68] sm:$0xff] %v1086_v13 }
 0x16a   : > { %1103 = vst [vmem:[%s1866_s3 + $0x70] sm:$0xff] %v1087_v16  ;;  %1104 = vst [vmem:[%s1866_s3 + $0x78] sm:$0xff] %v1088_v17 }
 0x16b PF: > { %s13_s16 = sadd.s32 1, %s1586_s16   ;;  %s1867_s12 = smov %s1574_s13 }
 0x16c   : > { %p10_p12 = scmp.ge.s32.totalorder %s13_s16, 4   ;;  %s1868_s13 = smov %s1644_s20 }
 0x16d   : > { %s1869_s14 = smov %s1582_s15  ;;  %s1870_s15 = smov %s1872_s17 }
 0x16e   :  { %12 = sbr.rel (!%p10_p12) target bundleno = 3 (0x3), region = 104 }

</bundles_post_ra>
